<compile_context>
chip_gen: v7x
topology: tpu7x:2x2x1
jax: 0.10.0
libtpu: 0.0.40
codegen_flags: <defaults>
</compile_context>

<pallas_src>
import math
from functools import partial

import jax
import jax.numpy as jnp
from jax.experimental import pallas as pl
from jax.experimental.pallas import tpu as pltpu  # noqa: F401  (TPU backend)

# ------------------------- model config (small synthetic sizes) -------------------------
VOCAB      = 64            # vocab_size
VOCAB_PAD  = 128           # fc_out padded to a lane-dense 128-wide output store
EMBED      = 32            # embed_size
HEADS      = 4             # num_heads
HEAD_DIM   = EMBED // HEADS
LAYERS     = 2             # num_decoder_layers
DIM_FF     = EMBED         # dim_feedforward == embed_size in the module
ENC_DIM    = 64            # stand-in for mobilevit_s encoder.num_features (640 in real model)
PATCH      = 4             # stand-in patchify stride for the frozen encoder
PATCH_K    = 3 * PATCH * PATCH      # 48
PATCH_K_PAD = 64                    # contraction dim padded for clean sublane loads
LN_EPS     = 1e-5
NEG_INF    = -1e9


# --------------------------- in-kernel helpers (values, not refs) ------------------------
def _ln(x, g, b):
    """LayerNorm over last dim. x:(M,E), g/b:(1,E)."""
    mu = jnp.mean(x, axis=-1, keepdims=True)
    var = jnp.mean(jnp.square(x - mu), axis=-1, keepdims=True)
    return (x - mu) * jax.lax.rsqrt(var + LN_EPS) * g + b


def _sdpa(q, k, v, mask):
    """Scaled dot-product attention. q:(T,d), k/v:(S,d), mask additive (T,S) or None."""
    s = jax.lax.dot_general(q, k, (((1,), (1,)), ((), ())),
                            preferred_element_type=jnp.float32)
    s = s * (1.0 / math.sqrt(q.shape[-1]))
    if mask is not None:
        s = s + mask
    s = s - jnp.max(s, axis=-1, keepdims=True)
    p = jnp.exp(s)
    p = p * pl.reciprocal(jnp.sum(p, axis=-1, keepdims=True), approx=True)
    return jnp.dot(p, v, preferred_element_type=jnp.float32)


# ------------------------------------ fused forward kernel -------------------------------
def _captioner_kernel(
    # frozen-encoder stand-in
    patches_ref, enc_w_ref, enc_b_ref, proj_w_ref, proj_b_ref,
    # decoder inputs
    ids_ref, embed_w_ref, pe_ref,
    # per-layer stacked decoder weights (leading axis = layer)
    wqkv_s_ref, bqkv_s_ref, wo_s_ref, bo_s_ref,
    wq_c_ref, bq_c_ref, wkv_c_ref, bkv_c_ref, wo_c_ref, bo_c_ref,
    wff1_ref, bff1_ref, wff2_ref, bff2_ref,
    lng_ref, lnb_ref,
    # output head
    oln_g_ref, oln_b_ref, fc_w_ref, fc_b_ref,
    # output
    out_ref,
    *, B, T, S, H, d, E, L,
):
    f32 = jnp.float32

    # ---- frozen-encoder stand-in: patchify conv as matmul + encoder_projection ----
    feat = jnp.dot(patches_ref[...], enc_w_ref[...], preferred_element_type=f32) + enc_b_ref[...]
    mem = jnp.dot(feat, proj_w_ref[...], preferred_element_type=f32) + proj_b_ref[...]   # (B*S, E)

    # ---- embedding lookup (VMEM-resident table, in-kernel one-hot) + positional encoding ----
    ids = ids_ref[...]                                                       # (B*T, 1) int32
    col = jax.lax.broadcasted_iota(jnp.int32, (B * T, VOCAB), 1)
    onehot = (col == ids).astype(f32)
    x = jnp.dot(onehot, embed_w_ref[...], preferred_element_type=f32) + pe_ref[...]     # (B*T, E)

    # ---- causal mask built in-kernel (no HBM input) ----
    r = jax.lax.broadcasted_iota(jnp.int32, (T, T), 0)
    c = jax.lax.broadcasted_iota(jnp.int32, (T, T), 1)
    causal = jnp.where(c > r, NEG_INF, 0.0).astype(f32)

    def attend(q_all, kv_all, q_len, kv_len, mask):
        """Multi-head attention over batch-major rows, all heads in this single kernel call.
        q_all:(B*q_len, E), kv_all:(B*kv_len, 2E) packed as [K | V].  Returns (B*q_len, E)."""
        out_rows = []
        for b in range(B):                       # static unroll — no grid steps
            qb = q_all[b * q_len:(b + 1) * q_len, :]
            kvb = kv_all[b * kv_len:(b + 1) * kv_len, :]
            heads = []
            for h in range(H):                   # static unroll
                q = qb[:, h * d:(h + 1) * d]
                k = kvb[:, h * d:(h + 1) * d]
                v = kvb[:, E + h * d:E + (h + 1) * d]
                heads.append(_sdpa(q, k, v, mask))
            out_rows.append(jnp.concatenate(heads, axis=-1))      # (q_len, E)
        return jnp.concatenate(out_rows, axis=0)                  # (B*q_len, E)

    # ---- nn.TransformerDecoder (post-norm, relu, dropout = identity in eval) ----
    for l in range(L):
        lng = lng_ref[l]     # (3, E)
        lnb = lnb_ref[l]

        # self-attention (fused QKV projection) + residual + LN1
        qkv = jnp.dot(x, wqkv_s_ref[l], preferred_element_type=f32) + bqkv_s_ref[l]      # (B*T, 3E)
        sa = attend(qkv[:, :E], qkv[:, E:], T, T, causal)
        sa = jnp.dot(sa, wo_s_ref[l], preferred_element_type=f32) + bo_s_ref[l]
        x = _ln(x + sa, lng[0:1, :], lnb[0:1, :])

        # cross-attention (fused KV projection of memory) + residual + LN2
        qc = jnp.dot(x, wq_c_ref[l], preferred_element_type=f32) + bq_c_ref[l]           # (B*T, E)
        kvc = jnp.dot(mem, wkv_c_ref[l], preferred_element_type=f32) + bkv_c_ref[l]      # (B*S, 2E)
        ca = attend(qc, kvc, T, S, None)
        ca = jnp.dot(ca, wo_c_ref[l], preferred_element_type=f32) + bo_c_ref[l]
        x = _ln(x + ca, lng[1:2, :], lnb[1:2, :])

        # feed-forward + residual + LN3
        h1 = jnp.maximum(jnp.dot(x, wff1_ref[l], preferred_element_type=f32) + bff1_ref[l], 0.0)
        ff = jnp.dot(h1, wff2_ref[l], preferred_element_type=f32) + bff2_ref[l]
        x = _ln(x + ff, lng[2:3, :], lnb[2:3, :])

    # ---- pre_output_norm + fc_out (padded to 128 cols => single lane-dense unmasked store) ----
    x = _ln(x, oln_g_ref[...], oln_b_ref[...])
    out_ref[...] = jnp.dot(x, fc_w_ref[...], preferred_element_type=f32) + fc_b_ref[...]


# ------------------------------------- wrapper (glue) ------------------------------------
def positional_encoding_table(max_len, dim):
    pos = jnp.arange(max_len, dtype=jnp.float32)[:, None]
    div = jnp.exp(jnp.arange(0, dim, 2, dtype=jnp.float32) * (-math.log(10000.0) / dim))
    pe = jnp.zeros((max_len, dim), jnp.float32)
    pe = pe.at[:, 0::2].set(jnp.sin(pos * div))
    pe = pe.at[:, 1::2].set(jnp.cos(pos * div))
    return pe


def captioning_student_forward(params, images, captions):
    B, C, Himg, Wimg = images.shape
    P = PATCH
    Hp, Wp = Himg // P, Wimg // P
    S = Hp * Wp
    T, Bc = captions.shape
    assert Bc == B

    # TODO(synk): the frozen pretrained MobileViT-S backbone (encoder.forward_features) has no
    # clean Pallas equivalent; stand-in is a single patchify conv (kernel=stride=P) done as a
    # matmul inside the fused kernel.
    patches = images.reshape(B, C, Hp, P, Wp, P).transpose(0, 2, 4, 1, 3, 5)
    patches = patches.reshape(B * S, C * P * P)
    patches = jnp.pad(patches, ((0, 0), (0, PATCH_K_PAD - C * P * P)))      # K: 48 -> 64

    ids = captions.T.reshape(B * T, 1).astype(jnp.int32)                    # batch-major token ids
    pe_bt = jnp.tile(params["pe"][:T], (B, 1))                              # pe[t] at row b*T+t

    kern = partial(_captioner_kernel, B=B, T=T, S=S, H=HEADS, d=HEAD_DIM, E=EMBED, L=LAYERS)
    # Single pallas_call, no grid: every operand is a full-array VMEM block (all tiny here).
    # For real model sizes this would become a tiled grid with ('parallel','parallel','arbitrary')
    # dimension_semantics and bf16 operand tiles.
    out = pl.pallas_call(
        kern,
        out_shape=jax.ShapeDtypeStruct((B * T, VOCAB_PAD), jnp.float32),
    )(
        patches, params["enc_w"], params["enc_b"], params["proj_w"], params["proj_b"],
        ids, params["embed_w"], pe_bt,
        params["w_qkv_self"], params["b_qkv_self"], params["w_o_self"], params["b_o_self"],
        params["w_q_cross"], params["b_q_cross"], params["w_kv_cross"], params["b_kv_cross"],
        params["w_o_cross"], params["b_o_cross"],
        params["w_ff1"], params["b_ff1"], params["w_ff2"], params["b_ff2"],
        params["ln_g"], params["ln_b"],
        params["out_ln_g"], params["out_ln_b"], params["fc_w"], params["fc_b"],
    )
    # un-pad vocab, restore (T, B, VOCAB) seq-first layout (tiny final tensor; cheap XLA ops)
    logits = out[:, :VOCAB].reshape(B, T, VOCAB).transpose(1, 0, 2)
    return logits


# ---------------------------------- deterministic init -----------------------------------
def init_params(key):
    ks = iter(jax.random.split(key, 64))

    def u(shape, scale=0.1):
        return jax.random.uniform(next(ks), shape, jnp.float32, -scale, scale)

    def zeros(*shape):
        return jnp.zeros(shape, jnp.float32)

    def stack(shape):
        return u((LAYERS,) + shape)

    enc_w = jnp.pad(u((PATCH_K, ENC_DIM)), ((0, PATCH_K_PAD - PATCH_K), (0, 0)))   # zero-padded K rows
    fc_w = jnp.pad(u((EMBED, VOCAB)), ((0, 0), (0, VOCAB_PAD - VOCAB)))            # lane-dense pad

    return dict(
        enc_w=enc_w, enc_b=zeros(1, ENC_DIM),
        proj_w=u((ENC_DIM, EMBED)), proj_b=zeros(1, EMBED),
        embed_w=u((VOCAB, EMBED)),                         # nn.init.uniform_(-0.1, 0.1)
        pe=positional_encoding_table(128, EMBED),
        # fused/stacked decoder-layer weights (leading axis = layer)
        w_qkv_self=stack((EMBED, 3 * EMBED)), b_qkv_self=zeros(LAYERS, 1, 3 * EMBED),
        w_o_self=stack((EMBED, EMBED)),       b_o_self=zeros(LAYERS, 1, EMBED),
        w_q_cross=stack((EMBED, EMBED)),      b_q_cross=zeros(LAYERS, 1, EMBED),
        w_kv_cross=stack((EMBED, 2 * EMBED)), b_kv_cross=zeros(LAYERS, 1, 2 * EMBED),
        w_o_cross=stack((EMBED, EMBED)),      b_o_cross=zeros(LAYERS, 1, EMBED),
        w_ff1=stack((EMBED, DIM_FF)),         b_ff1=zeros(LAYERS, 1, DIM_FF),
        w_ff2=stack((DIM_FF, EMBED)),         b_ff2=zeros(LAYERS, 1, EMBED),
        ln_g=jnp.ones((LAYERS, 3, EMBED), jnp.float32),
        ln_b=jnp.zeros((LAYERS, 3, EMBED), jnp.float32),
        out_ln_g=jnp.ones((1, EMBED), jnp.float32),
        out_ln_b=jnp.zeros((1, EMBED), jnp.float32),
        fc_w=fc_w, fc_b=zeros(1, VOCAB_PAD),               # bias = 0 like nn.init.constant_(0)
    )


# ------------------------------------------ main -----------------------------------------
if __name__ == "__main__":
    key = jax.random.PRNGKey(0)
    pkey, ikey, ckey = jax.random.split(key, 3)

    params = init_params(pkey)

    B, T = 2, 8
    images = jax.random.normal(ikey, (B, 3, 16, 16), jnp.float32)      # NCHW, like PyTorch
    captions = jax.random.randint(ckey, (T, B), 0, VOCAB)              # (seq, batch)

    fwd = jax.jit(captioning_student_forward)
    logits = fwd(params, images, captions)
    jax.block_until_ready(logits)

    assert logits.shape == (T, B, VOCAB), logits.shape
    assert jnp.all(jnp.isfinite(logits))
    print("KERNEL_OK")
</pallas_src>

<mosaic_0001>
module attributes {stable_mosaic.version = 11 : i64} {
  func.func @_captioner_kernel(%arg0: memref<32x64xf32, #tpu.memory_space<vmem>>, %arg1: memref<64x64xf32, #tpu.memory_space<vmem>>, %arg2: memref<1x64xf32, #tpu.memory_space<vmem>>, %arg3: memref<64x32xf32, #tpu.memory_space<vmem>>, %arg4: memref<1x32xf32, #tpu.memory_space<vmem>>, %arg5: memref<16x1xi32, #tpu.memory_space<vmem>>, %arg6: memref<64x32xf32, #tpu.memory_space<vmem>>, %arg7: memref<16x32xf32, #tpu.memory_space<vmem>>, %arg8: memref<2x32x96xf32, #tpu.memory_space<vmem>>, %arg9: memref<2x1x96xf32, #tpu.memory_space<vmem>>, %arg10: memref<2x32x32xf32, #tpu.memory_space<vmem>>, %arg11: memref<2x1x32xf32, #tpu.memory_space<vmem>>, %arg12: memref<2x32x32xf32, #tpu.memory_space<vmem>>, %arg13: memref<2x1x32xf32, #tpu.memory_space<vmem>>, %arg14: memref<2x32x64xf32, #tpu.memory_space<vmem>>, %arg15: memref<2x1x64xf32, #tpu.memory_space<vmem>>, %arg16: memref<2x32x32xf32, #tpu.memory_space<vmem>>, %arg17: memref<2x1x32xf32, #tpu.memory_space<vmem>>, %arg18: memref<2x32x32xf32, #tpu.memory_space<vmem>>, %arg19: memref<2x1x32xf32, #tpu.memory_space<vmem>>, %arg20: memref<2x32x32xf32, #tpu.memory_space<vmem>>, %arg21: memref<2x1x32xf32, #tpu.memory_space<vmem>>, %arg22: memref<2x3x32xf32, #tpu.memory_space<vmem>>, %arg23: memref<2x3x32xf32, #tpu.memory_space<vmem>>, %arg24: memref<1x32xf32, #tpu.memory_space<vmem>>, %arg25: memref<1x32xf32, #tpu.memory_space<vmem>>, %arg26: memref<32x128xf32, #tpu.memory_space<vmem>>, %arg27: memref<1x128xf32, #tpu.memory_space<vmem>>, %arg28: memref<16x128xf32, #tpu.memory_space<vmem>>) attributes {dimension_semantics = [], scalar_prefetch = 0 : i64, scratch_operands = 0 : i64, tpu.core_type = #tpu.core_type<tc>} {
    %c0 = arith.constant 0 : index
    %c0_0 = arith.constant 0 : index
    %0 = vector.load %arg0[%c0, %c0_0] : memref<32x64xf32, #tpu.memory_space<vmem>>, vector<32x64xf32>
    %c0_1 = arith.constant 0 : index
    %c0_2 = arith.constant 0 : index
    %1 = vector.load %arg1[%c0_1, %c0_2] : memref<64x64xf32, #tpu.memory_space<vmem>>, vector<64x64xf32>
    %cst = arith.constant dense<0.000000e+00> : vector<32x64xf32>
    %2 = tpu.matmul %0, %1, %cst {dimension_numbers = #tpu.dot_dimension_numbers<[1], [0], [0], [1], [0, 0, 1, 1], [], []>} : vector<32x64xf32>, vector<64x64xf32>, vector<32x64xf32> -> vector<32x64xf32>
    %c0_3 = arith.constant 0 : index
    %c0_4 = arith.constant 0 : index
    %3 = vector.load %arg2[%c0_3, %c0_4] : memref<1x64xf32, #tpu.memory_space<vmem>>, vector<1x64xf32>
    %4 = vector.broadcast %3 : vector<1x64xf32> to vector<32x64xf32>
    %5 = arith.addf %2, %4 : vector<32x64xf32>
    %c0_5 = arith.constant 0 : index
    %c0_6 = arith.constant 0 : index
    %6 = vector.load %arg3[%c0_5, %c0_6] : memref<64x32xf32, #tpu.memory_space<vmem>>, vector<64x32xf32>
    %cst_7 = arith.constant dense<0.000000e+00> : vector<32x32xf32>
    %7 = tpu.matmul %5, %6, %cst_7 {dimension_numbers = #tpu.dot_dimension_numbers<[1], [0], [0], [1], [0, 0, 1, 1], [], []>} : vector<32x64xf32>, vector<64x32xf32>, vector<32x32xf32> -> vector<32x32xf32>
    %c0_8 = arith.constant 0 : index
    %c0_9 = arith.constant 0 : index
    %8 = vector.load %arg4[%c0_8, %c0_9] : memref<1x32xf32, #tpu.memory_space<vmem>>, vector<1x32xf32>
    %9 = vector.broadcast %8 : vector<1x32xf32> to vector<32x32xf32>
    %10 = arith.addf %7, %9 : vector<32x32xf32>
    %c0_10 = arith.constant 0 : index
    %c0_11 = arith.constant 0 : index
    %11 = vector.load %arg5[%c0_10, %c0_11] : memref<16x1xi32, #tpu.memory_space<vmem>>, vector<16x1xi32>
    %12 = tpu.iota {dimensions = array<i32: 1>} : vector<16x64xi32>
    %13 = vector.broadcast %11 : vector<16x1xi32> to vector<16x64xi32>
    %14 = arith.cmpi eq, %12, %13 : vector<16x64xi32>
    %15 = arith.extui %14 : vector<16x64xi1> to vector<16x64xi32>
    %16 = arith.sitofp %15 : vector<16x64xi32> to vector<16x64xf32>
    %c0_12 = arith.constant 0 : index
    %c0_13 = arith.constant 0 : index
    %17 = vector.load %arg6[%c0_12, %c0_13] : memref<64x32xf32, #tpu.memory_space<vmem>>, vector<64x32xf32>
    %cst_14 = arith.constant dense<0.000000e+00> : vector<16x32xf32>
    %18 = tpu.matmul %16, %17, %cst_14 {dimension_numbers = #tpu.dot_dimension_numbers<[1], [0], [0], [1], [0, 0, 1, 1], [], []>} : vector<16x64xf32>, vector<64x32xf32>, vector<16x32xf32> -> vector<16x32xf32>
    %c0_15 = arith.constant 0 : index
    %c0_16 = arith.constant 0 : index
    %19 = vector.load %arg7[%c0_15, %c0_16] : memref<16x32xf32, #tpu.memory_space<vmem>>, vector<16x32xf32>
    %20 = arith.addf %18, %19 : vector<16x32xf32>
    %21 = tpu.iota {dimensions = array<i32: 0>} : vector<8x8xi32>
    %22 = tpu.iota {dimensions = array<i32: 1>} : vector<8x8xi32>
    %23 = arith.cmpi sgt, %22, %21 : vector<8x8xi32>
    %cst_17 = arith.constant -1.000000e+09 : f32
    %cst_18 = arith.constant 0.000000e+00 : f32
    %24 = vector.broadcast %cst_17 : f32 to vector<8x8xf32>
    %25 = vector.broadcast %cst_18 : f32 to vector<8x8xf32>
    %26 = arith.select %23, %24, %25 : vector<8x8xi1>, vector<8x8xf32>
    %c0_19 = arith.constant 0 : index
    %c0_20 = arith.constant 0 : index
    %c0_21 = arith.constant 0 : index
    %27 = vector.load %arg22[%c0_19, %c0_20, %c0_21] : memref<2x3x32xf32, #tpu.memory_space<vmem>>, vector<1x3x32xf32>
    %28 = vector.shape_cast %27 : vector<1x3x32xf32> to vector<3x32xf32>
    %c0_22 = arith.constant 0 : index
    %c0_23 = arith.constant 0 : index
    %c0_24 = arith.constant 0 : index
    %29 = vector.load %arg23[%c0_22, %c0_23, %c0_24] : memref<2x3x32xf32, #tpu.memory_space<vmem>>, vector<1x3x32xf32>
    %30 = vector.shape_cast %29 : vector<1x3x32xf32> to vector<3x32xf32>
    %c0_25 = arith.constant 0 : index
    %c0_26 = arith.constant 0 : index
    %c0_27 = arith.constant 0 : index
    %31 = vector.load %arg8[%c0_25, %c0_26, %c0_27] : memref<2x32x96xf32, #tpu.memory_space<vmem>>, vector<1x32x96xf32>
    %32 = vector.shape_cast %31 : vector<1x32x96xf32> to vector<32x96xf32>
    %cst_28 = arith.constant dense<0.000000e+00> : vector<16x96xf32>
    %33 = tpu.matmul %20, %32, %cst_28 {dimension_numbers = #tpu.dot_dimension_numbers<[1], [0], [0], [1], [0, 0, 1, 1], [], []>} : vector<16x32xf32>, vector<32x96xf32>, vector<16x96xf32> -> vector<16x96xf32>
    %c0_29 = arith.constant 0 : index
    %c0_30 = arith.constant 0 : index
    %c0_31 = arith.constant 0 : index
    %34 = vector.load %arg9[%c0_29, %c0_30, %c0_31] : memref<2x1x96xf32, #tpu.memory_space<vmem>>, vector<1x1x96xf32>
    %35 = vector.shape_cast %34 : vector<1x1x96xf32> to vector<1x96xf32>
    %36 = vector.broadcast %35 : vector<1x96xf32> to vector<16x96xf32>
    %37 = arith.addf %33, %36 : vector<16x96xf32>
    %38 = vector.extract_strided_slice %37 {offsets = [0, 0], sizes = [16, 32], strides = [1, 1]} : vector<16x96xf32> to vector<16x32xf32>
    %39 = vector.extract_strided_slice %37 {offsets = [0, 32], sizes = [16, 64], strides = [1, 1]} : vector<16x96xf32> to vector<16x64xf32>
    %40 = vector.extract_strided_slice %38 {offsets = [0, 0], sizes = [8, 32], strides = [1, 1]} : vector<16x32xf32> to vector<8x32xf32>
    %41 = vector.extract_strided_slice %39 {offsets = [0, 0], sizes = [8, 64], strides = [1, 1]} : vector<16x64xf32> to vector<8x64xf32>
    %42 = vector.extract_strided_slice %40 {offsets = [0, 0], sizes = [8, 8], strides = [1, 1]} : vector<8x32xf32> to vector<8x8xf32>
    %43 = vector.extract_strided_slice %41 {offsets = [0, 0], sizes = [8, 8], strides = [1, 1]} : vector<8x64xf32> to vector<8x8xf32>
    %44 = vector.extract_strided_slice %41 {offsets = [0, 32], sizes = [8, 8], strides = [1, 1]} : vector<8x64xf32> to vector<8x8xf32>
    %cst_32 = arith.constant dense<0.000000e+00> : vector<8x8xf32>
    %45 = tpu.matmul %42, %43, %cst_32 {dimension_numbers = #tpu.dot_dimension_numbers<[1], [1], [0], [0], [0, 0, 1, 0], [], []>} : vector<8x8xf32>, vector<8x8xf32>, vector<8x8xf32> -> vector<8x8xf32>
    %cst_33 = arith.constant 0.353553385 : f32
    %46 = vector.broadcast %cst_33 : f32 to vector<8x8xf32>
    %47 = arith.mulf %45, %46 : vector<8x8xf32>
    %48 = arith.addf %47, %26 : vector<8x8xf32>
    %cst_34 = arith.constant dense<0xFF800000> : vector<8xf32>
    %49 = vector.multi_reduction <maximumf>, %48, %cst_34 [1] : vector<8x8xf32> to vector<8xf32>
    %50 = vector.shape_cast %49 : vector<8xf32> to vector<8x1xf32>
    %51 = vector.broadcast %50 : vector<8x1xf32> to vector<8x8xf32>
    %52 = arith.subf %48, %51 : vector<8x8xf32>
    %53 = math.exp %52 : vector<8x8xf32>
    %cst_35 = arith.constant dense<0.000000e+00> : vector<8xf32>
    %54 = vector.multi_reduction <add>, %53, %cst_35 [1] : vector<8x8xf32> to vector<8xf32>
    %55 = vector.shape_cast %54 : vector<8xf32> to vector<8x1xf32>
    %56 = tpu.reciprocal %55 {approx = true} : vector<8x1xf32> -> vector<8x1xf32>
    %57 = vector.broadcast %56 : vector<8x1xf32> to vector<8x8xf32>
    %58 = arith.mulf %53, %57 : vector<8x8xf32>
    %cst_36 = arith.constant dense<0.000000e+00> : vector<8x8xf32>
    %59 = tpu.matmul %58, %44, %cst_36 {dimension_numbers = #tpu.dot_dimension_numbers<[1], [0], [0], [1], [0, 0, 1, 1], [], []>} : vector<8x8xf32>, vector<8x8xf32>, vector<8x8xf32> -> vector<8x8xf32>
    %60 = vector.extract_strided_slice %40 {offsets = [0, 8], sizes = [8, 8], strides = [1, 1]} : vector<8x32xf32> to vector<8x8xf32>
    %61 = vector.extract_strided_slice %41 {offsets = [0, 8], sizes = [8, 8], strides = [1, 1]} : vector<8x64xf32> to vector<8x8xf32>
    %62 = vector.extract_strided_slice %41 {offsets = [0, 40], sizes = [8, 8], strides = [1, 1]} : vector<8x64xf32> to vector<8x8xf32>
    %cst_37 = arith.constant dense<0.000000e+00> : vector<8x8xf32>
    %63 = tpu.matmul %60, %61, %cst_37 {dimension_numbers = #tpu.dot_dimension_numbers<[1], [1], [0], [0], [0, 0, 1, 0], [], []>} : vector<8x8xf32>, vector<8x8xf32>, vector<8x8xf32> -> vector<8x8xf32>
    %cst_38 = arith.constant 0.353553385 : f32
    %64 = vector.broadcast %cst_38 : f32 to vector<8x8xf32>
    %65 = arith.mulf %63, %64 : vector<8x8xf32>
    %66 = arith.addf %65, %26 : vector<8x8xf32>
    %cst_39 = arith.constant dense<0xFF800000> : vector<8xf32>
    %67 = vector.multi_reduction <maximumf>, %66, %cst_39 [1] : vector<8x8xf32> to vector<8xf32>
    %68 = vector.shape_cast %67 : vector<8xf32> to vector<8x1xf32>
    %69 = vector.broadcast %68 : vector<8x1xf32> to vector<8x8xf32>
    %70 = arith.subf %66, %69 : vector<8x8xf32>
    %71 = math.exp %70 : vector<8x8xf32>
    %cst_40 = arith.constant dense<0.000000e+00> : vector<8xf32>
    %72 = vector.multi_reduction <add>, %71, %cst_40 [1] : vector<8x8xf32> to vector<8xf32>
    %73 = vector.shape_cast %72 : vector<8xf32> to vector<8x1xf32>
    %74 = tpu.reciprocal %73 {approx = true} : vector<8x1xf32> -> vector<8x1xf32>
    %75 = vector.broadcast %74 : vector<8x1xf32> to vector<8x8xf32>
    %76 = arith.mulf %71, %75 : vector<8x8xf32>
    %cst_41 = arith.constant dense<0.000000e+00> : vector<8x8xf32>
    %77 = tpu.matmul %76, %62, %cst_41 {dimension_numbers = #tpu.dot_dimension_numbers<[1], [0], [0], [1], [0, 0, 1, 1], [], []>} : vector<8x8xf32>, vector<8x8xf32>, vector<8x8xf32> -> vector<8x8xf32>
    %78 = vector.extract_strided_slice %40 {offsets = [0, 16], sizes = [8, 8], strides = [1, 1]} : vector<8x32xf32> to vector<8x8xf32>
    %79 = vector.extract_strided_slice %41 {offsets = [0, 16], sizes = [8, 8], strides = [1, 1]} : vector<8x64xf32> to vector<8x8xf32>
    %80 = vector.extract_strided_slice %41 {offsets = [0, 48], sizes = [8, 8], strides = [1, 1]} : vector<8x64xf32> to vector<8x8xf32>
    %cst_42 = arith.constant dense<0.000000e+00> : vector<8x8xf32>
    %81 = tpu.matmul %78, %79, %cst_42 {dimension_numbers = #tpu.dot_dimension_numbers<[1], [1], [0], [0], [0, 0, 1, 0], [], []>} : vector<8x8xf32>, vector<8x8xf32>, vector<8x8xf32> -> vector<8x8xf32>
    %cst_43 = arith.constant 0.353553385 : f32
    %82 = vector.broadcast %cst_43 : f32 to vector<8x8xf32>
    %83 = arith.mulf %81, %82 : vector<8x8xf32>
    %84 = arith.addf %83, %26 : vector<8x8xf32>
    %cst_44 = arith.constant dense<0xFF800000> : vector<8xf32>
    %85 = vector.multi_reduction <maximumf>, %84, %cst_44 [1] : vector<8x8xf32> to vector<8xf32>
    %86 = vector.shape_cast %85 : vector<8xf32> to vector<8x1xf32>
    %87 = vector.broadcast %86 : vector<8x1xf32> to vector<8x8xf32>
    %88 = arith.subf %84, %87 : vector<8x8xf32>
    %89 = math.exp %88 : vector<8x8xf32>
    %cst_45 = arith.constant dense<0.000000e+00> : vector<8xf32>
    %90 = vector.multi_reduction <add>, %89, %cst_45 [1] : vector<8x8xf32> to vector<8xf32>
    %91 = vector.shape_cast %90 : vector<8xf32> to vector<8x1xf32>
    %92 = tpu.reciprocal %91 {approx = true} : vector<8x1xf32> -> vector<8x1xf32>
    %93 = vector.broadcast %92 : vector<8x1xf32> to vector<8x8xf32>
    %94 = arith.mulf %89, %93 : vector<8x8xf32>
    %cst_46 = arith.constant dense<0.000000e+00> : vector<8x8xf32>
    %95 = tpu.matmul %94, %80, %cst_46 {dimension_numbers = #tpu.dot_dimension_numbers<[1], [0], [0], [1], [0, 0, 1, 1], [], []>} : vector<8x8xf32>, vector<8x8xf32>, vector<8x8xf32> -> vector<8x8xf32>
    %96 = vector.extract_strided_slice %40 {offsets = [0, 24], sizes = [8, 8], strides = [1, 1]} : vector<8x32xf32> to vector<8x8xf32>
    %97 = vector.extract_strided_slice %41 {offsets = [0, 24], sizes = [8, 8], strides = [1, 1]} : vector<8x64xf32> to vector<8x8xf32>
    %98 = vector.extract_strided_slice %41 {offsets = [0, 56], sizes = [8, 8], strides = [1, 1]} : vector<8x64xf32> to vector<8x8xf32>
    %cst_47 = arith.constant dense<0.000000e+00> : vector<8x8xf32>
    %99 = tpu.matmul %96, %97, %cst_47 {dimension_numbers = #tpu.dot_dimension_numbers<[1], [1], [0], [0], [0, 0, 1, 0], [], []>} : vector<8x8xf32>, vector<8x8xf32>, vector<8x8xf32> -> vector<8x8xf32>
    %cst_48 = arith.constant 0.353553385 : f32
    %100 = vector.broadcast %cst_48 : f32 to vector<8x8xf32>
    %101 = arith.mulf %99, %100 : vector<8x8xf32>
    %102 = arith.addf %101, %26 : vector<8x8xf32>
    %cst_49 = arith.constant dense<0xFF800000> : vector<8xf32>
    %103 = vector.multi_reduction <maximumf>, %102, %cst_49 [1] : vector<8x8xf32> to vector<8xf32>
    %104 = vector.shape_cast %103 : vector<8xf32> to vector<8x1xf32>
    %105 = vector.broadcast %104 : vector<8x1xf32> to vector<8x8xf32>
    %106 = arith.subf %102, %105 : vector<8x8xf32>
    %107 = math.exp %106 : vector<8x8xf32>
    %cst_50 = arith.constant dense<0.000000e+00> : vector<8xf32>
    %108 = vector.multi_reduction <add>, %107, %cst_50 [1] : vector<8x8xf32> to vector<8xf32>
    %109 = vector.shape_cast %108 : vector<8xf32> to vector<8x1xf32>
    %110 = tpu.reciprocal %109 {approx = true} : vector<8x1xf32> -> vector<8x1xf32>
    %111 = vector.broadcast %110 : vector<8x1xf32> to vector<8x8xf32>
    %112 = arith.mulf %107, %111 : vector<8x8xf32>
    %cst_51 = arith.constant dense<0.000000e+00> : vector<8x8xf32>
    %113 = tpu.matmul %112, %98, %cst_51 {dimension_numbers = #tpu.dot_dimension_numbers<[1], [0], [0], [1], [0, 0, 1, 1], [], []>} : vector<8x8xf32>, vector<8x8xf32>, vector<8x8xf32> -> vector<8x8xf32>
    %114 = tpu.concatenate %59, %77, %95, %113 in 1 : vector<8x8xf32>, vector<8x8xf32>, vector<8x8xf32>, vector<8x8xf32> -> vector<8x32xf32>
    %115 = vector.extract_strided_slice %38 {offsets = [8, 0], sizes = [8, 32], strides = [1, 1]} : vector<16x32xf32> to vector<8x32xf32>
    %116 = vector.extract_strided_slice %39 {offsets = [8, 0], sizes = [8, 64], strides = [1, 1]} : vector<16x64xf32> to vector<8x64xf32>
    %117 = vector.extract_strided_slice %115 {offsets = [0, 0], sizes = [8, 8], strides = [1, 1]} : vector<8x32xf32> to vector<8x8xf32>
    %118 = vector.extract_strided_slice %116 {offsets = [0, 0], sizes = [8, 8], strides = [1, 1]} : vector<8x64xf32> to vector<8x8xf32>
    %119 = vector.extract_strided_slice %116 {offsets = [0, 32], sizes = [8, 8], strides = [1, 1]} : vector<8x64xf32> to vector<8x8xf32>
    %cst_52 = arith.constant dense<0.000000e+00> : vector<8x8xf32>
    %120 = tpu.matmul %117, %118, %cst_52 {dimension_numbers = #tpu.dot_dimension_numbers<[1], [1], [0], [0], [0, 0, 1, 0], [], []>} : vector<8x8xf32>, vector<8x8xf32>, vector<8x8xf32> -> vector<8x8xf32>
    %cst_53 = arith.constant 0.353553385 : f32
    %121 = vector.broadcast %cst_53 : f32 to vector<8x8xf32>
    %122 = arith.mulf %120, %121 : vector<8x8xf32>
    %123 = arith.addf %122, %26 : vector<8x8xf32>
    %cst_54 = arith.constant dense<0xFF800000> : vector<8xf32>
    %124 = vector.multi_reduction <maximumf>, %123, %cst_54 [1] : vector<8x8xf32> to vector<8xf32>
    %125 = vector.shape_cast %124 : vector<8xf32> to vector<8x1xf32>
    %126 = vector.broadcast %125 : vector<8x1xf32> to vector<8x8xf32>
    %127 = arith.subf %123, %126 : vector<8x8xf32>
    %128 = math.exp %127 : vector<8x8xf32>
    %cst_55 = arith.constant dense<0.000000e+00> : vector<8xf32>
    %129 = vector.multi_reduction <add>, %128, %cst_55 [1] : vector<8x8xf32> to vector<8xf32>
    %130 = vector.shape_cast %129 : vector<8xf32> to vector<8x1xf32>
    %131 = tpu.reciprocal %130 {approx = true} : vector<8x1xf32> -> vector<8x1xf32>
    %132 = vector.broadcast %131 : vector<8x1xf32> to vector<8x8xf32>
    %133 = arith.mulf %128, %132 : vector<8x8xf32>
    %cst_56 = arith.constant dense<0.000000e+00> : vector<8x8xf32>
    %134 = tpu.matmul %133, %119, %cst_56 {dimension_numbers = #tpu.dot_dimension_numbers<[1], [0], [0], [1], [0, 0, 1, 1], [], []>} : vector<8x8xf32>, vector<8x8xf32>, vector<8x8xf32> -> vector<8x8xf32>
    %135 = vector.extract_strided_slice %115 {offsets = [0, 8], sizes = [8, 8], strides = [1, 1]} : vector<8x32xf32> to vector<8x8xf32>
    %136 = vector.extract_strided_slice %116 {offsets = [0, 8], sizes = [8, 8], strides = [1, 1]} : vector<8x64xf32> to vector<8x8xf32>
    %137 = vector.extract_strided_slice %116 {offsets = [0, 40], sizes = [8, 8], strides = [1, 1]} : vector<8x64xf32> to vector<8x8xf32>
    %cst_57 = arith.constant dense<0.000000e+00> : vector<8x8xf32>
    %138 = tpu.matmul %135, %136, %cst_57 {dimension_numbers = #tpu.dot_dimension_numbers<[1], [1], [0], [0], [0, 0, 1, 0], [], []>} : vector<8x8xf32>, vector<8x8xf32>, vector<8x8xf32> -> vector<8x8xf32>
    %cst_58 = arith.constant 0.353553385 : f32
    %139 = vector.broadcast %cst_58 : f32 to vector<8x8xf32>
    %140 = arith.mulf %138, %139 : vector<8x8xf32>
    %141 = arith.addf %140, %26 : vector<8x8xf32>
    %cst_59 = arith.constant dense<0xFF800000> : vector<8xf32>
    %142 = vector.multi_reduction <maximumf>, %141, %cst_59 [1] : vector<8x8xf32> to vector<8xf32>
    %143 = vector.shape_cast %142 : vector<8xf32> to vector<8x1xf32>
    %144 = vector.broadcast %143 : vector<8x1xf32> to vector<8x8xf32>
    %145 = arith.subf %141, %144 : vector<8x8xf32>
    %146 = math.exp %145 : vector<8x8xf32>
    %cst_60 = arith.constant dense<0.000000e+00> : vector<8xf32>
    %147 = vector.multi_reduction <add>, %146, %cst_60 [1] : vector<8x8xf32> to vector<8xf32>
    %148 = vector.shape_cast %147 : vector<8xf32> to vector<8x1xf32>
    %149 = tpu.reciprocal %148 {approx = true} : vector<8x1xf32> -> vector<8x1xf32>
    %150 = vector.broadcast %149 : vector<8x1xf32> to vector<8x8xf32>
    %151 = arith.mulf %146, %150 : vector<8x8xf32>
    %cst_61 = arith.constant dense<0.000000e+00> : vector<8x8xf32>
    %152 = tpu.matmul %151, %137, %cst_61 {dimension_numbers = #tpu.dot_dimension_numbers<[1], [0], [0], [1], [0, 0, 1, 1], [], []>} : vector<8x8xf32>, vector<8x8xf32>, vector<8x8xf32> -> vector<8x8xf32>
    %153 = vector.extract_strided_slice %115 {offsets = [0, 16], sizes = [8, 8], strides = [1, 1]} : vector<8x32xf32> to vector<8x8xf32>
    %154 = vector.extract_strided_slice %116 {offsets = [0, 16], sizes = [8, 8], strides = [1, 1]} : vector<8x64xf32> to vector<8x8xf32>
    %155 = vector.extract_strided_slice %116 {offsets = [0, 48], sizes = [8, 8], strides = [1, 1]} : vector<8x64xf32> to vector<8x8xf32>
    %cst_62 = arith.constant dense<0.000000e+00> : vector<8x8xf32>
    %156 = tpu.matmul %153, %154, %cst_62 {dimension_numbers = #tpu.dot_dimension_numbers<[1], [1], [0], [0], [0, 0, 1, 0], [], []>} : vector<8x8xf32>, vector<8x8xf32>, vector<8x8xf32> -> vector<8x8xf32>
    %cst_63 = arith.constant 0.353553385 : f32
    %157 = vector.broadcast %cst_63 : f32 to vector<8x8xf32>
    %158 = arith.mulf %156, %157 : vector<8x8xf32>
    %159 = arith.addf %158, %26 : vector<8x8xf32>
    %cst_64 = arith.constant dense<0xFF800000> : vector<8xf32>
    %160 = vector.multi_reduction <maximumf>, %159, %cst_64 [1] : vector<8x8xf32> to vector<8xf32>
    %161 = vector.shape_cast %160 : vector<8xf32> to vector<8x1xf32>
    %162 = vector.broadcast %161 : vector<8x1xf32> to vector<8x8xf32>
    %163 = arith.subf %159, %162 : vector<8x8xf32>
    %164 = math.exp %163 : vector<8x8xf32>
    %cst_65 = arith.constant dense<0.000000e+00> : vector<8xf32>
    %165 = vector.multi_reduction <add>, %164, %cst_65 [1] : vector<8x8xf32> to vector<8xf32>
    %166 = vector.shape_cast %165 : vector<8xf32> to vector<8x1xf32>
    %167 = tpu.reciprocal %166 {approx = true} : vector<8x1xf32> -> vector<8x1xf32>
    %168 = vector.broadcast %167 : vector<8x1xf32> to vector<8x8xf32>
    %169 = arith.mulf %164, %168 : vector<8x8xf32>
    %cst_66 = arith.constant dense<0.000000e+00> : vector<8x8xf32>
    %170 = tpu.matmul %169, %155, %cst_66 {dimension_numbers = #tpu.dot_dimension_numbers<[1], [0], [0], [1], [0, 0, 1, 1], [], []>} : vector<8x8xf32>, vector<8x8xf32>, vector<8x8xf32> -> vector<8x8xf32>
    %171 = vector.extract_strided_slice %115 {offsets = [0, 24], sizes = [8, 8], strides = [1, 1]} : vector<8x32xf32> to vector<8x8xf32>
    %172 = vector.extract_strided_slice %116 {offsets = [0, 24], sizes = [8, 8], strides = [1, 1]} : vector<8x64xf32> to vector<8x8xf32>
    %173 = vector.extract_strided_slice %116 {offsets = [0, 56], sizes = [8, 8], strides = [1, 1]} : vector<8x64xf32> to vector<8x8xf32>
    %cst_67 = arith.constant dense<0.000000e+00> : vector<8x8xf32>
    %174 = tpu.matmul %171, %172, %cst_67 {dimension_numbers = #tpu.dot_dimension_numbers<[1], [1], [0], [0], [0, 0, 1, 0], [], []>} : vector<8x8xf32>, vector<8x8xf32>, vector<8x8xf32> -> vector<8x8xf32>
    %cst_68 = arith.constant 0.353553385 : f32
    %175 = vector.broadcast %cst_68 : f32 to vector<8x8xf32>
    %176 = arith.mulf %174, %175 : vector<8x8xf32>
    %177 = arith.addf %176, %26 : vector<8x8xf32>
    %cst_69 = arith.constant dense<0xFF800000> : vector<8xf32>
    %178 = vector.multi_reduction <maximumf>, %177, %cst_69 [1] : vector<8x8xf32> to vector<8xf32>
    %179 = vector.shape_cast %178 : vector<8xf32> to vector<8x1xf32>
    %180 = vector.broadcast %179 : vector<8x1xf32> to vector<8x8xf32>
    %181 = arith.subf %177, %180 : vector<8x8xf32>
    %182 = math.exp %181 : vector<8x8xf32>
    %cst_70 = arith.constant dense<0.000000e+00> : vector<8xf32>
    %183 = vector.multi_reduction <add>, %182, %cst_70 [1] : vector<8x8xf32> to vector<8xf32>
    %184 = vector.shape_cast %183 : vector<8xf32> to vector<8x1xf32>
    %185 = tpu.reciprocal %184 {approx = true} : vector<8x1xf32> -> vector<8x1xf32>
    %186 = vector.broadcast %185 : vector<8x1xf32> to vector<8x8xf32>
    %187 = arith.mulf %182, %186 : vector<8x8xf32>
    %cst_71 = arith.constant dense<0.000000e+00> : vector<8x8xf32>
    %188 = tpu.matmul %187, %173, %cst_71 {dimension_numbers = #tpu.dot_dimension_numbers<[1], [0], [0], [1], [0, 0, 1, 1], [], []>} : vector<8x8xf32>, vector<8x8xf32>, vector<8x8xf32> -> vector<8x8xf32>
    %189 = tpu.concatenate %134, %152, %170, %188 in 1 : vector<8x8xf32>, vector<8x8xf32>, vector<8x8xf32>, vector<8x8xf32> -> vector<8x32xf32>
    %190 = tpu.concatenate %114, %189 in 0 : vector<8x32xf32>, vector<8x32xf32> -> vector<16x32xf32>
    %c0_72 = arith.constant 0 : index
    %c0_73 = arith.constant 0 : index
    %c0_74 = arith.constant 0 : index
    %191 = vector.load %arg10[%c0_72, %c0_73, %c0_74] : memref<2x32x32xf32, #tpu.memory_space<vmem>>, vector<1x32x32xf32>
    %192 = vector.shape_cast %191 : vector<1x32x32xf32> to vector<32x32xf32>
    %cst_75 = arith.constant dense<0.000000e+00> : vector<16x32xf32>
    %193 = tpu.matmul %190, %192, %cst_75 {dimension_numbers = #tpu.dot_dimension_numbers<[1], [0], [0], [1], [0, 0, 1, 1], [], []>} : vector<16x32xf32>, vector<32x32xf32>, vector<16x32xf32> -> vector<16x32xf32>
    %c0_76 = arith.constant 0 : index
    %c0_77 = arith.constant 0 : index
    %c0_78 = arith.constant 0 : index
    %194 = vector.load %arg11[%c0_76, %c0_77, %c0_78] : memref<2x1x32xf32, #tpu.memory_space<vmem>>, vector<1x1x32xf32>
    %195 = vector.shape_cast %194 : vector<1x1x32xf32> to vector<1x32xf32>
    %196 = vector.broadcast %195 : vector<1x32xf32> to vector<16x32xf32>
    %197 = arith.addf %193, %196 : vector<16x32xf32>
    %198 = arith.addf %20, %197 : vector<16x32xf32>
    %199 = vector.extract_strided_slice %28 {offsets = [0, 0], sizes = [1, 32], strides = [1, 1]} : vector<3x32xf32> to vector<1x32xf32>
    %200 = vector.extract_strided_slice %30 {offsets = [0, 0], sizes = [1, 32], strides = [1, 1]} : vector<3x32xf32> to vector<1x32xf32>
    %cst_79 = arith.constant dense<0.000000e+00> : vector<16xf32>
    %201 = vector.multi_reduction <add>, %198, %cst_79 [1] : vector<16x32xf32> to vector<16xf32>
    %202 = vector.shape_cast %201 : vector<16xf32> to vector<16x1xf32>
    %cst_80 = arith.constant 3.200000e+01 : f32
    %203 = vector.broadcast %cst_80 : f32 to vector<16x1xf32>
    %204 = arith.divf %202, %203 : vector<16x1xf32>
    %205 = vector.broadcast %204 : vector<16x1xf32> to vector<16x32xf32>
    %206 = arith.subf %198, %205 : vector<16x32xf32>
    %207 = arith.mulf %206, %206 : vector<16x32xf32>
    %cst_81 = arith.constant dense<0.000000e+00> : vector<16xf32>
    %208 = vector.multi_reduction <add>, %207, %cst_81 [1] : vector<16x32xf32> to vector<16xf32>
    %209 = vector.shape_cast %208 : vector<16xf32> to vector<16x1xf32>
    %cst_82 = arith.constant 3.200000e+01 : f32
    %210 = vector.broadcast %cst_82 : f32 to vector<16x1xf32>
    %211 = arith.divf %209, %210 : vector<16x1xf32>
    %212 = vector.broadcast %204 : vector<16x1xf32> to vector<16x32xf32>
    %213 = arith.subf %198, %212 : vector<16x32xf32>
    %cst_83 = arith.constant 9.99999974E-6 : f32
    %214 = vector.broadcast %cst_83 : f32 to vector<16x1xf32>
    %215 = arith.addf %211, %214 : vector<16x1xf32>
    %216 = math.rsqrt %215 : vector<16x1xf32>
    %217 = vector.broadcast %216 : vector<16x1xf32> to vector<16x32xf32>
    %218 = arith.mulf %213, %217 : vector<16x32xf32>
    %219 = vector.broadcast %199 : vector<1x32xf32> to vector<16x32xf32>
    %220 = arith.mulf %218, %219 : vector<16x32xf32>
    %221 = vector.broadcast %200 : vector<1x32xf32> to vector<16x32xf32>
    %222 = arith.addf %220, %221 : vector<16x32xf32>
    %c0_84 = arith.constant 0 : index
    %c0_85 = arith.constant 0 : index
    %c0_86 = arith.constant 0 : index
    %223 = vector.load %arg12[%c0_84, %c0_85, %c0_86] : memref<2x32x32xf32, #tpu.memory_space<vmem>>, vector<1x32x32xf32>
    %224 = vector.shape_cast %223 : vector<1x32x32xf32> to vector<32x32xf32>
    %cst_87 = arith.constant dense<0.000000e+00> : vector<16x32xf32>
    %225 = tpu.matmul %222, %224, %cst_87 {dimension_numbers = #tpu.dot_dimension_numbers<[1], [0], [0], [1], [0, 0, 1, 1], [], []>} : vector<16x32xf32>, vector<32x32xf32>, vector<16x32xf32> -> vector<16x32xf32>
    %c0_88 = arith.constant 0 : index
    %c0_89 = arith.constant 0 : index
    %c0_90 = arith.constant 0 : index
    %226 = vector.load %arg13[%c0_88, %c0_89, %c0_90] : memref<2x1x32xf32, #tpu.memory_space<vmem>>, vector<1x1x32xf32>
    %227 = vector.shape_cast %226 : vector<1x1x32xf32> to vector<1x32xf32>
    %228 = vector.broadcast %227 : vector<1x32xf32> to vector<16x32xf32>
    %229 = arith.addf %225, %228 : vector<16x32xf32>
    %c0_91 = arith.constant 0 : index
    %c0_92 = arith.constant 0 : index
    %c0_93 = arith.constant 0 : index
    %230 = vector.load %arg14[%c0_91, %c0_92, %c0_93] : memref<2x32x64xf32, #tpu.memory_space<vmem>>, vector<1x32x64xf32>
    %231 = vector.shape_cast %230 : vector<1x32x64xf32> to vector<32x64xf32>
    %cst_94 = arith.constant dense<0.000000e+00> : vector<32x64xf32>
    %232 = tpu.matmul %10, %231, %cst_94 {dimension_numbers = #tpu.dot_dimension_numbers<[1], [0], [0], [1], [0, 0, 1, 1], [], []>} : vector<32x32xf32>, vector<32x64xf32>, vector<32x64xf32> -> vector<32x64xf32>
    %c0_95 = arith.constant 0 : index
    %c0_96 = arith.constant 0 : index
    %c0_97 = arith.constant 0 : index
    %233 = vector.load %arg15[%c0_95, %c0_96, %c0_97] : memref<2x1x64xf32, #tpu.memory_space<vmem>>, vector<1x1x64xf32>
    %234 = vector.shape_cast %233 : vector<1x1x64xf32> to vector<1x64xf32>
    %235 = vector.broadcast %234 : vector<1x64xf32> to vector<32x64xf32>
    %236 = arith.addf %232, %235 : vector<32x64xf32>
    %237 = vector.extract_strided_slice %229 {offsets = [0, 0], sizes = [8, 32], strides = [1, 1]} : vector<16x32xf32> to vector<8x32xf32>
    %238 = vector.extract_strided_slice %236 {offsets = [0, 0], sizes = [16, 64], strides = [1, 1]} : vector<32x64xf32> to vector<16x64xf32>
    %239 = vector.extract_strided_slice %237 {offsets = [0, 0], sizes = [8, 8], strides = [1, 1]} : vector<8x32xf32> to vector<8x8xf32>
    %240 = vector.extract_strided_slice %238 {offsets = [0, 0], sizes = [16, 8], strides = [1, 1]} : vector<16x64xf32> to vector<16x8xf32>
    %241 = vector.extract_strided_slice %238 {offsets = [0, 32], sizes = [16, 8], strides = [1, 1]} : vector<16x64xf32> to vector<16x8xf32>
    %cst_98 = arith.constant dense<0.000000e+00> : vector<8x16xf32>
    %242 = tpu.matmul %239, %240, %cst_98 {dimension_numbers = #tpu.dot_dimension_numbers<[1], [1], [0], [0], [0, 0, 1, 0], [], []>} : vector<8x8xf32>, vector<16x8xf32>, vector<8x16xf32> -> vector<8x16xf32>
    %cst_99 = arith.constant 0.353553385 : f32
    %243 = vector.broadcast %cst_99 : f32 to vector<8x16xf32>
    %244 = arith.mulf %242, %243 : vector<8x16xf32>
    %cst_100 = arith.constant dense<0xFF800000> : vector<8xf32>
    %245 = vector.multi_reduction <maximumf>, %244, %cst_100 [1] : vector<8x16xf32> to vector<8xf32>
    %246 = vector.shape_cast %245 : vector<8xf32> to vector<8x1xf32>
    %247 = vector.broadcast %246 : vector<8x1xf32> to vector<8x16xf32>
    %248 = arith.subf %244, %247 : vector<8x16xf32>
    %249 = math.exp %248 : vector<8x16xf32>
    %cst_101 = arith.constant dense<0.000000e+00> : vector<8xf32>
    %250 = vector.multi_reduction <add>, %249, %cst_101 [1] : vector<8x16xf32> to vector<8xf32>
    %251 = vector.shape_cast %250 : vector<8xf32> to vector<8x1xf32>
    %252 = tpu.reciprocal %251 {approx = true} : vector<8x1xf32> -> vector<8x1xf32>
    %253 = vector.broadcast %252 : vector<8x1xf32> to vector<8x16xf32>
    %254 = arith.mulf %249, %253 : vector<8x16xf32>
    %cst_102 = arith.constant dense<0.000000e+00> : vector<8x8xf32>
    %255 = tpu.matmul %254, %241, %cst_102 {dimension_numbers = #tpu.dot_dimension_numbers<[1], [0], [0], [1], [0, 0, 1, 1], [], []>} : vector<8x16xf32>, vector<16x8xf32>, vector<8x8xf32> -> vector<8x8xf32>
    %256 = vector.extract_strided_slice %237 {offsets = [0, 8], sizes = [8, 8], strides = [1, 1]} : vector<8x32xf32> to vector<8x8xf32>
    %257 = vector.extract_strided_slice %238 {offsets = [0, 8], sizes = [16, 8], strides = [1, 1]} : vector<16x64xf32> to vector<16x8xf32>
    %258 = vector.extract_strided_slice %238 {offsets = [0, 40], sizes = [16, 8], strides = [1, 1]} : vector<16x64xf32> to vector<16x8xf32>
    %cst_103 = arith.constant dense<0.000000e+00> : vector<8x16xf32>
    %259 = tpu.matmul %256, %257, %cst_103 {dimension_numbers = #tpu.dot_dimension_numbers<[1], [1], [0], [0], [0, 0, 1, 0], [], []>} : vector<8x8xf32>, vector<16x8xf32>, vector<8x16xf32> -> vector<8x16xf32>
    %cst_104 = arith.constant 0.353553385 : f32
    %260 = vector.broadcast %cst_104 : f32 to vector<8x16xf32>
    %261 = arith.mulf %259, %260 : vector<8x16xf32>
    %cst_105 = arith.constant dense<0xFF800000> : vector<8xf32>
    %262 = vector.multi_reduction <maximumf>, %261, %cst_105 [1] : vector<8x16xf32> to vector<8xf32>
    %263 = vector.shape_cast %262 : vector<8xf32> to vector<8x1xf32>
    %264 = vector.broadcast %263 : vector<8x1xf32> to vector<8x16xf32>
    %265 = arith.subf %261, %264 : vector<8x16xf32>
    %266 = math.exp %265 : vector<8x16xf32>
    %cst_106 = arith.constant dense<0.000000e+00> : vector<8xf32>
    %267 = vector.multi_reduction <add>, %266, %cst_106 [1] : vector<8x16xf32> to vector<8xf32>
    %268 = vector.shape_cast %267 : vector<8xf32> to vector<8x1xf32>
    %269 = tpu.reciprocal %268 {approx = true} : vector<8x1xf32> -> vector<8x1xf32>
    %270 = vector.broadcast %269 : vector<8x1xf32> to vector<8x16xf32>
    %271 = arith.mulf %266, %270 : vector<8x16xf32>
    %cst_107 = arith.constant dense<0.000000e+00> : vector<8x8xf32>
    %272 = tpu.matmul %271, %258, %cst_107 {dimension_numbers = #tpu.dot_dimension_numbers<[1], [0], [0], [1], [0, 0, 1, 1], [], []>} : vector<8x16xf32>, vector<16x8xf32>, vector<8x8xf32> -> vector<8x8xf32>
    %273 = vector.extract_strided_slice %237 {offsets = [0, 16], sizes = [8, 8], strides = [1, 1]} : vector<8x32xf32> to vector<8x8xf32>
    %274 = vector.extract_strided_slice %238 {offsets = [0, 16], sizes = [16, 8], strides = [1, 1]} : vector<16x64xf32> to vector<16x8xf32>
    %275 = vector.extract_strided_slice %238 {offsets = [0, 48], sizes = [16, 8], strides = [1, 1]} : vector<16x64xf32> to vector<16x8xf32>
    %cst_108 = arith.constant dense<0.000000e+00> : vector<8x16xf32>
    %276 = tpu.matmul %273, %274, %cst_108 {dimension_numbers = #tpu.dot_dimension_numbers<[1], [1], [0], [0], [0, 0, 1, 0], [], []>} : vector<8x8xf32>, vector<16x8xf32>, vector<8x16xf32> -> vector<8x16xf32>
    %cst_109 = arith.constant 0.353553385 : f32
    %277 = vector.broadcast %cst_109 : f32 to vector<8x16xf32>
    %278 = arith.mulf %276, %277 : vector<8x16xf32>
    %cst_110 = arith.constant dense<0xFF800000> : vector<8xf32>
    %279 = vector.multi_reduction <maximumf>, %278, %cst_110 [1] : vector<8x16xf32> to vector<8xf32>
    %280 = vector.shape_cast %279 : vector<8xf32> to vector<8x1xf32>
    %281 = vector.broadcast %280 : vector<8x1xf32> to vector<8x16xf32>
    %282 = arith.subf %278, %281 : vector<8x16xf32>
    %283 = math.exp %282 : vector<8x16xf32>
    %cst_111 = arith.constant dense<0.000000e+00> : vector<8xf32>
    %284 = vector.multi_reduction <add>, %283, %cst_111 [1] : vector<8x16xf32> to vector<8xf32>
    %285 = vector.shape_cast %284 : vector<8xf32> to vector<8x1xf32>
    %286 = tpu.reciprocal %285 {approx = true} : vector<8x1xf32> -> vector<8x1xf32>
    %287 = vector.broadcast %286 : vector<8x1xf32> to vector<8x16xf32>
    %288 = arith.mulf %283, %287 : vector<8x16xf32>
    %cst_112 = arith.constant dense<0.000000e+00> : vector<8x8xf32>
    %289 = tpu.matmul %288, %275, %cst_112 {dimension_numbers = #tpu.dot_dimension_numbers<[1], [0], [0], [1], [0, 0, 1, 1], [], []>} : vector<8x16xf32>, vector<16x8xf32>, vector<8x8xf32> -> vector<8x8xf32>
    %290 = vector.extract_strided_slice %237 {offsets = [0, 24], sizes = [8, 8], strides = [1, 1]} : vector<8x32xf32> to vector<8x8xf32>
    %291 = vector.extract_strided_slice %238 {offsets = [0, 24], sizes = [16, 8], strides = [1, 1]} : vector<16x64xf32> to vector<16x8xf32>
    %292 = vector.extract_strided_slice %238 {offsets = [0, 56], sizes = [16, 8], strides = [1, 1]} : vector<16x64xf32> to vector<16x8xf32>
    %cst_113 = arith.constant dense<0.000000e+00> : vector<8x16xf32>
    %293 = tpu.matmul %290, %291, %cst_113 {dimension_numbers = #tpu.dot_dimension_numbers<[1], [1], [0], [0], [0, 0, 1, 0], [], []>} : vector<8x8xf32>, vector<16x8xf32>, vector<8x16xf32> -> vector<8x16xf32>
    %cst_114 = arith.constant 0.353553385 : f32
    %294 = vector.broadcast %cst_114 : f32 to vector<8x16xf32>
    %295 = arith.mulf %293, %294 : vector<8x16xf32>
    %cst_115 = arith.constant dense<0xFF800000> : vector<8xf32>
    %296 = vector.multi_reduction <maximumf>, %295, %cst_115 [1] : vector<8x16xf32> to vector<8xf32>
    %297 = vector.shape_cast %296 : vector<8xf32> to vector<8x1xf32>
    %298 = vector.broadcast %297 : vector<8x1xf32> to vector<8x16xf32>
    %299 = arith.subf %295, %298 : vector<8x16xf32>
    %300 = math.exp %299 : vector<8x16xf32>
    %cst_116 = arith.constant dense<0.000000e+00> : vector<8xf32>
    %301 = vector.multi_reduction <add>, %300, %cst_116 [1] : vector<8x16xf32> to vector<8xf32>
    %302 = vector.shape_cast %301 : vector<8xf32> to vector<8x1xf32>
    %303 = tpu.reciprocal %302 {approx = true} : vector<8x1xf32> -> vector<8x1xf32>
    %304 = vector.broadcast %303 : vector<8x1xf32> to vector<8x16xf32>
    %305 = arith.mulf %300, %304 : vector<8x16xf32>
    %cst_117 = arith.constant dense<0.000000e+00> : vector<8x8xf32>
    %306 = tpu.matmul %305, %292, %cst_117 {dimension_numbers = #tpu.dot_dimension_numbers<[1], [0], [0], [1], [0, 0, 1, 1], [], []>} : vector<8x16xf32>, vector<16x8xf32>, vector<8x8xf32> -> vector<8x8xf32>
    %307 = tpu.concatenate %255, %272, %289, %306 in 1 : vector<8x8xf32>, vector<8x8xf32>, vector<8x8xf32>, vector<8x8xf32> -> vector<8x32xf32>
    %308 = vector.extract_strided_slice %229 {offsets = [8, 0], sizes = [8, 32], strides = [1, 1]} : vector<16x32xf32> to vector<8x32xf32>
    %309 = vector.extract_strided_slice %236 {offsets = [16, 0], sizes = [16, 64], strides = [1, 1]} : vector<32x64xf32> to vector<16x64xf32>
    %310 = vector.extract_strided_slice %308 {offsets = [0, 0], sizes = [8, 8], strides = [1, 1]} : vector<8x32xf32> to vector<8x8xf32>
    %311 = vector.extract_strided_slice %309 {offsets = [0, 0], sizes = [16, 8], strides = [1, 1]} : vector<16x64xf32> to vector<16x8xf32>
    %312 = vector.extract_strided_slice %309 {offsets = [0, 32], sizes = [16, 8], strides = [1, 1]} : vector<16x64xf32> to vector<16x8xf32>
    %cst_118 = arith.constant dense<0.000000e+00> : vector<8x16xf32>
    %313 = tpu.matmul %310, %311, %cst_118 {dimension_numbers = #tpu.dot_dimension_numbers<[1], [1], [0], [0], [0, 0, 1, 0], [], []>} : vector<8x8xf32>, vector<16x8xf32>, vector<8x16xf32> -> vector<8x16xf32>
    %cst_119 = arith.constant 0.353553385 : f32
    %314 = vector.broadcast %cst_119 : f32 to vector<8x16xf32>
    %315 = arith.mulf %313, %314 : vector<8x16xf32>
    %cst_120 = arith.constant dense<0xFF800000> : vector<8xf32>
    %316 = vector.multi_reduction <maximumf>, %315, %cst_120 [1] : vector<8x16xf32> to vector<8xf32>
    %317 = vector.shape_cast %316 : vector<8xf32> to vector<8x1xf32>
    %318 = vector.broadcast %317 : vector<8x1xf32> to vector<8x16xf32>
    %319 = arith.subf %315, %318 : vector<8x16xf32>
    %320 = math.exp %319 : vector<8x16xf32>
    %cst_121 = arith.constant dense<0.000000e+00> : vector<8xf32>
    %321 = vector.multi_reduction <add>, %320, %cst_121 [1] : vector<8x16xf32> to vector<8xf32>
    %322 = vector.shape_cast %321 : vector<8xf32> to vector<8x1xf32>
    %323 = tpu.reciprocal %322 {approx = true} : vector<8x1xf32> -> vector<8x1xf32>
    %324 = vector.broadcast %323 : vector<8x1xf32> to vector<8x16xf32>
    %325 = arith.mulf %320, %324 : vector<8x16xf32>
    %cst_122 = arith.constant dense<0.000000e+00> : vector<8x8xf32>
    %326 = tpu.matmul %325, %312, %cst_122 {dimension_numbers = #tpu.dot_dimension_numbers<[1], [0], [0], [1], [0, 0, 1, 1], [], []>} : vector<8x16xf32>, vector<16x8xf32>, vector<8x8xf32> -> vector<8x8xf32>
    %327 = vector.extract_strided_slice %308 {offsets = [0, 8], sizes = [8, 8], strides = [1, 1]} : vector<8x32xf32> to vector<8x8xf32>
    %328 = vector.extract_strided_slice %309 {offsets = [0, 8], sizes = [16, 8], strides = [1, 1]} : vector<16x64xf32> to vector<16x8xf32>
    %329 = vector.extract_strided_slice %309 {offsets = [0, 40], sizes = [16, 8], strides = [1, 1]} : vector<16x64xf32> to vector<16x8xf32>
    %cst_123 = arith.constant dense<0.000000e+00> : vector<8x16xf32>
    %330 = tpu.matmul %327, %328, %cst_123 {dimension_numbers = #tpu.dot_dimension_numbers<[1], [1], [0], [0], [0, 0, 1, 0], [], []>} : vector<8x8xf32>, vector<16x8xf32>, vector<8x16xf32> -> vector<8x16xf32>
    %cst_124 = arith.constant 0.353553385 : f32
    %331 = vector.broadcast %cst_124 : f32 to vector<8x16xf32>
    %332 = arith.mulf %330, %331 : vector<8x16xf32>
    %cst_125 = arith.constant dense<0xFF800000> : vector<8xf32>
    %333 = vector.multi_reduction <maximumf>, %332, %cst_125 [1] : vector<8x16xf32> to vector<8xf32>
    %334 = vector.shape_cast %333 : vector<8xf32> to vector<8x1xf32>
    %335 = vector.broadcast %334 : vector<8x1xf32> to vector<8x16xf32>
    %336 = arith.subf %332, %335 : vector<8x16xf32>
    %337 = math.exp %336 : vector<8x16xf32>
    %cst_126 = arith.constant dense<0.000000e+00> : vector<8xf32>
    %338 = vector.multi_reduction <add>, %337, %cst_126 [1] : vector<8x16xf32> to vector<8xf32>
    %339 = vector.shape_cast %338 : vector<8xf32> to vector<8x1xf32>
    %340 = tpu.reciprocal %339 {approx = true} : vector<8x1xf32> -> vector<8x1xf32>
    %341 = vector.broadcast %340 : vector<8x1xf32> to vector<8x16xf32>
    %342 = arith.mulf %337, %341 : vector<8x16xf32>
    %cst_127 = arith.constant dense<0.000000e+00> : vector<8x8xf32>
    %343 = tpu.matmul %342, %329, %cst_127 {dimension_numbers = #tpu.dot_dimension_numbers<[1], [0], [0], [1], [0, 0, 1, 1], [], []>} : vector<8x16xf32>, vector<16x8xf32>, vector<8x8xf32> -> vector<8x8xf32>
    %344 = vector.extract_strided_slice %308 {offsets = [0, 16], sizes = [8, 8], strides = [1, 1]} : vector<8x32xf32> to vector<8x8xf32>
    %345 = vector.extract_strided_slice %309 {offsets = [0, 16], sizes = [16, 8], strides = [1, 1]} : vector<16x64xf32> to vector<16x8xf32>
    %346 = vector.extract_strided_slice %309 {offsets = [0, 48], sizes = [16, 8], strides = [1, 1]} : vector<16x64xf32> to vector<16x8xf32>
    %cst_128 = arith.constant dense<0.000000e+00> : vector<8x16xf32>
    %347 = tpu.matmul %344, %345, %cst_128 {dimension_numbers = #tpu.dot_dimension_numbers<[1], [1], [0], [0], [0, 0, 1, 0], [], []>} : vector<8x8xf32>, vector<16x8xf32>, vector<8x16xf32> -> vector<8x16xf32>
    %cst_129 = arith.constant 0.353553385 : f32
    %348 = vector.broadcast %cst_129 : f32 to vector<8x16xf32>
    %349 = arith.mulf %347, %348 : vector<8x16xf32>
    %cst_130 = arith.constant dense<0xFF800000> : vector<8xf32>
    %350 = vector.multi_reduction <maximumf>, %349, %cst_130 [1] : vector<8x16xf32> to vector<8xf32>
    %351 = vector.shape_cast %350 : vector<8xf32> to vector<8x1xf32>
    %352 = vector.broadcast %351 : vector<8x1xf32> to vector<8x16xf32>
    %353 = arith.subf %349, %352 : vector<8x16xf32>
    %354 = math.exp %353 : vector<8x16xf32>
    %cst_131 = arith.constant dense<0.000000e+00> : vector<8xf32>
    %355 = vector.multi_reduction <add>, %354, %cst_131 [1] : vector<8x16xf32> to vector<8xf32>
    %356 = vector.shape_cast %355 : vector<8xf32> to vector<8x1xf32>
    %357 = tpu.reciprocal %356 {approx = true} : vector<8x1xf32> -> vector<8x1xf32>
    %358 = vector.broadcast %357 : vector<8x1xf32> to vector<8x16xf32>
    %359 = arith.mulf %354, %358 : vector<8x16xf32>
    %cst_132 = arith.constant dense<0.000000e+00> : vector<8x8xf32>
    %360 = tpu.matmul %359, %346, %cst_132 {dimension_numbers = #tpu.dot_dimension_numbers<[1], [0], [0], [1], [0, 0, 1, 1], [], []>} : vector<8x16xf32>, vector<16x8xf32>, vector<8x8xf32> -> vector<8x8xf32>
    %361 = vector.extract_strided_slice %308 {offsets = [0, 24], sizes = [8, 8], strides = [1, 1]} : vector<8x32xf32> to vector<8x8xf32>
    %362 = vector.extract_strided_slice %309 {offsets = [0, 24], sizes = [16, 8], strides = [1, 1]} : vector<16x64xf32> to vector<16x8xf32>
    %363 = vector.extract_strided_slice %309 {offsets = [0, 56], sizes = [16, 8], strides = [1, 1]} : vector<16x64xf32> to vector<16x8xf32>
    %cst_133 = arith.constant dense<0.000000e+00> : vector<8x16xf32>
    %364 = tpu.matmul %361, %362, %cst_133 {dimension_numbers = #tpu.dot_dimension_numbers<[1], [1], [0], [0], [0, 0, 1, 0], [], []>} : vector<8x8xf32>, vector<16x8xf32>, vector<8x16xf32> -> vector<8x16xf32>
    %cst_134 = arith.constant 0.353553385 : f32
    %365 = vector.broadcast %cst_134 : f32 to vector<8x16xf32>
    %366 = arith.mulf %364, %365 : vector<8x16xf32>
    %cst_135 = arith.constant dense<0xFF800000> : vector<8xf32>
    %367 = vector.multi_reduction <maximumf>, %366, %cst_135 [1] : vector<8x16xf32> to vector<8xf32>
    %368 = vector.shape_cast %367 : vector<8xf32> to vector<8x1xf32>
    %369 = vector.broadcast %368 : vector<8x1xf32> to vector<8x16xf32>
    %370 = arith.subf %366, %369 : vector<8x16xf32>
    %371 = math.exp %370 : vector<8x16xf32>
    %cst_136 = arith.constant dense<0.000000e+00> : vector<8xf32>
    %372 = vector.multi_reduction <add>, %371, %cst_136 [1] : vector<8x16xf32> to vector<8xf32>
    %373 = vector.shape_cast %372 : vector<8xf32> to vector<8x1xf32>
    %374 = tpu.reciprocal %373 {approx = true} : vector<8x1xf32> -> vector<8x1xf32>
    %375 = vector.broadcast %374 : vector<8x1xf32> to vector<8x16xf32>
    %376 = arith.mulf %371, %375 : vector<8x16xf32>
    %cst_137 = arith.constant dense<0.000000e+00> : vector<8x8xf32>
    %377 = tpu.matmul %376, %363, %cst_137 {dimension_numbers = #tpu.dot_dimension_numbers<[1], [0], [0], [1], [0, 0, 1, 1], [], []>} : vector<8x16xf32>, vector<16x8xf32>, vector<8x8xf32> -> vector<8x8xf32>
    %378 = tpu.concatenate %326, %343, %360, %377 in 1 : vector<8x8xf32>, vector<8x8xf32>, vector<8x8xf32>, vector<8x8xf32> -> vector<8x32xf32>
    %379 = tpu.concatenate %307, %378 in 0 : vector<8x32xf32>, vector<8x32xf32> -> vector<16x32xf32>
    %c0_138 = arith.constant 0 : index
    %c0_139 = arith.constant 0 : index
    %c0_140 = arith.constant 0 : index
    %380 = vector.load %arg16[%c0_138, %c0_139, %c0_140] : memref<2x32x32xf32, #tpu.memory_space<vmem>>, vector<1x32x32xf32>
    %381 = vector.shape_cast %380 : vector<1x32x32xf32> to vector<32x32xf32>
    %cst_141 = arith.constant dense<0.000000e+00> : vector<16x32xf32>
    %382 = tpu.matmul %379, %381, %cst_141 {dimension_numbers = #tpu.dot_dimension_numbers<[1], [0], [0], [1], [0, 0, 1, 1], [], []>} : vector<16x32xf32>, vector<32x32xf32>, vector<16x32xf32> -> vector<16x32xf32>
    %c0_142 = arith.constant 0 : index
    %c0_143 = arith.constant 0 : index
    %c0_144 = arith.constant 0 : index
    %383 = vector.load %arg17[%c0_142, %c0_143, %c0_144] : memref<2x1x32xf32, #tpu.memory_space<vmem>>, vector<1x1x32xf32>
    %384 = vector.shape_cast %383 : vector<1x1x32xf32> to vector<1x32xf32>
    %385 = vector.broadcast %384 : vector<1x32xf32> to vector<16x32xf32>
    %386 = arith.addf %382, %385 : vector<16x32xf32>
    %387 = arith.addf %222, %386 : vector<16x32xf32>
    %388 = vector.extract_strided_slice %28 {offsets = [1, 0], sizes = [1, 32], strides = [1, 1]} : vector<3x32xf32> to vector<1x32xf32>
    %389 = vector.extract_strided_slice %30 {offsets = [1, 0], sizes = [1, 32], strides = [1, 1]} : vector<3x32xf32> to vector<1x32xf32>
    %cst_145 = arith.constant dense<0.000000e+00> : vector<16xf32>
    %390 = vector.multi_reduction <add>, %387, %cst_145 [1] : vector<16x32xf32> to vector<16xf32>
    %391 = vector.shape_cast %390 : vector<16xf32> to vector<16x1xf32>
    %cst_146 = arith.constant 3.200000e+01 : f32
    %392 = vector.broadcast %cst_146 : f32 to vector<16x1xf32>
    %393 = arith.divf %391, %392 : vector<16x1xf32>
    %394 = vector.broadcast %393 : vector<16x1xf32> to vector<16x32xf32>
    %395 = arith.subf %387, %394 : vector<16x32xf32>
    %396 = arith.mulf %395, %395 : vector<16x32xf32>
    %cst_147 = arith.constant dense<0.000000e+00> : vector<16xf32>
    %397 = vector.multi_reduction <add>, %396, %cst_147 [1] : vector<16x32xf32> to vector<16xf32>
    %398 = vector.shape_cast %397 : vector<16xf32> to vector<16x1xf32>
    %cst_148 = arith.constant 3.200000e+01 : f32
    %399 = vector.broadcast %cst_148 : f32 to vector<16x1xf32>
    %400 = arith.divf %398, %399 : vector<16x1xf32>
    %401 = vector.broadcast %393 : vector<16x1xf32> to vector<16x32xf32>
    %402 = arith.subf %387, %401 : vector<16x32xf32>
    %cst_149 = arith.constant 9.99999974E-6 : f32
    %403 = vector.broadcast %cst_149 : f32 to vector<16x1xf32>
    %404 = arith.addf %400, %403 : vector<16x1xf32>
    %405 = math.rsqrt %404 : vector<16x1xf32>
    %406 = vector.broadcast %405 : vector<16x1xf32> to vector<16x32xf32>
    %407 = arith.mulf %402, %406 : vector<16x32xf32>
    %408 = vector.broadcast %388 : vector<1x32xf32> to vector<16x32xf32>
    %409 = arith.mulf %407, %408 : vector<16x32xf32>
    %410 = vector.broadcast %389 : vector<1x32xf32> to vector<16x32xf32>
    %411 = arith.addf %409, %410 : vector<16x32xf32>
    %c0_150 = arith.constant 0 : index
    %c0_151 = arith.constant 0 : index
    %c0_152 = arith.constant 0 : index
    %412 = vector.load %arg18[%c0_150, %c0_151, %c0_152] : memref<2x32x32xf32, #tpu.memory_space<vmem>>, vector<1x32x32xf32>
    %413 = vector.shape_cast %412 : vector<1x32x32xf32> to vector<32x32xf32>
    %cst_153 = arith.constant dense<0.000000e+00> : vector<16x32xf32>
    %414 = tpu.matmul %411, %413, %cst_153 {dimension_numbers = #tpu.dot_dimension_numbers<[1], [0], [0], [1], [0, 0, 1, 1], [], []>} : vector<16x32xf32>, vector<32x32xf32>, vector<16x32xf32> -> vector<16x32xf32>
    %c0_154 = arith.constant 0 : index
    %c0_155 = arith.constant 0 : index
    %c0_156 = arith.constant 0 : index
    %415 = vector.load %arg19[%c0_154, %c0_155, %c0_156] : memref<2x1x32xf32, #tpu.memory_space<vmem>>, vector<1x1x32xf32>
    %416 = vector.shape_cast %415 : vector<1x1x32xf32> to vector<1x32xf32>
    %417 = vector.broadcast %416 : vector<1x32xf32> to vector<16x32xf32>
    %418 = arith.addf %414, %417 : vector<16x32xf32>
    %cst_157 = arith.constant 0.000000e+00 : f32
    %419 = vector.broadcast %cst_157 : f32 to vector<16x32xf32>
    %420 = arith.maximumf %418, %419 : vector<16x32xf32>
    %c0_158 = arith.constant 0 : index
    %c0_159 = arith.constant 0 : index
    %c0_160 = arith.constant 0 : index
    %421 = vector.load %arg20[%c0_158, %c0_159, %c0_160] : memref<2x32x32xf32, #tpu.memory_space<vmem>>, vector<1x32x32xf32>
    %422 = vector.shape_cast %421 : vector<1x32x32xf32> to vector<32x32xf32>
    %cst_161 = arith.constant dense<0.000000e+00> : vector<16x32xf32>
    %423 = tpu.matmul %420, %422, %cst_161 {dimension_numbers = #tpu.dot_dimension_numbers<[1], [0], [0], [1], [0, 0, 1, 1], [], []>} : vector<16x32xf32>, vector<32x32xf32>, vector<16x32xf32> -> vector<16x32xf32>
    %c0_162 = arith.constant 0 : index
    %c0_163 = arith.constant 0 : index
    %c0_164 = arith.constant 0 : index
    %424 = vector.load %arg21[%c0_162, %c0_163, %c0_164] : memref<2x1x32xf32, #tpu.memory_space<vmem>>, vector<1x1x32xf32>
    %425 = vector.shape_cast %424 : vector<1x1x32xf32> to vector<1x32xf32>
    %426 = vector.broadcast %425 : vector<1x32xf32> to vector<16x32xf32>
    %427 = arith.addf %423, %426 : vector<16x32xf32>
    %428 = arith.addf %411, %427 : vector<16x32xf32>
    %429 = vector.extract_strided_slice %28 {offsets = [2, 0], sizes = [1, 32], strides = [1, 1]} : vector<3x32xf32> to vector<1x32xf32>
    %430 = vector.extract_strided_slice %30 {offsets = [2, 0], sizes = [1, 32], strides = [1, 1]} : vector<3x32xf32> to vector<1x32xf32>
    %cst_165 = arith.constant dense<0.000000e+00> : vector<16xf32>
    %431 = vector.multi_reduction <add>, %428, %cst_165 [1] : vector<16x32xf32> to vector<16xf32>
    %432 = vector.shape_cast %431 : vector<16xf32> to vector<16x1xf32>
    %cst_166 = arith.constant 3.200000e+01 : f32
    %433 = vector.broadcast %cst_166 : f32 to vector<16x1xf32>
    %434 = arith.divf %432, %433 : vector<16x1xf32>
    %435 = vector.broadcast %434 : vector<16x1xf32> to vector<16x32xf32>
    %436 = arith.subf %428, %435 : vector<16x32xf32>
    %437 = arith.mulf %436, %436 : vector<16x32xf32>
    %cst_167 = arith.constant dense<0.000000e+00> : vector<16xf32>
    %438 = vector.multi_reduction <add>, %437, %cst_167 [1] : vector<16x32xf32> to vector<16xf32>
    %439 = vector.shape_cast %438 : vector<16xf32> to vector<16x1xf32>
    %cst_168 = arith.constant 3.200000e+01 : f32
    %440 = vector.broadcast %cst_168 : f32 to vector<16x1xf32>
    %441 = arith.divf %439, %440 : vector<16x1xf32>
    %442 = vector.broadcast %434 : vector<16x1xf32> to vector<16x32xf32>
    %443 = arith.subf %428, %442 : vector<16x32xf32>
    %cst_169 = arith.constant 9.99999974E-6 : f32
    %444 = vector.broadcast %cst_169 : f32 to vector<16x1xf32>
    %445 = arith.addf %441, %444 : vector<16x1xf32>
    %446 = math.rsqrt %445 : vector<16x1xf32>
    %447 = vector.broadcast %446 : vector<16x1xf32> to vector<16x32xf32>
    %448 = arith.mulf %443, %447 : vector<16x32xf32>
    %449 = vector.broadcast %429 : vector<1x32xf32> to vector<16x32xf32>
    %450 = arith.mulf %448, %449 : vector<16x32xf32>
    %451 = vector.broadcast %430 : vector<1x32xf32> to vector<16x32xf32>
    %452 = arith.addf %450, %451 : vector<16x32xf32>
    %c1 = arith.constant 1 : index
    %c0_170 = arith.constant 0 : index
    %c0_171 = arith.constant 0 : index
    %453 = vector.load %arg22[%c1, %c0_170, %c0_171] : memref<2x3x32xf32, #tpu.memory_space<vmem>>, vector<1x3x32xf32>
    %454 = vector.shape_cast %453 : vector<1x3x32xf32> to vector<3x32xf32>
    %c1_172 = arith.constant 1 : index
    %c0_173 = arith.constant 0 : index
    %c0_174 = arith.constant 0 : index
    %455 = vector.load %arg23[%c1_172, %c0_173, %c0_174] : memref<2x3x32xf32, #tpu.memory_space<vmem>>, vector<1x3x32xf32>
    %456 = vector.shape_cast %455 : vector<1x3x32xf32> to vector<3x32xf32>
    %c1_175 = arith.constant 1 : index
    %c0_176 = arith.constant 0 : index
    %c0_177 = arith.constant 0 : index
    %457 = vector.load %arg8[%c1_175, %c0_176, %c0_177] : memref<2x32x96xf32, #tpu.memory_space<vmem>>, vector<1x32x96xf32>
    %458 = vector.shape_cast %457 : vector<1x32x96xf32> to vector<32x96xf32>
    %cst_178 = arith.constant dense<0.000000e+00> : vector<16x96xf32>
    %459 = tpu.matmul %452, %458, %cst_178 {dimension_numbers = #tpu.dot_dimension_numbers<[1], [0], [0], [1], [0, 0, 1, 1], [], []>} : vector<16x32xf32>, vector<32x96xf32>, vector<16x96xf32> -> vector<16x96xf32>
    %c1_179 = arith.constant 1 : index
    %c0_180 = arith.constant 0 : index
    %c0_181 = arith.constant 0 : index
    %460 = vector.load %arg9[%c1_179, %c0_180, %c0_181] : memref<2x1x96xf32, #tpu.memory_space<vmem>>, vector<1x1x96xf32>
    %461 = vector.shape_cast %460 : vector<1x1x96xf32> to vector<1x96xf32>
    %462 = vector.broadcast %461 : vector<1x96xf32> to vector<16x96xf32>
    %463 = arith.addf %459, %462 : vector<16x96xf32>
    %464 = vector.extract_strided_slice %463 {offsets = [0, 0], sizes = [16, 32], strides = [1, 1]} : vector<16x96xf32> to vector<16x32xf32>
    %465 = vector.extract_strided_slice %463 {offsets = [0, 32], sizes = [16, 64], strides = [1, 1]} : vector<16x96xf32> to vector<16x64xf32>
    %466 = vector.extract_strided_slice %464 {offsets = [0, 0], sizes = [8, 32], strides = [1, 1]} : vector<16x32xf32> to vector<8x32xf32>
    %467 = vector.extract_strided_slice %465 {offsets = [0, 0], sizes = [8, 64], strides = [1, 1]} : vector<16x64xf32> to vector<8x64xf32>
    %468 = vector.extract_strided_slice %466 {offsets = [0, 0], sizes = [8, 8], strides = [1, 1]} : vector<8x32xf32> to vector<8x8xf32>
    %469 = vector.extract_strided_slice %467 {offsets = [0, 0], sizes = [8, 8], strides = [1, 1]} : vector<8x64xf32> to vector<8x8xf32>
    %470 = vector.extract_strided_slice %467 {offsets = [0, 32], sizes = [8, 8], strides = [1, 1]} : vector<8x64xf32> to vector<8x8xf32>
    %cst_182 = arith.constant dense<0.000000e+00> : vector<8x8xf32>
    %471 = tpu.matmul %468, %469, %cst_182 {dimension_numbers = #tpu.dot_dimension_numbers<[1], [1], [0], [0], [0, 0, 1, 0], [], []>} : vector<8x8xf32>, vector<8x8xf32>, vector<8x8xf32> -> vector<8x8xf32>
    %cst_183 = arith.constant 0.353553385 : f32
    %472 = vector.broadcast %cst_183 : f32 to vector<8x8xf32>
    %473 = arith.mulf %471, %472 : vector<8x8xf32>
    %474 = arith.addf %473, %26 : vector<8x8xf32>
    %cst_184 = arith.constant dense<0xFF800000> : vector<8xf32>
    %475 = vector.multi_reduction <maximumf>, %474, %cst_184 [1] : vector<8x8xf32> to vector<8xf32>
    %476 = vector.shape_cast %475 : vector<8xf32> to vector<8x1xf32>
    %477 = vector.broadcast %476 : vector<8x1xf32> to vector<8x8xf32>
    %478 = arith.subf %474, %477 : vector<8x8xf32>
    %479 = math.exp %478 : vector<8x8xf32>
    %cst_185 = arith.constant dense<0.000000e+00> : vector<8xf32>
    %480 = vector.multi_reduction <add>, %479, %cst_185 [1] : vector<8x8xf32> to vector<8xf32>
    %481 = vector.shape_cast %480 : vector<8xf32> to vector<8x1xf32>
    %482 = tpu.reciprocal %481 {approx = true} : vector<8x1xf32> -> vector<8x1xf32>
    %483 = vector.broadcast %482 : vector<8x1xf32> to vector<8x8xf32>
    %484 = arith.mulf %479, %483 : vector<8x8xf32>
    %cst_186 = arith.constant dense<0.000000e+00> : vector<8x8xf32>
    %485 = tpu.matmul %484, %470, %cst_186 {dimension_numbers = #tpu.dot_dimension_numbers<[1], [0], [0], [1], [0, 0, 1, 1], [], []>} : vector<8x8xf32>, vector<8x8xf32>, vector<8x8xf32> -> vector<8x8xf32>
    %486 = vector.extract_strided_slice %466 {offsets = [0, 8], sizes = [8, 8], strides = [1, 1]} : vector<8x32xf32> to vector<8x8xf32>
    %487 = vector.extract_strided_slice %467 {offsets = [0, 8], sizes = [8, 8], strides = [1, 1]} : vector<8x64xf32> to vector<8x8xf32>
    %488 = vector.extract_strided_slice %467 {offsets = [0, 40], sizes = [8, 8], strides = [1, 1]} : vector<8x64xf32> to vector<8x8xf32>
    %cst_187 = arith.constant dense<0.000000e+00> : vector<8x8xf32>
    %489 = tpu.matmul %486, %487, %cst_187 {dimension_numbers = #tpu.dot_dimension_numbers<[1], [1], [0], [0], [0, 0, 1, 0], [], []>} : vector<8x8xf32>, vector<8x8xf32>, vector<8x8xf32> -> vector<8x8xf32>
    %cst_188 = arith.constant 0.353553385 : f32
    %490 = vector.broadcast %cst_188 : f32 to vector<8x8xf32>
    %491 = arith.mulf %489, %490 : vector<8x8xf32>
    %492 = arith.addf %491, %26 : vector<8x8xf32>
    %cst_189 = arith.constant dense<0xFF800000> : vector<8xf32>
    %493 = vector.multi_reduction <maximumf>, %492, %cst_189 [1] : vector<8x8xf32> to vector<8xf32>
    %494 = vector.shape_cast %493 : vector<8xf32> to vector<8x1xf32>
    %495 = vector.broadcast %494 : vector<8x1xf32> to vector<8x8xf32>
    %496 = arith.subf %492, %495 : vector<8x8xf32>
    %497 = math.exp %496 : vector<8x8xf32>
    %cst_190 = arith.constant dense<0.000000e+00> : vector<8xf32>
    %498 = vector.multi_reduction <add>, %497, %cst_190 [1] : vector<8x8xf32> to vector<8xf32>
    %499 = vector.shape_cast %498 : vector<8xf32> to vector<8x1xf32>
    %500 = tpu.reciprocal %499 {approx = true} : vector<8x1xf32> -> vector<8x1xf32>
    %501 = vector.broadcast %500 : vector<8x1xf32> to vector<8x8xf32>
    %502 = arith.mulf %497, %501 : vector<8x8xf32>
    %cst_191 = arith.constant dense<0.000000e+00> : vector<8x8xf32>
    %503 = tpu.matmul %502, %488, %cst_191 {dimension_numbers = #tpu.dot_dimension_numbers<[1], [0], [0], [1], [0, 0, 1, 1], [], []>} : vector<8x8xf32>, vector<8x8xf32>, vector<8x8xf32> -> vector<8x8xf32>
    %504 = vector.extract_strided_slice %466 {offsets = [0, 16], sizes = [8, 8], strides = [1, 1]} : vector<8x32xf32> to vector<8x8xf32>
    %505 = vector.extract_strided_slice %467 {offsets = [0, 16], sizes = [8, 8], strides = [1, 1]} : vector<8x64xf32> to vector<8x8xf32>
    %506 = vector.extract_strided_slice %467 {offsets = [0, 48], sizes = [8, 8], strides = [1, 1]} : vector<8x64xf32> to vector<8x8xf32>
    %cst_192 = arith.constant dense<0.000000e+00> : vector<8x8xf32>
    %507 = tpu.matmul %504, %505, %cst_192 {dimension_numbers = #tpu.dot_dimension_numbers<[1], [1], [0], [0], [0, 0, 1, 0], [], []>} : vector<8x8xf32>, vector<8x8xf32>, vector<8x8xf32> -> vector<8x8xf32>
    %cst_193 = arith.constant 0.353553385 : f32
    %508 = vector.broadcast %cst_193 : f32 to vector<8x8xf32>
    %509 = arith.mulf %507, %508 : vector<8x8xf32>
    %510 = arith.addf %509, %26 : vector<8x8xf32>
    %cst_194 = arith.constant dense<0xFF800000> : vector<8xf32>
    %511 = vector.multi_reduction <maximumf>, %510, %cst_194 [1] : vector<8x8xf32> to vector<8xf32>
    %512 = vector.shape_cast %511 : vector<8xf32> to vector<8x1xf32>
    %513 = vector.broadcast %512 : vector<8x1xf32> to vector<8x8xf32>
    %514 = arith.subf %510, %513 : vector<8x8xf32>
    %515 = math.exp %514 : vector<8x8xf32>
    %cst_195 = arith.constant dense<0.000000e+00> : vector<8xf32>
    %516 = vector.multi_reduction <add>, %515, %cst_195 [1] : vector<8x8xf32> to vector<8xf32>
    %517 = vector.shape_cast %516 : vector<8xf32> to vector<8x1xf32>
    %518 = tpu.reciprocal %517 {approx = true} : vector<8x1xf32> -> vector<8x1xf32>
    %519 = vector.broadcast %518 : vector<8x1xf32> to vector<8x8xf32>
    %520 = arith.mulf %515, %519 : vector<8x8xf32>
    %cst_196 = arith.constant dense<0.000000e+00> : vector<8x8xf32>
    %521 = tpu.matmul %520, %506, %cst_196 {dimension_numbers = #tpu.dot_dimension_numbers<[1], [0], [0], [1], [0, 0, 1, 1], [], []>} : vector<8x8xf32>, vector<8x8xf32>, vector<8x8xf32> -> vector<8x8xf32>
    %522 = vector.extract_strided_slice %466 {offsets = [0, 24], sizes = [8, 8], strides = [1, 1]} : vector<8x32xf32> to vector<8x8xf32>
    %523 = vector.extract_strided_slice %467 {offsets = [0, 24], sizes = [8, 8], strides = [1, 1]} : vector<8x64xf32> to vector<8x8xf32>
    %524 = vector.extract_strided_slice %467 {offsets = [0, 56], sizes = [8, 8], strides = [1, 1]} : vector<8x64xf32> to vector<8x8xf32>
    %cst_197 = arith.constant dense<0.000000e+00> : vector<8x8xf32>
    %525 = tpu.matmul %522, %523, %cst_197 {dimension_numbers = #tpu.dot_dimension_numbers<[1], [1], [0], [0], [0, 0, 1, 0], [], []>} : vector<8x8xf32>, vector<8x8xf32>, vector<8x8xf32> -> vector<8x8xf32>
    %cst_198 = arith.constant 0.353553385 : f32
    %526 = vector.broadcast %cst_198 : f32 to vector<8x8xf32>
    %527 = arith.mulf %525, %526 : vector<8x8xf32>
    %528 = arith.addf %527, %26 : vector<8x8xf32>
    %cst_199 = arith.constant dense<0xFF800000> : vector<8xf32>
    %529 = vector.multi_reduction <maximumf>, %528, %cst_199 [1] : vector<8x8xf32> to vector<8xf32>
    %530 = vector.shape_cast %529 : vector<8xf32> to vector<8x1xf32>
    %531 = vector.broadcast %530 : vector<8x1xf32> to vector<8x8xf32>
    %532 = arith.subf %528, %531 : vector<8x8xf32>
    %533 = math.exp %532 : vector<8x8xf32>
    %cst_200 = arith.constant dense<0.000000e+00> : vector<8xf32>
    %534 = vector.multi_reduction <add>, %533, %cst_200 [1] : vector<8x8xf32> to vector<8xf32>
    %535 = vector.shape_cast %534 : vector<8xf32> to vector<8x1xf32>
    %536 = tpu.reciprocal %535 {approx = true} : vector<8x1xf32> -> vector<8x1xf32>
    %537 = vector.broadcast %536 : vector<8x1xf32> to vector<8x8xf32>
    %538 = arith.mulf %533, %537 : vector<8x8xf32>
    %cst_201 = arith.constant dense<0.000000e+00> : vector<8x8xf32>
    %539 = tpu.matmul %538, %524, %cst_201 {dimension_numbers = #tpu.dot_dimension_numbers<[1], [0], [0], [1], [0, 0, 1, 1], [], []>} : vector<8x8xf32>, vector<8x8xf32>, vector<8x8xf32> -> vector<8x8xf32>
    %540 = tpu.concatenate %485, %503, %521, %539 in 1 : vector<8x8xf32>, vector<8x8xf32>, vector<8x8xf32>, vector<8x8xf32> -> vector<8x32xf32>
    %541 = vector.extract_strided_slice %464 {offsets = [8, 0], sizes = [8, 32], strides = [1, 1]} : vector<16x32xf32> to vector<8x32xf32>
    %542 = vector.extract_strided_slice %465 {offsets = [8, 0], sizes = [8, 64], strides = [1, 1]} : vector<16x64xf32> to vector<8x64xf32>
    %543 = vector.extract_strided_slice %541 {offsets = [0, 0], sizes = [8, 8], strides = [1, 1]} : vector<8x32xf32> to vector<8x8xf32>
    %544 = vector.extract_strided_slice %542 {offsets = [0, 0], sizes = [8, 8], strides = [1, 1]} : vector<8x64xf32> to vector<8x8xf32>
    %545 = vector.extract_strided_slice %542 {offsets = [0, 32], sizes = [8, 8], strides = [1, 1]} : vector<8x64xf32> to vector<8x8xf32>
    %cst_202 = arith.constant dense<0.000000e+00> : vector<8x8xf32>
    %546 = tpu.matmul %543, %544, %cst_202 {dimension_numbers = #tpu.dot_dimension_numbers<[1], [1], [0], [0], [0, 0, 1, 0], [], []>} : vector<8x8xf32>, vector<8x8xf32>, vector<8x8xf32> -> vector<8x8xf32>
    %cst_203 = arith.constant 0.353553385 : f32
    %547 = vector.broadcast %cst_203 : f32 to vector<8x8xf32>
    %548 = arith.mulf %546, %547 : vector<8x8xf32>
    %549 = arith.addf %548, %26 : vector<8x8xf32>
    %cst_204 = arith.constant dense<0xFF800000> : vector<8xf32>
    %550 = vector.multi_reduction <maximumf>, %549, %cst_204 [1] : vector<8x8xf32> to vector<8xf32>
    %551 = vector.shape_cast %550 : vector<8xf32> to vector<8x1xf32>
    %552 = vector.broadcast %551 : vector<8x1xf32> to vector<8x8xf32>
    %553 = arith.subf %549, %552 : vector<8x8xf32>
    %554 = math.exp %553 : vector<8x8xf32>
    %cst_205 = arith.constant dense<0.000000e+00> : vector<8xf32>
    %555 = vector.multi_reduction <add>, %554, %cst_205 [1] : vector<8x8xf32> to vector<8xf32>
    %556 = vector.shape_cast %555 : vector<8xf32> to vector<8x1xf32>
    %557 = tpu.reciprocal %556 {approx = true} : vector<8x1xf32> -> vector<8x1xf32>
    %558 = vector.broadcast %557 : vector<8x1xf32> to vector<8x8xf32>
    %559 = arith.mulf %554, %558 : vector<8x8xf32>
    %cst_206 = arith.constant dense<0.000000e+00> : vector<8x8xf32>
    %560 = tpu.matmul %559, %545, %cst_206 {dimension_numbers = #tpu.dot_dimension_numbers<[1], [0], [0], [1], [0, 0, 1, 1], [], []>} : vector<8x8xf32>, vector<8x8xf32>, vector<8x8xf32> -> vector<8x8xf32>
    %561 = vector.extract_strided_slice %541 {offsets = [0, 8], sizes = [8, 8], strides = [1, 1]} : vector<8x32xf32> to vector<8x8xf32>
    %562 = vector.extract_strided_slice %542 {offsets = [0, 8], sizes = [8, 8], strides = [1, 1]} : vector<8x64xf32> to vector<8x8xf32>
    %563 = vector.extract_strided_slice %542 {offsets = [0, 40], sizes = [8, 8], strides = [1, 1]} : vector<8x64xf32> to vector<8x8xf32>
    %cst_207 = arith.constant dense<0.000000e+00> : vector<8x8xf32>
    %564 = tpu.matmul %561, %562, %cst_207 {dimension_numbers = #tpu.dot_dimension_numbers<[1], [1], [0], [0], [0, 0, 1, 0], [], []>} : vector<8x8xf32>, vector<8x8xf32>, vector<8x8xf32> -> vector<8x8xf32>
    %cst_208 = arith.constant 0.353553385 : f32
    %565 = vector.broadcast %cst_208 : f32 to vector<8x8xf32>
    %566 = arith.mulf %564, %565 : vector<8x8xf32>
    %567 = arith.addf %566, %26 : vector<8x8xf32>
    %cst_209 = arith.constant dense<0xFF800000> : vector<8xf32>
    %568 = vector.multi_reduction <maximumf>, %567, %cst_209 [1] : vector<8x8xf32> to vector<8xf32>
    %569 = vector.shape_cast %568 : vector<8xf32> to vector<8x1xf32>
    %570 = vector.broadcast %569 : vector<8x1xf32> to vector<8x8xf32>
    %571 = arith.subf %567, %570 : vector<8x8xf32>
    %572 = math.exp %571 : vector<8x8xf32>
    %cst_210 = arith.constant dense<0.000000e+00> : vector<8xf32>
    %573 = vector.multi_reduction <add>, %572, %cst_210 [1] : vector<8x8xf32> to vector<8xf32>
    %574 = vector.shape_cast %573 : vector<8xf32> to vector<8x1xf32>
    %575 = tpu.reciprocal %574 {approx = true} : vector<8x1xf32> -> vector<8x1xf32>
    %576 = vector.broadcast %575 : vector<8x1xf32> to vector<8x8xf32>
    %577 = arith.mulf %572, %576 : vector<8x8xf32>
    %cst_211 = arith.constant dense<0.000000e+00> : vector<8x8xf32>
    %578 = tpu.matmul %577, %563, %cst_211 {dimension_numbers = #tpu.dot_dimension_numbers<[1], [0], [0], [1], [0, 0, 1, 1], [], []>} : vector<8x8xf32>, vector<8x8xf32>, vector<8x8xf32> -> vector<8x8xf32>
    %579 = vector.extract_strided_slice %541 {offsets = [0, 16], sizes = [8, 8], strides = [1, 1]} : vector<8x32xf32> to vector<8x8xf32>
    %580 = vector.extract_strided_slice %542 {offsets = [0, 16], sizes = [8, 8], strides = [1, 1]} : vector<8x64xf32> to vector<8x8xf32>
    %581 = vector.extract_strided_slice %542 {offsets = [0, 48], sizes = [8, 8], strides = [1, 1]} : vector<8x64xf32> to vector<8x8xf32>
    %cst_212 = arith.constant dense<0.000000e+00> : vector<8x8xf32>
    %582 = tpu.matmul %579, %580, %cst_212 {dimension_numbers = #tpu.dot_dimension_numbers<[1], [1], [0], [0], [0, 0, 1, 0], [], []>} : vector<8x8xf32>, vector<8x8xf32>, vector<8x8xf32> -> vector<8x8xf32>
    %cst_213 = arith.constant 0.353553385 : f32
    %583 = vector.broadcast %cst_213 : f32 to vector<8x8xf32>
    %584 = arith.mulf %582, %583 : vector<8x8xf32>
    %585 = arith.addf %584, %26 : vector<8x8xf32>
    %cst_214 = arith.constant dense<0xFF800000> : vector<8xf32>
    %586 = vector.multi_reduction <maximumf>, %585, %cst_214 [1] : vector<8x8xf32> to vector<8xf32>
    %587 = vector.shape_cast %586 : vector<8xf32> to vector<8x1xf32>
    %588 = vector.broadcast %587 : vector<8x1xf32> to vector<8x8xf32>
    %589 = arith.subf %585, %588 : vector<8x8xf32>
    %590 = math.exp %589 : vector<8x8xf32>
    %cst_215 = arith.constant dense<0.000000e+00> : vector<8xf32>
    %591 = vector.multi_reduction <add>, %590, %cst_215 [1] : vector<8x8xf32> to vector<8xf32>
    %592 = vector.shape_cast %591 : vector<8xf32> to vector<8x1xf32>
    %593 = tpu.reciprocal %592 {approx = true} : vector<8x1xf32> -> vector<8x1xf32>
    %594 = vector.broadcast %593 : vector<8x1xf32> to vector<8x8xf32>
    %595 = arith.mulf %590, %594 : vector<8x8xf32>
    %cst_216 = arith.constant dense<0.000000e+00> : vector<8x8xf32>
    %596 = tpu.matmul %595, %581, %cst_216 {dimension_numbers = #tpu.dot_dimension_numbers<[1], [0], [0], [1], [0, 0, 1, 1], [], []>} : vector<8x8xf32>, vector<8x8xf32>, vector<8x8xf32> -> vector<8x8xf32>
    %597 = vector.extract_strided_slice %541 {offsets = [0, 24], sizes = [8, 8], strides = [1, 1]} : vector<8x32xf32> to vector<8x8xf32>
    %598 = vector.extract_strided_slice %542 {offsets = [0, 24], sizes = [8, 8], strides = [1, 1]} : vector<8x64xf32> to vector<8x8xf32>
    %599 = vector.extract_strided_slice %542 {offsets = [0, 56], sizes = [8, 8], strides = [1, 1]} : vector<8x64xf32> to vector<8x8xf32>
    %cst_217 = arith.constant dense<0.000000e+00> : vector<8x8xf32>
    %600 = tpu.matmul %597, %598, %cst_217 {dimension_numbers = #tpu.dot_dimension_numbers<[1], [1], [0], [0], [0, 0, 1, 0], [], []>} : vector<8x8xf32>, vector<8x8xf32>, vector<8x8xf32> -> vector<8x8xf32>
    %cst_218 = arith.constant 0.353553385 : f32
    %601 = vector.broadcast %cst_218 : f32 to vector<8x8xf32>
    %602 = arith.mulf %600, %601 : vector<8x8xf32>
    %603 = arith.addf %602, %26 : vector<8x8xf32>
    %cst_219 = arith.constant dense<0xFF800000> : vector<8xf32>
    %604 = vector.multi_reduction <maximumf>, %603, %cst_219 [1] : vector<8x8xf32> to vector<8xf32>
    %605 = vector.shape_cast %604 : vector<8xf32> to vector<8x1xf32>
    %606 = vector.broadcast %605 : vector<8x1xf32> to vector<8x8xf32>
    %607 = arith.subf %603, %606 : vector<8x8xf32>
    %608 = math.exp %607 : vector<8x8xf32>
    %cst_220 = arith.constant dense<0.000000e+00> : vector<8xf32>
    %609 = vector.multi_reduction <add>, %608, %cst_220 [1] : vector<8x8xf32> to vector<8xf32>
    %610 = vector.shape_cast %609 : vector<8xf32> to vector<8x1xf32>
    %611 = tpu.reciprocal %610 {approx = true} : vector<8x1xf32> -> vector<8x1xf32>
    %612 = vector.broadcast %611 : vector<8x1xf32> to vector<8x8xf32>
    %613 = arith.mulf %608, %612 : vector<8x8xf32>
    %cst_221 = arith.constant dense<0.000000e+00> : vector<8x8xf32>
    %614 = tpu.matmul %613, %599, %cst_221 {dimension_numbers = #tpu.dot_dimension_numbers<[1], [0], [0], [1], [0, 0, 1, 1], [], []>} : vector<8x8xf32>, vector<8x8xf32>, vector<8x8xf32> -> vector<8x8xf32>
    %615 = tpu.concatenate %560, %578, %596, %614 in 1 : vector<8x8xf32>, vector<8x8xf32>, vector<8x8xf32>, vector<8x8xf32> -> vector<8x32xf32>
    %616 = tpu.concatenate %540, %615 in 0 : vector<8x32xf32>, vector<8x32xf32> -> vector<16x32xf32>
    %c1_222 = arith.constant 1 : index
    %c0_223 = arith.constant 0 : index
    %c0_224 = arith.constant 0 : index
    %617 = vector.load %arg10[%c1_222, %c0_223, %c0_224] : memref<2x32x32xf32, #tpu.memory_space<vmem>>, vector<1x32x32xf32>
    %618 = vector.shape_cast %617 : vector<1x32x32xf32> to vector<32x32xf32>
    %cst_225 = arith.constant dense<0.000000e+00> : vector<16x32xf32>
    %619 = tpu.matmul %616, %618, %cst_225 {dimension_numbers = #tpu.dot_dimension_numbers<[1], [0], [0], [1], [0, 0, 1, 1], [], []>} : vector<16x32xf32>, vector<32x32xf32>, vector<16x32xf32> -> vector<16x32xf32>
    %c1_226 = arith.constant 1 : index
    %c0_227 = arith.constant 0 : index
    %c0_228 = arith.constant 0 : index
    %620 = vector.load %arg11[%c1_226, %c0_227, %c0_228] : memref<2x1x32xf32, #tpu.memory_space<vmem>>, vector<1x1x32xf32>
    %621 = vector.shape_cast %620 : vector<1x1x32xf32> to vector<1x32xf32>
    %622 = vector.broadcast %621 : vector<1x32xf32> to vector<16x32xf32>
    %623 = arith.addf %619, %622 : vector<16x32xf32>
    %624 = arith.addf %452, %623 : vector<16x32xf32>
    %625 = vector.extract_strided_slice %454 {offsets = [0, 0], sizes = [1, 32], strides = [1, 1]} : vector<3x32xf32> to vector<1x32xf32>
    %626 = vector.extract_strided_slice %456 {offsets = [0, 0], sizes = [1, 32], strides = [1, 1]} : vector<3x32xf32> to vector<1x32xf32>
    %cst_229 = arith.constant dense<0.000000e+00> : vector<16xf32>
    %627 = vector.multi_reduction <add>, %624, %cst_229 [1] : vector<16x32xf32> to vector<16xf32>
    %628 = vector.shape_cast %627 : vector<16xf32> to vector<16x1xf32>
    %cst_230 = arith.constant 3.200000e+01 : f32
    %629 = vector.broadcast %cst_230 : f32 to vector<16x1xf32>
    %630 = arith.divf %628, %629 : vector<16x1xf32>
    %631 = vector.broadcast %630 : vector<16x1xf32> to vector<16x32xf32>
    %632 = arith.subf %624, %631 : vector<16x32xf32>
    %633 = arith.mulf %632, %632 : vector<16x32xf32>
    %cst_231 = arith.constant dense<0.000000e+00> : vector<16xf32>
    %634 = vector.multi_reduction <add>, %633, %cst_231 [1] : vector<16x32xf32> to vector<16xf32>
    %635 = vector.shape_cast %634 : vector<16xf32> to vector<16x1xf32>
    %cst_232 = arith.constant 3.200000e+01 : f32
    %636 = vector.broadcast %cst_232 : f32 to vector<16x1xf32>
    %637 = arith.divf %635, %636 : vector<16x1xf32>
    %638 = vector.broadcast %630 : vector<16x1xf32> to vector<16x32xf32>
    %639 = arith.subf %624, %638 : vector<16x32xf32>
    %cst_233 = arith.constant 9.99999974E-6 : f32
    %640 = vector.broadcast %cst_233 : f32 to vector<16x1xf32>
    %641 = arith.addf %637, %640 : vector<16x1xf32>
    %642 = math.rsqrt %641 : vector<16x1xf32>
    %643 = vector.broadcast %642 : vector<16x1xf32> to vector<16x32xf32>
    %644 = arith.mulf %639, %643 : vector<16x32xf32>
    %645 = vector.broadcast %625 : vector<1x32xf32> to vector<16x32xf32>
    %646 = arith.mulf %644, %645 : vector<16x32xf32>
    %647 = vector.broadcast %626 : vector<1x32xf32> to vector<16x32xf32>
    %648 = arith.addf %646, %647 : vector<16x32xf32>
    %c1_234 = arith.constant 1 : index
    %c0_235 = arith.constant 0 : index
    %c0_236 = arith.constant 0 : index
    %649 = vector.load %arg12[%c1_234, %c0_235, %c0_236] : memref<2x32x32xf32, #tpu.memory_space<vmem>>, vector<1x32x32xf32>
    %650 = vector.shape_cast %649 : vector<1x32x32xf32> to vector<32x32xf32>
    %cst_237 = arith.constant dense<0.000000e+00> : vector<16x32xf32>
    %651 = tpu.matmul %648, %650, %cst_237 {dimension_numbers = #tpu.dot_dimension_numbers<[1], [0], [0], [1], [0, 0, 1, 1], [], []>} : vector<16x32xf32>, vector<32x32xf32>, vector<16x32xf32> -> vector<16x32xf32>
    %c1_238 = arith.constant 1 : index
    %c0_239 = arith.constant 0 : index
    %c0_240 = arith.constant 0 : index
    %652 = vector.load %arg13[%c1_238, %c0_239, %c0_240] : memref<2x1x32xf32, #tpu.memory_space<vmem>>, vector<1x1x32xf32>
    %653 = vector.shape_cast %652 : vector<1x1x32xf32> to vector<1x32xf32>
    %654 = vector.broadcast %653 : vector<1x32xf32> to vector<16x32xf32>
    %655 = arith.addf %651, %654 : vector<16x32xf32>
    %c1_241 = arith.constant 1 : index
    %c0_242 = arith.constant 0 : index
    %c0_243 = arith.constant 0 : index
    %656 = vector.load %arg14[%c1_241, %c0_242, %c0_243] : memref<2x32x64xf32, #tpu.memory_space<vmem>>, vector<1x32x64xf32>
    %657 = vector.shape_cast %656 : vector<1x32x64xf32> to vector<32x64xf32>
    %cst_244 = arith.constant dense<0.000000e+00> : vector<32x64xf32>
    %658 = tpu.matmul %10, %657, %cst_244 {dimension_numbers = #tpu.dot_dimension_numbers<[1], [0], [0], [1], [0, 0, 1, 1], [], []>} : vector<32x32xf32>, vector<32x64xf32>, vector<32x64xf32> -> vector<32x64xf32>
    %c1_245 = arith.constant 1 : index
    %c0_246 = arith.constant 0 : index
    %c0_247 = arith.constant 0 : index
    %659 = vector.load %arg15[%c1_245, %c0_246, %c0_247] : memref<2x1x64xf32, #tpu.memory_space<vmem>>, vector<1x1x64xf32>
    %660 = vector.shape_cast %659 : vector<1x1x64xf32> to vector<1x64xf32>
    %661 = vector.broadcast %660 : vector<1x64xf32> to vector<32x64xf32>
    %662 = arith.addf %658, %661 : vector<32x64xf32>
    %663 = vector.extract_strided_slice %655 {offsets = [0, 0], sizes = [8, 32], strides = [1, 1]} : vector<16x32xf32> to vector<8x32xf32>
    %664 = vector.extract_strided_slice %662 {offsets = [0, 0], sizes = [16, 64], strides = [1, 1]} : vector<32x64xf32> to vector<16x64xf32>
    %665 = vector.extract_strided_slice %663 {offsets = [0, 0], sizes = [8, 8], strides = [1, 1]} : vector<8x32xf32> to vector<8x8xf32>
    %666 = vector.extract_strided_slice %664 {offsets = [0, 0], sizes = [16, 8], strides = [1, 1]} : vector<16x64xf32> to vector<16x8xf32>
    %667 = vector.extract_strided_slice %664 {offsets = [0, 32], sizes = [16, 8], strides = [1, 1]} : vector<16x64xf32> to vector<16x8xf32>
    %cst_248 = arith.constant dense<0.000000e+00> : vector<8x16xf32>
    %668 = tpu.matmul %665, %666, %cst_248 {dimension_numbers = #tpu.dot_dimension_numbers<[1], [1], [0], [0], [0, 0, 1, 0], [], []>} : vector<8x8xf32>, vector<16x8xf32>, vector<8x16xf32> -> vector<8x16xf32>
    %cst_249 = arith.constant 0.353553385 : f32
    %669 = vector.broadcast %cst_249 : f32 to vector<8x16xf32>
    %670 = arith.mulf %668, %669 : vector<8x16xf32>
    %cst_250 = arith.constant dense<0xFF800000> : vector<8xf32>
    %671 = vector.multi_reduction <maximumf>, %670, %cst_250 [1] : vector<8x16xf32> to vector<8xf32>
    %672 = vector.shape_cast %671 : vector<8xf32> to vector<8x1xf32>
    %673 = vector.broadcast %672 : vector<8x1xf32> to vector<8x16xf32>
    %674 = arith.subf %670, %673 : vector<8x16xf32>
    %675 = math.exp %674 : vector<8x16xf32>
    %cst_251 = arith.constant dense<0.000000e+00> : vector<8xf32>
    %676 = vector.multi_reduction <add>, %675, %cst_251 [1] : vector<8x16xf32> to vector<8xf32>
    %677 = vector.shape_cast %676 : vector<8xf32> to vector<8x1xf32>
    %678 = tpu.reciprocal %677 {approx = true} : vector<8x1xf32> -> vector<8x1xf32>
    %679 = vector.broadcast %678 : vector<8x1xf32> to vector<8x16xf32>
    %680 = arith.mulf %675, %679 : vector<8x16xf32>
    %cst_252 = arith.constant dense<0.000000e+00> : vector<8x8xf32>
    %681 = tpu.matmul %680, %667, %cst_252 {dimension_numbers = #tpu.dot_dimension_numbers<[1], [0], [0], [1], [0, 0, 1, 1], [], []>} : vector<8x16xf32>, vector<16x8xf32>, vector<8x8xf32> -> vector<8x8xf32>
    %682 = vector.extract_strided_slice %663 {offsets = [0, 8], sizes = [8, 8], strides = [1, 1]} : vector<8x32xf32> to vector<8x8xf32>
    %683 = vector.extract_strided_slice %664 {offsets = [0, 8], sizes = [16, 8], strides = [1, 1]} : vector<16x64xf32> to vector<16x8xf32>
    %684 = vector.extract_strided_slice %664 {offsets = [0, 40], sizes = [16, 8], strides = [1, 1]} : vector<16x64xf32> to vector<16x8xf32>
    %cst_253 = arith.constant dense<0.000000e+00> : vector<8x16xf32>
    %685 = tpu.matmul %682, %683, %cst_253 {dimension_numbers = #tpu.dot_dimension_numbers<[1], [1], [0], [0], [0, 0, 1, 0], [], []>} : vector<8x8xf32>, vector<16x8xf32>, vector<8x16xf32> -> vector<8x16xf32>
    %cst_254 = arith.constant 0.353553385 : f32
    %686 = vector.broadcast %cst_254 : f32 to vector<8x16xf32>
    %687 = arith.mulf %685, %686 : vector<8x16xf32>
    %cst_255 = arith.constant dense<0xFF800000> : vector<8xf32>
    %688 = vector.multi_reduction <maximumf>, %687, %cst_255 [1] : vector<8x16xf32> to vector<8xf32>
    %689 = vector.shape_cast %688 : vector<8xf32> to vector<8x1xf32>
    %690 = vector.broadcast %689 : vector<8x1xf32> to vector<8x16xf32>
    %691 = arith.subf %687, %690 : vector<8x16xf32>
    %692 = math.exp %691 : vector<8x16xf32>
    %cst_256 = arith.constant dense<0.000000e+00> : vector<8xf32>
    %693 = vector.multi_reduction <add>, %692, %cst_256 [1] : vector<8x16xf32> to vector<8xf32>
    %694 = vector.shape_cast %693 : vector<8xf32> to vector<8x1xf32>
    %695 = tpu.reciprocal %694 {approx = true} : vector<8x1xf32> -> vector<8x1xf32>
    %696 = vector.broadcast %695 : vector<8x1xf32> to vector<8x16xf32>
    %697 = arith.mulf %692, %696 : vector<8x16xf32>
    %cst_257 = arith.constant dense<0.000000e+00> : vector<8x8xf32>
    %698 = tpu.matmul %697, %684, %cst_257 {dimension_numbers = #tpu.dot_dimension_numbers<[1], [0], [0], [1], [0, 0, 1, 1], [], []>} : vector<8x16xf32>, vector<16x8xf32>, vector<8x8xf32> -> vector<8x8xf32>
    %699 = vector.extract_strided_slice %663 {offsets = [0, 16], sizes = [8, 8], strides = [1, 1]} : vector<8x32xf32> to vector<8x8xf32>
    %700 = vector.extract_strided_slice %664 {offsets = [0, 16], sizes = [16, 8], strides = [1, 1]} : vector<16x64xf32> to vector<16x8xf32>
    %701 = vector.extract_strided_slice %664 {offsets = [0, 48], sizes = [16, 8], strides = [1, 1]} : vector<16x64xf32> to vector<16x8xf32>
    %cst_258 = arith.constant dense<0.000000e+00> : vector<8x16xf32>
    %702 = tpu.matmul %699, %700, %cst_258 {dimension_numbers = #tpu.dot_dimension_numbers<[1], [1], [0], [0], [0, 0, 1, 0], [], []>} : vector<8x8xf32>, vector<16x8xf32>, vector<8x16xf32> -> vector<8x16xf32>
    %cst_259 = arith.constant 0.353553385 : f32
    %703 = vector.broadcast %cst_259 : f32 to vector<8x16xf32>
    %704 = arith.mulf %702, %703 : vector<8x16xf32>
    %cst_260 = arith.constant dense<0xFF800000> : vector<8xf32>
    %705 = vector.multi_reduction <maximumf>, %704, %cst_260 [1] : vector<8x16xf32> to vector<8xf32>
    %706 = vector.shape_cast %705 : vector<8xf32> to vector<8x1xf32>
    %707 = vector.broadcast %706 : vector<8x1xf32> to vector<8x16xf32>
    %708 = arith.subf %704, %707 : vector<8x16xf32>
    %709 = math.exp %708 : vector<8x16xf32>
    %cst_261 = arith.constant dense<0.000000e+00> : vector<8xf32>
    %710 = vector.multi_reduction <add>, %709, %cst_261 [1] : vector<8x16xf32> to vector<8xf32>
    %711 = vector.shape_cast %710 : vector<8xf32> to vector<8x1xf32>
    %712 = tpu.reciprocal %711 {approx = true} : vector<8x1xf32> -> vector<8x1xf32>
    %713 = vector.broadcast %712 : vector<8x1xf32> to vector<8x16xf32>
    %714 = arith.mulf %709, %713 : vector<8x16xf32>
    %cst_262 = arith.constant dense<0.000000e+00> : vector<8x8xf32>
    %715 = tpu.matmul %714, %701, %cst_262 {dimension_numbers = #tpu.dot_dimension_numbers<[1], [0], [0], [1], [0, 0, 1, 1], [], []>} : vector<8x16xf32>, vector<16x8xf32>, vector<8x8xf32> -> vector<8x8xf32>
    %716 = vector.extract_strided_slice %663 {offsets = [0, 24], sizes = [8, 8], strides = [1, 1]} : vector<8x32xf32> to vector<8x8xf32>
    %717 = vector.extract_strided_slice %664 {offsets = [0, 24], sizes = [16, 8], strides = [1, 1]} : vector<16x64xf32> to vector<16x8xf32>
    %718 = vector.extract_strided_slice %664 {offsets = [0, 56], sizes = [16, 8], strides = [1, 1]} : vector<16x64xf32> to vector<16x8xf32>
    %cst_263 = arith.constant dense<0.000000e+00> : vector<8x16xf32>
    %719 = tpu.matmul %716, %717, %cst_263 {dimension_numbers = #tpu.dot_dimension_numbers<[1], [1], [0], [0], [0, 0, 1, 0], [], []>} : vector<8x8xf32>, vector<16x8xf32>, vector<8x16xf32> -> vector<8x16xf32>
    %cst_264 = arith.constant 0.353553385 : f32
    %720 = vector.broadcast %cst_264 : f32 to vector<8x16xf32>
    %721 = arith.mulf %719, %720 : vector<8x16xf32>
    %cst_265 = arith.constant dense<0xFF800000> : vector<8xf32>
    %722 = vector.multi_reduction <maximumf>, %721, %cst_265 [1] : vector<8x16xf32> to vector<8xf32>
    %723 = vector.shape_cast %722 : vector<8xf32> to vector<8x1xf32>
    %724 = vector.broadcast %723 : vector<8x1xf32> to vector<8x16xf32>
    %725 = arith.subf %721, %724 : vector<8x16xf32>
    %726 = math.exp %725 : vector<8x16xf32>
    %cst_266 = arith.constant dense<0.000000e+00> : vector<8xf32>
    %727 = vector.multi_reduction <add>, %726, %cst_266 [1] : vector<8x16xf32> to vector<8xf32>
    %728 = vector.shape_cast %727 : vector<8xf32> to vector<8x1xf32>
    %729 = tpu.reciprocal %728 {approx = true} : vector<8x1xf32> -> vector<8x1xf32>
    %730 = vector.broadcast %729 : vector<8x1xf32> to vector<8x16xf32>
    %731 = arith.mulf %726, %730 : vector<8x16xf32>
    %cst_267 = arith.constant dense<0.000000e+00> : vector<8x8xf32>
    %732 = tpu.matmul %731, %718, %cst_267 {dimension_numbers = #tpu.dot_dimension_numbers<[1], [0], [0], [1], [0, 0, 1, 1], [], []>} : vector<8x16xf32>, vector<16x8xf32>, vector<8x8xf32> -> vector<8x8xf32>
    %733 = tpu.concatenate %681, %698, %715, %732 in 1 : vector<8x8xf32>, vector<8x8xf32>, vector<8x8xf32>, vector<8x8xf32> -> vector<8x32xf32>
    %734 = vector.extract_strided_slice %655 {offsets = [8, 0], sizes = [8, 32], strides = [1, 1]} : vector<16x32xf32> to vector<8x32xf32>
    %735 = vector.extract_strided_slice %662 {offsets = [16, 0], sizes = [16, 64], strides = [1, 1]} : vector<32x64xf32> to vector<16x64xf32>
    %736 = vector.extract_strided_slice %734 {offsets = [0, 0], sizes = [8, 8], strides = [1, 1]} : vector<8x32xf32> to vector<8x8xf32>
    %737 = vector.extract_strided_slice %735 {offsets = [0, 0], sizes = [16, 8], strides = [1, 1]} : vector<16x64xf32> to vector<16x8xf32>
    %738 = vector.extract_strided_slice %735 {offsets = [0, 32], sizes = [16, 8], strides = [1, 1]} : vector<16x64xf32> to vector<16x8xf32>
    %cst_268 = arith.constant dense<0.000000e+00> : vector<8x16xf32>
    %739 = tpu.matmul %736, %737, %cst_268 {dimension_numbers = #tpu.dot_dimension_numbers<[1], [1], [0], [0], [0, 0, 1, 0], [], []>} : vector<8x8xf32>, vector<16x8xf32>, vector<8x16xf32> -> vector<8x16xf32>
    %cst_269 = arith.constant 0.353553385 : f32
    %740 = vector.broadcast %cst_269 : f32 to vector<8x16xf32>
    %741 = arith.mulf %739, %740 : vector<8x16xf32>
    %cst_270 = arith.constant dense<0xFF800000> : vector<8xf32>
    %742 = vector.multi_reduction <maximumf>, %741, %cst_270 [1] : vector<8x16xf32> to vector<8xf32>
    %743 = vector.shape_cast %742 : vector<8xf32> to vector<8x1xf32>
    %744 = vector.broadcast %743 : vector<8x1xf32> to vector<8x16xf32>
    %745 = arith.subf %741, %744 : vector<8x16xf32>
    %746 = math.exp %745 : vector<8x16xf32>
    %cst_271 = arith.constant dense<0.000000e+00> : vector<8xf32>
    %747 = vector.multi_reduction <add>, %746, %cst_271 [1] : vector<8x16xf32> to vector<8xf32>
    %748 = vector.shape_cast %747 : vector<8xf32> to vector<8x1xf32>
    %749 = tpu.reciprocal %748 {approx = true} : vector<8x1xf32> -> vector<8x1xf32>
    %750 = vector.broadcast %749 : vector<8x1xf32> to vector<8x16xf32>
    %751 = arith.mulf %746, %750 : vector<8x16xf32>
    %cst_272 = arith.constant dense<0.000000e+00> : vector<8x8xf32>
    %752 = tpu.matmul %751, %738, %cst_272 {dimension_numbers = #tpu.dot_dimension_numbers<[1], [0], [0], [1], [0, 0, 1, 1], [], []>} : vector<8x16xf32>, vector<16x8xf32>, vector<8x8xf32> -> vector<8x8xf32>
    %753 = vector.extract_strided_slice %734 {offsets = [0, 8], sizes = [8, 8], strides = [1, 1]} : vector<8x32xf32> to vector<8x8xf32>
    %754 = vector.extract_strided_slice %735 {offsets = [0, 8], sizes = [16, 8], strides = [1, 1]} : vector<16x64xf32> to vector<16x8xf32>
    %755 = vector.extract_strided_slice %735 {offsets = [0, 40], sizes = [16, 8], strides = [1, 1]} : vector<16x64xf32> to vector<16x8xf32>
    %cst_273 = arith.constant dense<0.000000e+00> : vector<8x16xf32>
    %756 = tpu.matmul %753, %754, %cst_273 {dimension_numbers = #tpu.dot_dimension_numbers<[1], [1], [0], [0], [0, 0, 1, 0], [], []>} : vector<8x8xf32>, vector<16x8xf32>, vector<8x16xf32> -> vector<8x16xf32>
    %cst_274 = arith.constant 0.353553385 : f32
    %757 = vector.broadcast %cst_274 : f32 to vector<8x16xf32>
    %758 = arith.mulf %756, %757 : vector<8x16xf32>
    %cst_275 = arith.constant dense<0xFF800000> : vector<8xf32>
    %759 = vector.multi_reduction <maximumf>, %758, %cst_275 [1] : vector<8x16xf32> to vector<8xf32>
    %760 = vector.shape_cast %759 : vector<8xf32> to vector<8x1xf32>
    %761 = vector.broadcast %760 : vector<8x1xf32> to vector<8x16xf32>
    %762 = arith.subf %758, %761 : vector<8x16xf32>
    %763 = math.exp %762 : vector<8x16xf32>
    %cst_276 = arith.constant dense<0.000000e+00> : vector<8xf32>
    %764 = vector.multi_reduction <add>, %763, %cst_276 [1] : vector<8x16xf32> to vector<8xf32>
    %765 = vector.shape_cast %764 : vector<8xf32> to vector<8x1xf32>
    %766 = tpu.reciprocal %765 {approx = true} : vector<8x1xf32> -> vector<8x1xf32>
    %767 = vector.broadcast %766 : vector<8x1xf32> to vector<8x16xf32>
    %768 = arith.mulf %763, %767 : vector<8x16xf32>
    %cst_277 = arith.constant dense<0.000000e+00> : vector<8x8xf32>
    %769 = tpu.matmul %768, %755, %cst_277 {dimension_numbers = #tpu.dot_dimension_numbers<[1], [0], [0], [1], [0, 0, 1, 1], [], []>} : vector<8x16xf32>, vector<16x8xf32>, vector<8x8xf32> -> vector<8x8xf32>
    %770 = vector.extract_strided_slice %734 {offsets = [0, 16], sizes = [8, 8], strides = [1, 1]} : vector<8x32xf32> to vector<8x8xf32>
    %771 = vector.extract_strided_slice %735 {offsets = [0, 16], sizes = [16, 8], strides = [1, 1]} : vector<16x64xf32> to vector<16x8xf32>
    %772 = vector.extract_strided_slice %735 {offsets = [0, 48], sizes = [16, 8], strides = [1, 1]} : vector<16x64xf32> to vector<16x8xf32>
    %cst_278 = arith.constant dense<0.000000e+00> : vector<8x16xf32>
    %773 = tpu.matmul %770, %771, %cst_278 {dimension_numbers = #tpu.dot_dimension_numbers<[1], [1], [0], [0], [0, 0, 1, 0], [], []>} : vector<8x8xf32>, vector<16x8xf32>, vector<8x16xf32> -> vector<8x16xf32>
    %cst_279 = arith.constant 0.353553385 : f32
    %774 = vector.broadcast %cst_279 : f32 to vector<8x16xf32>
    %775 = arith.mulf %773, %774 : vector<8x16xf32>
    %cst_280 = arith.constant dense<0xFF800000> : vector<8xf32>
    %776 = vector.multi_reduction <maximumf>, %775, %cst_280 [1] : vector<8x16xf32> to vector<8xf32>
    %777 = vector.shape_cast %776 : vector<8xf32> to vector<8x1xf32>
    %778 = vector.broadcast %777 : vector<8x1xf32> to vector<8x16xf32>
    %779 = arith.subf %775, %778 : vector<8x16xf32>
    %780 = math.exp %779 : vector<8x16xf32>
    %cst_281 = arith.constant dense<0.000000e+00> : vector<8xf32>
    %781 = vector.multi_reduction <add>, %780, %cst_281 [1] : vector<8x16xf32> to vector<8xf32>
    %782 = vector.shape_cast %781 : vector<8xf32> to vector<8x1xf32>
    %783 = tpu.reciprocal %782 {approx = true} : vector<8x1xf32> -> vector<8x1xf32>
    %784 = vector.broadcast %783 : vector<8x1xf32> to vector<8x16xf32>
    %785 = arith.mulf %780, %784 : vector<8x16xf32>
    %cst_282 = arith.constant dense<0.000000e+00> : vector<8x8xf32>
    %786 = tpu.matmul %785, %772, %cst_282 {dimension_numbers = #tpu.dot_dimension_numbers<[1], [0], [0], [1], [0, 0, 1, 1], [], []>} : vector<8x16xf32>, vector<16x8xf32>, vector<8x8xf32> -> vector<8x8xf32>
    %787 = vector.extract_strided_slice %734 {offsets = [0, 24], sizes = [8, 8], strides = [1, 1]} : vector<8x32xf32> to vector<8x8xf32>
    %788 = vector.extract_strided_slice %735 {offsets = [0, 24], sizes = [16, 8], strides = [1, 1]} : vector<16x64xf32> to vector<16x8xf32>
    %789 = vector.extract_strided_slice %735 {offsets = [0, 56], sizes = [16, 8], strides = [1, 1]} : vector<16x64xf32> to vector<16x8xf32>
    %cst_283 = arith.constant dense<0.000000e+00> : vector<8x16xf32>
    %790 = tpu.matmul %787, %788, %cst_283 {dimension_numbers = #tpu.dot_dimension_numbers<[1], [1], [0], [0], [0, 0, 1, 0], [], []>} : vector<8x8xf32>, vector<16x8xf32>, vector<8x16xf32> -> vector<8x16xf32>
    %cst_284 = arith.constant 0.353553385 : f32
    %791 = vector.broadcast %cst_284 : f32 to vector<8x16xf32>
    %792 = arith.mulf %790, %791 : vector<8x16xf32>
    %cst_285 = arith.constant dense<0xFF800000> : vector<8xf32>
    %793 = vector.multi_reduction <maximumf>, %792, %cst_285 [1] : vector<8x16xf32> to vector<8xf32>
    %794 = vector.shape_cast %793 : vector<8xf32> to vector<8x1xf32>
    %795 = vector.broadcast %794 : vector<8x1xf32> to vector<8x16xf32>
    %796 = arith.subf %792, %795 : vector<8x16xf32>
    %797 = math.exp %796 : vector<8x16xf32>
    %cst_286 = arith.constant dense<0.000000e+00> : vector<8xf32>
    %798 = vector.multi_reduction <add>, %797, %cst_286 [1] : vector<8x16xf32> to vector<8xf32>
    %799 = vector.shape_cast %798 : vector<8xf32> to vector<8x1xf32>
    %800 = tpu.reciprocal %799 {approx = true} : vector<8x1xf32> -> vector<8x1xf32>
    %801 = vector.broadcast %800 : vector<8x1xf32> to vector<8x16xf32>
    %802 = arith.mulf %797, %801 : vector<8x16xf32>
    %cst_287 = arith.constant dense<0.000000e+00> : vector<8x8xf32>
    %803 = tpu.matmul %802, %789, %cst_287 {dimension_numbers = #tpu.dot_dimension_numbers<[1], [0], [0], [1], [0, 0, 1, 1], [], []>} : vector<8x16xf32>, vector<16x8xf32>, vector<8x8xf32> -> vector<8x8xf32>
    %804 = tpu.concatenate %752, %769, %786, %803 in 1 : vector<8x8xf32>, vector<8x8xf32>, vector<8x8xf32>, vector<8x8xf32> -> vector<8x32xf32>
    %805 = tpu.concatenate %733, %804 in 0 : vector<8x32xf32>, vector<8x32xf32> -> vector<16x32xf32>
    %c1_288 = arith.constant 1 : index
    %c0_289 = arith.constant 0 : index
    %c0_290 = arith.constant 0 : index
    %806 = vector.load %arg16[%c1_288, %c0_289, %c0_290] : memref<2x32x32xf32, #tpu.memory_space<vmem>>, vector<1x32x32xf32>
    %807 = vector.shape_cast %806 : vector<1x32x32xf32> to vector<32x32xf32>
    %cst_291 = arith.constant dense<0.000000e+00> : vector<16x32xf32>
    %808 = tpu.matmul %805, %807, %cst_291 {dimension_numbers = #tpu.dot_dimension_numbers<[1], [0], [0], [1], [0, 0, 1, 1], [], []>} : vector<16x32xf32>, vector<32x32xf32>, vector<16x32xf32> -> vector<16x32xf32>
    %c1_292 = arith.constant 1 : index
    %c0_293 = arith.constant 0 : index
    %c0_294 = arith.constant 0 : index
    %809 = vector.load %arg17[%c1_292, %c0_293, %c0_294] : memref<2x1x32xf32, #tpu.memory_space<vmem>>, vector<1x1x32xf32>
    %810 = vector.shape_cast %809 : vector<1x1x32xf32> to vector<1x32xf32>
    %811 = vector.broadcast %810 : vector<1x32xf32> to vector<16x32xf32>
    %812 = arith.addf %808, %811 : vector<16x32xf32>
    %813 = arith.addf %648, %812 : vector<16x32xf32>
    %814 = vector.extract_strided_slice %454 {offsets = [1, 0], sizes = [1, 32], strides = [1, 1]} : vector<3x32xf32> to vector<1x32xf32>
    %815 = vector.extract_strided_slice %456 {offsets = [1, 0], sizes = [1, 32], strides = [1, 1]} : vector<3x32xf32> to vector<1x32xf32>
    %cst_295 = arith.constant dense<0.000000e+00> : vector<16xf32>
    %816 = vector.multi_reduction <add>, %813, %cst_295 [1] : vector<16x32xf32> to vector<16xf32>
    %817 = vector.shape_cast %816 : vector<16xf32> to vector<16x1xf32>
    %cst_296 = arith.constant 3.200000e+01 : f32
    %818 = vector.broadcast %cst_296 : f32 to vector<16x1xf32>
    %819 = arith.divf %817, %818 : vector<16x1xf32>
    %820 = vector.broadcast %819 : vector<16x1xf32> to vector<16x32xf32>
    %821 = arith.subf %813, %820 : vector<16x32xf32>
    %822 = arith.mulf %821, %821 : vector<16x32xf32>
    %cst_297 = arith.constant dense<0.000000e+00> : vector<16xf32>
    %823 = vector.multi_reduction <add>, %822, %cst_297 [1] : vector<16x32xf32> to vector<16xf32>
    %824 = vector.shape_cast %823 : vector<16xf32> to vector<16x1xf32>
    %cst_298 = arith.constant 3.200000e+01 : f32
    %825 = vector.broadcast %cst_298 : f32 to vector<16x1xf32>
    %826 = arith.divf %824, %825 : vector<16x1xf32>
    %827 = vector.broadcast %819 : vector<16x1xf32> to vector<16x32xf32>
    %828 = arith.subf %813, %827 : vector<16x32xf32>
    %cst_299 = arith.constant 9.99999974E-6 : f32
    %829 = vector.broadcast %cst_299 : f32 to vector<16x1xf32>
    %830 = arith.addf %826, %829 : vector<16x1xf32>
    %831 = math.rsqrt %830 : vector<16x1xf32>
    %832 = vector.broadcast %831 : vector<16x1xf32> to vector<16x32xf32>
    %833 = arith.mulf %828, %832 : vector<16x32xf32>
    %834 = vector.broadcast %814 : vector<1x32xf32> to vector<16x32xf32>
    %835 = arith.mulf %833, %834 : vector<16x32xf32>
    %836 = vector.broadcast %815 : vector<1x32xf32> to vector<16x32xf32>
    %837 = arith.addf %835, %836 : vector<16x32xf32>
    %c1_300 = arith.constant 1 : index
    %c0_301 = arith.constant 0 : index
    %c0_302 = arith.constant 0 : index
    %838 = vector.load %arg18[%c1_300, %c0_301, %c0_302] : memref<2x32x32xf32, #tpu.memory_space<vmem>>, vector<1x32x32xf32>
    %839 = vector.shape_cast %838 : vector<1x32x32xf32> to vector<32x32xf32>
    %cst_303 = arith.constant dense<0.000000e+00> : vector<16x32xf32>
    %840 = tpu.matmul %837, %839, %cst_303 {dimension_numbers = #tpu.dot_dimension_numbers<[1], [0], [0], [1], [0, 0, 1, 1], [], []>} : vector<16x32xf32>, vector<32x32xf32>, vector<16x32xf32> -> vector<16x32xf32>
    %c1_304 = arith.constant 1 : index
    %c0_305 = arith.constant 0 : index
    %c0_306 = arith.constant 0 : index
    %841 = vector.load %arg19[%c1_304, %c0_305, %c0_306] : memref<2x1x32xf32, #tpu.memory_space<vmem>>, vector<1x1x32xf32>
    %842 = vector.shape_cast %841 : vector<1x1x32xf32> to vector<1x32xf32>
    %843 = vector.broadcast %842 : vector<1x32xf32> to vector<16x32xf32>
    %844 = arith.addf %840, %843 : vector<16x32xf32>
    %cst_307 = arith.constant 0.000000e+00 : f32
    %845 = vector.broadcast %cst_307 : f32 to vector<16x32xf32>
    %846 = arith.maximumf %844, %845 : vector<16x32xf32>
    %c1_308 = arith.constant 1 : index
    %c0_309 = arith.constant 0 : index
    %c0_310 = arith.constant 0 : index
    %847 = vector.load %arg20[%c1_308, %c0_309, %c0_310] : memref<2x32x32xf32, #tpu.memory_space<vmem>>, vector<1x32x32xf32>
    %848 = vector.shape_cast %847 : vector<1x32x32xf32> to vector<32x32xf32>
    %cst_311 = arith.constant dense<0.000000e+00> : vector<16x32xf32>
    %849 = tpu.matmul %846, %848, %cst_311 {dimension_numbers = #tpu.dot_dimension_numbers<[1], [0], [0], [1], [0, 0, 1, 1], [], []>} : vector<16x32xf32>, vector<32x32xf32>, vector<16x32xf32> -> vector<16x32xf32>
    %c1_312 = arith.constant 1 : index
    %c0_313 = arith.constant 0 : index
    %c0_314 = arith.constant 0 : index
    %850 = vector.load %arg21[%c1_312, %c0_313, %c0_314] : memref<2x1x32xf32, #tpu.memory_space<vmem>>, vector<1x1x32xf32>
    %851 = vector.shape_cast %850 : vector<1x1x32xf32> to vector<1x32xf32>
    %852 = vector.broadcast %851 : vector<1x32xf32> to vector<16x32xf32>
    %853 = arith.addf %849, %852 : vector<16x32xf32>
    %854 = arith.addf %837, %853 : vector<16x32xf32>
    %855 = vector.extract_strided_slice %454 {offsets = [2, 0], sizes = [1, 32], strides = [1, 1]} : vector<3x32xf32> to vector<1x32xf32>
    %856 = vector.extract_strided_slice %456 {offsets = [2, 0], sizes = [1, 32], strides = [1, 1]} : vector<3x32xf32> to vector<1x32xf32>
    %cst_315 = arith.constant dense<0.000000e+00> : vector<16xf32>
    %857 = vector.multi_reduction <add>, %854, %cst_315 [1] : vector<16x32xf32> to vector<16xf32>
    %858 = vector.shape_cast %857 : vector<16xf32> to vector<16x1xf32>
    %cst_316 = arith.constant 3.200000e+01 : f32
    %859 = vector.broadcast %cst_316 : f32 to vector<16x1xf32>
    %860 = arith.divf %858, %859 : vector<16x1xf32>
    %861 = vector.broadcast %860 : vector<16x1xf32> to vector<16x32xf32>
    %862 = arith.subf %854, %861 : vector<16x32xf32>
    %863 = arith.mulf %862, %862 : vector<16x32xf32>
    %cst_317 = arith.constant dense<0.000000e+00> : vector<16xf32>
    %864 = vector.multi_reduction <add>, %863, %cst_317 [1] : vector<16x32xf32> to vector<16xf32>
    %865 = vector.shape_cast %864 : vector<16xf32> to vector<16x1xf32>
    %cst_318 = arith.constant 3.200000e+01 : f32
    %866 = vector.broadcast %cst_318 : f32 to vector<16x1xf32>
    %867 = arith.divf %865, %866 : vector<16x1xf32>
    %868 = vector.broadcast %860 : vector<16x1xf32> to vector<16x32xf32>
    %869 = arith.subf %854, %868 : vector<16x32xf32>
    %cst_319 = arith.constant 9.99999974E-6 : f32
    %870 = vector.broadcast %cst_319 : f32 to vector<16x1xf32>
    %871 = arith.addf %867, %870 : vector<16x1xf32>
    %872 = math.rsqrt %871 : vector<16x1xf32>
    %873 = vector.broadcast %872 : vector<16x1xf32> to vector<16x32xf32>
    %874 = arith.mulf %869, %873 : vector<16x32xf32>
    %875 = vector.broadcast %855 : vector<1x32xf32> to vector<16x32xf32>
    %876 = arith.mulf %874, %875 : vector<16x32xf32>
    %877 = vector.broadcast %856 : vector<1x32xf32> to vector<16x32xf32>
    %878 = arith.addf %876, %877 : vector<16x32xf32>
    %c0_320 = arith.constant 0 : index
    %c0_321 = arith.constant 0 : index
    %879 = vector.load %arg24[%c0_320, %c0_321] : memref<1x32xf32, #tpu.memory_space<vmem>>, vector<1x32xf32>
    %c0_322 = arith.constant 0 : index
    %c0_323 = arith.constant 0 : index
    %880 = vector.load %arg25[%c0_322, %c0_323] : memref<1x32xf32, #tpu.memory_space<vmem>>, vector<1x32xf32>
    %cst_324 = arith.constant dense<0.000000e+00> : vector<16xf32>
    %881 = vector.multi_reduction <add>, %878, %cst_324 [1] : vector<16x32xf32> to vector<16xf32>
    %882 = vector.shape_cast %881 : vector<16xf32> to vector<16x1xf32>
    %cst_325 = arith.constant 3.200000e+01 : f32
    %883 = vector.broadcast %cst_325 : f32 to vector<16x1xf32>
    %884 = arith.divf %882, %883 : vector<16x1xf32>
    %885 = vector.broadcast %884 : vector<16x1xf32> to vector<16x32xf32>
    %886 = arith.subf %878, %885 : vector<16x32xf32>
    %887 = arith.mulf %886, %886 : vector<16x32xf32>
    %cst_326 = arith.constant dense<0.000000e+00> : vector<16xf32>
    %888 = vector.multi_reduction <add>, %887, %cst_326 [1] : vector<16x32xf32> to vector<16xf32>
    %889 = vector.shape_cast %888 : vector<16xf32> to vector<16x1xf32>
    %cst_327 = arith.constant 3.200000e+01 : f32
    %890 = vector.broadcast %cst_327 : f32 to vector<16x1xf32>
    %891 = arith.divf %889, %890 : vector<16x1xf32>
    %892 = vector.broadcast %884 : vector<16x1xf32> to vector<16x32xf32>
    %893 = arith.subf %878, %892 : vector<16x32xf32>
    %cst_328 = arith.constant 9.99999974E-6 : f32
    %894 = vector.broadcast %cst_328 : f32 to vector<16x1xf32>
    %895 = arith.addf %891, %894 : vector<16x1xf32>
    %896 = math.rsqrt %895 : vector<16x1xf32>
    %897 = vector.broadcast %896 : vector<16x1xf32> to vector<16x32xf32>
    %898 = arith.mulf %893, %897 : vector<16x32xf32>
    %899 = vector.broadcast %879 : vector<1x32xf32> to vector<16x32xf32>
    %900 = arith.mulf %898, %899 : vector<16x32xf32>
    %901 = vector.broadcast %880 : vector<1x32xf32> to vector<16x32xf32>
    %902 = arith.addf %900, %901 : vector<16x32xf32>
    %c0_329 = arith.constant 0 : index
    %c0_330 = arith.constant 0 : index
    %903 = vector.load %arg26[%c0_329, %c0_330] : memref<32x128xf32, #tpu.memory_space<vmem>>, vector<32x128xf32>
    %cst_331 = arith.constant dense<0.000000e+00> : vector<16x128xf32>
    %904 = tpu.matmul %902, %903, %cst_331 {dimension_numbers = #tpu.dot_dimension_numbers<[1], [0], [0], [1], [0, 0, 1, 1], [], []>} : vector<16x32xf32>, vector<32x128xf32>, vector<16x128xf32> -> vector<16x128xf32>
    %c0_332 = arith.constant 0 : index
    %c0_333 = arith.constant 0 : index
    %905 = vector.load %arg27[%c0_332, %c0_333] : memref<1x128xf32, #tpu.memory_space<vmem>>, vector<1x128xf32>
    %906 = vector.broadcast %905 : vector<1x128xf32> to vector<16x128xf32>
    %907 = arith.addf %904, %906 : vector<16x128xf32>
    %c0_334 = arith.constant 0 : index
    %c0_335 = arith.constant 0 : index
    %908 = vector.load %arg28[%c0_334, %c0_335] : memref<16x128xf32, #tpu.memory_space<vmem>>, vector<16x128xf32>
    tpu.vector_store %arg28[%c0_334, %c0_335], %907 {strides = array<i32>} : memref<16x128xf32, #tpu.memory_space<vmem>>, vector<16x128xf32>,
    return
  }
}

</mosaic_0001>

<bundles_post_ra>
// kernel: captioning_student_forward.1
= control target key start
LH: loop header
LB: loop body
LE: loop exit
PB: predicated region body
PF: predicated region fallthrough
CT: control target
= control target key end

     0   :  { %v9407_v0 = vmov 0   ;;  %vm108_vm0 = vcmask 523264   ;;  %v9408_v40 = vmov 0.0   ;;  %v320_v47 = vlaneseq  ;;  %s10916_s30 = smov 120   ;;  %s10902_s29 = smov 64   ;;  %s10856_s5 = inlined_call_operand.vmem [shape: s32[16,1], index: 5, kind: input, shape index: {}]   ;;  %s10857_s1 = inlined_call_operand.vmem [shape: f32[64,64], index: 1, kind: input, shape index: {}]   ;;  %s10858_s0 = inlined_call_operand.vmem [shape: f32[32,64], index: 0, kind: input, shape index: {}]   ;;  %s10859_s3 = inlined_call_operand.vmem [shape: f32[64,32], index: 3, kind: input, shape index: {}]   ;;  %s10860_s6 = inlined_call_operand.vmem [shape: f32[64,32], index: 6, kind: input, shape index: {}]   ;;  %s10861_s8 = inlined_call_operand.vmem [shape: f32[2,32,96], index: 8, kind: input, shape index: {}]   ;;  %s10862_s2 = inlined_call_operand.vmem [shape: f32[1,64], index: 2, kind: input, shape index: {}]   ;;  %s10863_s7 = inlined_call_operand.vmem [shape: f32[16,32], index: 7, kind: input, shape index: {}]   ;;  %s10864_s9 = inlined_call_operand.vmem [shape: f32[2,1,96], index: 9, kind: input, shape index: {}]   ;;  %s10865_s10 = inlined_call_operand.vmem [shape: f32[2,32,32], index: 10, kind: input, shape index: {}]   ;;  %s10866_s14 = inlined_call_operand.vmem [shape: f32[2,32,64], index: 14, kind: input, shape index: {}]   ;;  %s10867_s4 = inlined_call_operand.vmem [shape: f32[1,32], index: 4, kind: input, shape index: {}]   ;;  %s10868_s11 = inlined_call_operand.vmem [shape: f32[2,1,32], index: 11, kind: input, shape index: {}]   ;;  %s10869_s15 = inlined_call_operand.vmem [shape: f32[2,1,64], index: 15, kind: input, shape index: {}]   ;;  %s10870_s12 = inlined_call_operand.vmem [shape: f32[2,32,32], index: 12, kind: input, shape index: {}]   ;;  %s10871_s22 = inlined_call_operand.vmem [shape: f32[2,3,32], index: 22, kind: input, shape index: {}]   ;;  %s10872_s23 = inlined_call_operand.vmem [shape: f32[2,3,32], index: 23, kind: input, shape index: {}]   ;;  %s10873_s13 = inlined_call_operand.vmem [shape: f32[2,1,32], index: 13, kind: input, shape index: {}]   ;;  %s10874_s16 = inlined_call_operand.vmem [shape: f32[2,32,32], index: 16, kind: input, shape index: {}]   ;;  %s10875_s17 = inlined_call_operand.vmem [shape: f32[2,1,32], index: 17, kind: input, shape index: {}]   ;;  %s10876_s18 = inlined_call_operand.vmem [shape: f32[2,32,32], index: 18, kind: input, shape index: {}]   ;;  %s10877_s20 = inlined_call_operand.vmem [shape: f32[2,32,32], index: 20, kind: input, shape index: {}]   ;;  %s10878_s19 = inlined_call_operand.vmem [shape: f32[2,1,32], index: 19, kind: input, shape index: {}]   ;;  %s10879_s21 = inlined_call_operand.vmem [shape: f32[2,1,32], index: 21, kind: input, shape index: {}]   ;;  %s10880_s26 = inlined_call_operand.vmem [shape: f32[32,128], index: 26, kind: input, shape index: {}]   ;;  %s10881_s24 = inlined_call_operand.vmem [shape: f32[1,32], index: 24, kind: input, shape index: {}]   ;;  %s10882_s25 = inlined_call_operand.vmem [shape: f32[1,32], index: 25, kind: input, shape index: {}]   ;;  %s10883_s27 = inlined_call_operand.vmem [shape: f32[1,128], index: 27, kind: input, shape index: {}]   ;;  %s10884_s28 = inlined_call_operand.vmem [shape: f32[16,128], index: 28, kind: output, shape index: {}]  }
   0x1   :  { %10929 = sst [smem:[#allocation2_spill]] %s10856_s5  ;;  %9110 = vset.pattern.permute.xlu0 %v9407_v0  ;;  %vm442_vm3 = vcmask 261120   ;;  %vm9409_vm4 = vmmov 0   ;;  %vm527_vm5 = vcmask 64512   ;;  %vm1205_vm7 = vcmask 130048  }
   0x2   :  { %10930 = sst [smem:[#allocation3_spill]] %s10857_s1  ;;  %v9672_v48 = vand.u32 127, %v320_v47  ;;  %vm1207_vm8 = vcmask 195584   ;;  %vm9990_vm9 = vmpackc.low %vm527_vm5, %vm527_vm5 }
   0x3   :  { %10931 = sst [smem:[#allocation4_spill]] %s10858_s0  ;;  %s10951_s5 = sld [smem:[#allocation3_spill]] }
   0x4   :  { %10932 = sst [smem:[#allocation5_spill]] %s10859_s3  ;;  %s10952_s0 = sld [smem:[#allocation4_spill]] }
   0x5   :  { %10933 = sst [smem:[#allocation6_spill]] %s10860_s6  ;;  %s10953_s3 = sld [smem:[#allocation5_spill]] }
   0x6   :  { %10934 = sst [smem:[#allocation7_spill]] %s10861_s8  ;;  %s10920_s8 = smov 16  }
   0x7   :  { %10935 = sst [smem:[#allocation8_spill]] %s10862_s2  ;;  %s10955_s6 = sld [smem:[#allocation7_spill]] }
   0x8   :  { %10936 = sst [smem:[#allocation9_spill]] %s10863_s7  ;;  %s10956_s2 = sld [smem:[#allocation8_spill]] }
   0x9   :  { %10937 = sst [smem:[#allocation10_spill]] %s10864_s9  ;;  %v93_v2 = vld [vmem:[%s10951_s5] sm:$0xff]  ;;  %v94_v3 = vld [vmem:[%s10951_s5 + $0x8] sm:$0xff]  ;;  %v95_v4 = vld [vmem:[%s10951_s5 + $0x10] sm:$0xff]  ;;  %s10957_s1 = sld [smem:[#allocation9_spill]] }
   0xa   :  { %10938 = sst [smem:[#allocation11_spill]] %s10865_s10  ;;  %s10950_s10 = sld [smem:[#allocation2_spill]]  ;;  %v96_v5 = vld [vmem:[%s10951_s5 + $0x18] sm:$0xff]  ;;  %v8812_v7 = vpack.c.bf16 %v94_v3, %v93_v2  ;;  %v97_v9 = vld [vmem:[%s10951_s5 + $0x20] sm:$0xff]  ;;  %v98_v10 = vld [vmem:[%s10951_s5 + $0x28] sm:$0xff] }
   0xb   :  { %10939 = sst [smem:[#allocation12_spill]] %s10866_s14  ;;  %v8816_v8 = vpack.c.bf16 %v96_v5, %v95_v4  ;;  %v89_v11 = vld [vmem:[%s10952_s0] sm:$0xff]  ;;  %v8820_v12 = vpack.c.bf16 %v98_v10, %v97_v9  ;;  %v99_v13 = vld [vmem:[%s10951_s5 + $0x30] sm:$0xff]  ;;  %v100_v14 = vld [vmem:[%s10951_s5 + $0x38] sm:$0xff]  ;;  %s10914_s14 = smov 112  }
   0xc   :  { %10940 = sst [smem:[#allocation13_spill]] %s10867_s4  ;;  %8813 = vmatprep.subr.bf16.mxu0 %v8812_v7  ;;  %8210 = vmatprep.mubr.msk.f32.mxu0 %vm108_vm0, %v89_v11  ;;  %v206_v15 = vld [vmem:[%s10953_s3] sm:$0xff]  ;;  %v207_v16 = vld [vmem:[%s10953_s3 + $0x8] sm:$0xff]  ;;  %v208_v17 = vld [vmem:[%s10953_s3 + $0x10] sm:$0xff]  ;;  %v8824_v20 = vpack.c.bf16 %v100_v14, %v99_v13  ;;  %s10906_s5 = smov 88  }
   0xd   :  { %10941 = sst [smem:[#allocation14_spill]] %s10868_s11  ;;  %8815 = vmatpush3.bf16.msra.mxu0 %v8812_v7  ;;  %v8828_v18 = vpack.c.bf16 %v207_v16, %v206_v15  ;;  %v209_v19 = vld [vmem:[%s10953_s3 + $0x18] sm:$0xff]  ;;  %v210_v22 = vld [vmem:[%s10953_s3 + $0x20] sm:$0xff]  ;;  %v211_v23 = vld [vmem:[%s10953_s3 + $0x28] sm:$0xff]  ;;  %s10904_s4 = smov 72  }
   0xe   :  { %10942 = sst [smem:[#allocation15_spill]] %s10871_s22  ;;  %8817 = vmatprep.subr.bf16.mxu0 %v8816_v8  ;;  %v8832_v21 = vpack.c.bf16 %v209_v19, %v208_v17  ;;  %s10954_s11 = sld [smem:[#allocation6_spill]]  ;;  %v8836_v26 = vpack.c.bf16 %v211_v23, %v210_v22  ;;  %v90_v30 = vld [vmem:[%s10952_s0 + $0x8] sm:$0xff]  ;;  %v91_v32 = vld [vmem:[%s10952_s0 + $0x10] sm:$0xff]  ;;  %v92_v35 = vld [vmem:[%s10952_s0 + $0x18] sm:$0xff] }
   0xf   :  { %10943 = sst [smem:[#allocation16_spill]] %s10872_s23  ;;  %8829 = vmatprep.subr.bf16.mxu1 %v8828_v18  ;;  %v212_v41 = vld [vmem:[%s10953_s3 + $0x30] sm:$0xff]  ;;  %v213_v42 = vld [vmem:[%s10953_s3 + $0x38] sm:$0xff]  ;;  %v431_v44 = vld [vmem:[%s10955_s6] sm:$0xff]  ;;  %s10958_s3 = sld [smem:[#allocation10_spill]] }
  0x10   :  { %10944 = sst [smem:[#allocation17_spill]] %s10873_s13  ;;  %v318_v1 = vld [vmem:[%s10950_s10] sm:$0xff]  ;;  %v319_v6 = vld [vmem:[%s10950_s10 + $0x8] sm:$0xff]  ;;  %8831 = vmatpush3.bf16.msra.mxu1 %v8828_v18  ;;  %v8840_v43 = vpack.c.bf16 %v213_v42, %v212_v41  ;;  %v433_v55 = vld [vmem:[%s10955_s6 + $0x10] sm:$0xff]  ;;  %s10908_s10 = smov 104  }
  0x11   :  { %10945 = sst [smem:[#allocation18_spill]] %s10880_s26  ;;  %323 = vperm.xlu0 %9110, %v318_v1   ;;  %8819 = vmatpush3.bf16.msra.mxu0 %v8816_v8  ;;  %v432_v45 = vld [vmem:[%s10955_s6 + $0x8] sm:$0xff]  ;;  %v7692_v53 = vld [vmem:[%s10956_s2] ss:$0 sm:$0xff]  ;;  %v434_v56 = vld [vmem:[%s10955_s6 + $0x18] sm:$0xff]  ;;  %s10912_s2 = smov 96  }
  0x12   :  { %10946 = sst [smem:[#allocation19_spill]] %s10881_s24  ;;  %8821 = vmatprep.subr.bf16.mxu0 %v8820_v12  ;;  %8833 = vmatprep.subr.bf16.mxu1 %v8832_v21  ;;  %v8860_v46 = vpack.c.bf16 %v432_v45, %v431_v44  ;;  %v8864_v60 = vpack.c.bf16 %v434_v56, %v433_v55  ;;  %v342_v1 = vld [vmem:[%s10957_s1] sm:$0xff]  ;;  %v343_v2 = vld [vmem:[%s10957_s1 + $0x8] sm:$0xff]  ;;  %s10910_s0 = smov 80  }
  0x13   :  { %10947 = sst [smem:[#allocation20_spill]] %s10882_s25  ;;  %s10900_s1 = smov 56  }
  0x14   :  { %10948 = sst [smem:[#allocation21_spill]] %s10883_s27  ;;  %v334_v24 = vld [vmem:[%s10954_s11] sm:$0xff]  ;;  %v335_v25 = vld [vmem:[%s10954_s11 + $0x8] sm:$0xff]  ;;  %v336_v28 = vld [vmem:[%s10954_s11 + $0x10] sm:$0xff]  ;;  %8835 = vmatpush3.bf16.msra.mxu1 %v8832_v21  ;;  %s10896_s7 = smov 48  }
  0x15   :  { %10949 = sst [smem:[#allocation22_spill]] %s10884_s28  ;;  %326 = vperm.xlu0 %9110, %v319_v6   ;;  %8823 = vmatpush3.bf16.msra.mxu0 %v8820_v12  ;;  %v8844_v27 = vpack.c.bf16 %v335_v25, %v334_v24  ;;  %v337_v29 = vld [vmem:[%s10954_s11 + $0x18] sm:$0xff]  ;;  %v338_v33 = vld [vmem:[%s10954_s11 + $0x20] sm:$0xff]  ;;  %v339_v34 = vld [vmem:[%s10954_s11 + $0x28] sm:$0xff]  ;;  %s10922_s9 = smov 8  }
  0x16   :  { %8825 = vmatprep.subr.bf16.mxu0 %v8824_v20  ;;  %8837 = vmatprep.subr.bf16.mxu1 %v8836_v26  ;;  %v8848_v31 = vpack.c.bf16 %v337_v29, %v336_v28  ;;  %v8852_v36 = vpack.c.bf16 %v339_v34, %v338_v33  ;;  %v340_v37 = vld [vmem:[%s10954_s11 + $0x30] sm:$0xff]  ;;  %v341_v38 = vld [vmem:[%s10954_s11 + $0x38] sm:$0xff]  ;;  %v7706_v11 = vld [vmem:[%s10958_s3] ss:$0 sm:$0xff]  ;;  %s10898_s11 = smov 40   ;;  %s10976_s28 = smov 56  }
  0x17   :  { %v8856_v39 = vpack.c.bf16 %v341_v38, %v340_v37 }
  0x18   :  { %8839 = vmatpush3.bf16.msra.mxu1 %v8836_v26 }
  0x19   :  { %8827 = vmatpush3.bf16.msra.mxu0 %v8824_v20  ;;  %8841 = vmatprep.subr.bf16.mxu1 %v8840_v43 }
  0x1a   :  { %8845 = vmatprep.subr.bf16.mxu0 %v8844_v27 }
  0x1c   :  { %8211 = vmatmul.mubr.msk.f32.vlgmr.msra.gmra.mrb[0].mxu0 %vm108_vm0, %v90_v30  ;;  %8843 = vmatpush3.bf16.msra.mxu1 %v8840_v43 }
  0x1d   :  { %8847 = vmatpush3.bf16.msra.mxu0 %v8844_v27  ;;  %8213 = vmatprep.mubr.msk.f32.mxu0 %vm108_vm0, %v91_v32 }
  0x1e   :  { %8849 = vmatprep.subr.bf16.mxu0 %v8848_v31  ;;  %8861 = vmatprep.subr.bf16.mxu1 %v8860_v46 }
  0x20   :  { %8214 = vmatmul.mubr.msk.f32.gmra.mrb[2].mxu0 %vm108_vm0, %v92_v35 }
  0x21   :  { %8851 = vmatpush3.bf16.msra.mxu0 %v8848_v31  ;;  %v9800_v31 = vshrl.u32 %v320_v47, 7 }
  0x22   :  { %8853 = vmatprep.subr.bf16.mxu0 %v8852_v36 }
  0x23   :  { %vm427_vm6 = vcmp.gt.s32.totalorder %v9672_v48, %v9800_v31 }
  0x24   :  { %v9805_v32 = vsel %vm427_vm6, -1e+09, %v9408_v40 }
  0x25   :  { %8855 = vmatpush3.bf16.msra.mxu0 %v8852_v36 }
  0x26   :  { %8857 = vmatprep.subr.bf16.mxu0 %v8856_v39 }
  0x29   :  { %8859 = vmatpush3.bf16.msra.mxu0 %v8856_v39 }
  0x2a   :  { %8278 = vmatprep.subr.mxu0 %v9408_v40 }
  0x90   :  { %v324_v49 = vpop.permute.xlu0 %323 }
  0x91   :  { %vm328_vm1 = vcmp.eq.s32.totalorder %v9672_v48, %v324_v49 }
  0x92   :  { %v7702_v50 = vsel %vm328_vm1, 1.0, %v9408_v40 }
  0x93   :  { %8254 = vmatprep.mubr.msk.f32.mxu0 %vm108_vm0, %v7702_v50 }
  0x94   :  { %v327_v51 = vpop.permute.xlu0 %326 }
  0x95   :  { %vm329_vm2 = vcmp.eq.s32.totalorder %v9672_v48, %v327_v51 }
  0x96   :  { %v7703_v52 = vsel %vm329_vm2, 1.0, %v9408_v40 }
  0x97   :  { %8255 = vmatmul.mubr.msk.f32.vlgmr.msra.gmra.mrb[4].mxu0 %vm108_vm0, %v7703_v52 }
  0x98   :  { %8280 = vmatprep.mubr.msk.f32.mxu0 %vm9409_vm4, %v9408_v40 }
  0xef   :  { %v8212_v54 = vpop.f32.mrb[0].mxu0 }
  0xf0   :  { %v193_v57 = vadd.f32 %v8212_v54, %v7692_v53  ;;  %v187_v58 = vpop.f32.mrb[1].mxu0 }
  0xf1   :  { %v188_v59 = vadd.f32 %v7692_v53, %v187_v58 }
  0xf3   :  { %8232 = vmatprep.mubr.msk.f32.mxu1 %vm108_vm0, %v188_v59  ;;  %v8215_v61 = vpop.f32.mrb[2].mxu0 }
  0xf4   :  { %8233 = vmatmul.mubr.msk.f32.vlgmr.msra.gmra.mrb[0].mxu1 %vm108_vm0, %v193_v57  ;;  %v203_v62 = vadd.f32 %v8215_v61, %v7692_v53  ;;  %v197_v63 = vpop.f32.mrb[3].mxu0 }
  0xf5   :  { %v198_v0 = vadd.f32 %v7692_v53, %v197_v63  ;;  %8863 = vmatpush3.bf16.msra.mxu1 %v8860_v46 }
  0xf6   :  { %8865 = vmatprep.subr.bf16.mxu1 %v8864_v60 }
  0xf7   :  { %8235 = vmatprep.mubr.msk.f32.mxu1 %vm108_vm0, %v198_v0 }
  0xf8   :  { %8236 = vmatmul.mubr.msk.f32.gmra.mrb[2].mxu1 %vm108_vm0, %v203_v62 }
  0xf9   :  { %8867 = vmatpush3.bf16.msra.mxu1 %v8864_v60 }
  0xfa   :  { %8268 = vmatprep.subr.mxu1 %v9408_v40 }
 0x16a   :  { %v8256_v3 = vpop.f32.mrb[4].mxu0 }
 0x16b   :  { %v416_v4 = vpop.f32.mrb[5].mxu0  ;;  %v9702_v6 = vadd.f32 %v8256_v3, %v343_v2 }
 0x16c   :  { %v9700_v5 = vadd.f32 %v416_v4, %v342_v1 }
 0x16e   :  { %8265 = vmatprep.mubr.msk.f32.mxu1 %vm442_vm3, %v9700_v5 }
 0x16f   :  { %8266 = vmatmul.mubr.msk.f32.vlgmr.msra.gmra.mrb[4].mxu1 %vm442_vm3, %v9702_v6 }
 0x170   :  { %8270 = vmatprep.mubr.msk.f32.mxu1 %vm9409_vm4, %v9408_v40 }
 0x1c7   :  { %v9708_v7 = vpop.f32.mrb[0].mxu1 }
 0x1c8   :  { %v9710_v8 = vpop.f32.mrb[1].mxu1 }
 0x1cb   :  { %v9712_v9 = vpop.f32.mrb[2].mxu1 }
 0x1cc   :  { %v9714_v10 = vpop.f32.mrb[3].mxu1 }
 0x242   :  { %v8267_v12 = vpop.f32.mrb[4].mxu1 }
 0x243   :  { %v515_v13 = vpop.f32.mrb[5].mxu1  ;;  %v9737_v15 = vadd.f32 %v8267_v12, %v7706_v11 }
 0x244   :  { %v9723_v14 = vadd.f32 %v7706_v11, %v515_v13 }
 0x246   :  { %691 = vrot.lane.b32.xlu0 %v9723_v14, %s10916_s30  ;;  %525 = vrot.lane.b32.xlu1 %v9723_v14, %s10912_s2 }
 0x24a   :  { %858 = vrot.lane.b32.xlu0 %v9723_v14, %s10914_s14  ;;  %693 = vrot.lane.b32.xlu1 %v9723_v14, %s10906_s5 }
 0x24e   :  { %1025 = vrot.lane.b32.xlu0 %v9723_v14, %s10908_s10  ;;  %860 = vrot.lane.b32.xlu1 %v9723_v14, %s10910_s0 }
 0x252   :  { %1377 = vrot.lane.b32.xlu0 %v9737_v15, %s10906_s5  ;;  %1027 = vrot.lane.b32.xlu1 %v9723_v14, %s10904_s4  ;;  %s10961_s5 = sld [smem:[#allocation13_spill]] }
 0x256   :  { %1544 = vrot.lane.b32.xlu0 %v9737_v15, %s10910_s0  ;;  %1210 = vrot.lane.b32.xlu1 %v9737_v15, %s10912_s2  ;;  %s10968_s0 = smov 80   ;;  %s10974_s2 = smov 24  }
 0x25a   :  { %1711 = vrot.lane.b32.xlu0 %v9737_v15, %s10904_s4  ;;  %1375 = vrot.lane.b32.xlu1 %v9737_v15, %s10916_s30  ;;  %s10960_s30 = sld [smem:[#allocation12_spill]]  ;;  %s10973_s4 = smov 16  }
 0x25e   :  { %615 = vrot.lane.b32.xlu0 %v9723_v14, %s10902_s29  ;;  %1542 = vrot.lane.b32.xlu1 %v9737_v15, %s10914_s14  ;;  %s10962_s14 = sld [smem:[#allocation14_spill]] }
 0x262   :  { %1709 = vrot.lane.b32.xlu1 %v9737_v15, %s10908_s10  ;;  %s10967_s10 = smov 96  }
 0x266   :  { %782 = vrot.lane.b32.xlu1 %v9723_v14, %s10900_s1 }
 0x2b8   :  { %v692_v16 = vpop.permute.xlu0 %691  ;;  %v526_v17 = vpop.permute.xlu1 %525 }
 0x2b9   :  { %8269 = vmatpush3.xpose.msk.msra.mxu1 %vm527_vm5, %v526_v17 }
 0x2ba   :  { %8273 = vmatprep.subr.mxu1 %v9408_v40 }
 0x2bc   :  { %v859_v18 = vpop.permute.xlu0 %858  ;;  %8271 = vmatmul.mubr.msk.f32.vlgmr.msra.gmra.mrb[6].mxu1 %vm527_vm5, %v9723_v14  ;;  %v694_v19 = vpop.permute.xlu1 %693 }
 0x2bd   :  { %8279 = vmatpush3.xpose.msk.msra.mxu0 %vm527_vm5, %v694_v19  ;;  %8275 = vmatprep.mubr.msk.f32.mxu1 %vm9409_vm4, %v9408_v40 }
 0x2be   :  { %8288 = vmatprep.subr.mxu0 %v9408_v40 }
 0x2c0   :  { %v1026_v20 = vpop.permute.xlu0 %1025  ;;  %8281 = vmatmul.mubr.msk.f32.vlgmr.msra.gmra.mrb[6].mxu0 %vm527_vm5, %v692_v16  ;;  %v861_v21 = vpop.permute.xlu1 %860 }
 0x2c1   :  { %8289 = vmatpush3.xpose.msk.msra.mxu0 %vm527_vm5, %v861_v21  ;;  %8290 = vmatprep.mubr.msk.f32.mxu0 %vm9409_vm4, %v9408_v40 }
 0x2c2   :  { %8298 = vmatprep.subr.mxu0 %v9408_v40 }
 0x2c4   :  { %v1378_v22 = vpop.permute.xlu0 %1377  ;;  %8291 = vmatmul.mubr.msk.f32.vlgmr.msra.gmra.mrb[8].mxu0 %vm527_vm5, %v859_v18  ;;  %v1028_v23 = vpop.permute.xlu1 %1027 }
 0x2c5   :  { %8299 = vmatpush3.xpose.msk.msra.mxu0 %vm527_vm5, %v1028_v23  ;;  %8300 = vmatprep.mubr.msk.f32.mxu0 %vm9409_vm4, %v9408_v40 }
 0x2c6   :  { %8308 = vmatprep.subr.mxu0 %v9408_v40 }
 0x2c8   :  { %v1545_v24 = vpop.permute.xlu0 %1544  ;;  %8301 = vmatmul.mubr.msk.f32.vlgmr.msra.gmra.mrb[10].mxu0 %vm527_vm5, %v1026_v20  ;;  %v1211_v25 = vpop.permute.xlu1 %1210 }
 0x2c9   :  { %8309 = vmatpush3.xpose.msk.msra.mxu0 %vm527_vm5, %v1211_v25  ;;  %8310 = vmatprep.mubr.msk.f32.mxu0 %vm9409_vm4, %v9408_v40 }
 0x2ca   :  { %8318 = vmatprep.subr.mxu0 %v9408_v40 }
 0x2cc   :  { %v1712_v26 = vpop.permute.xlu0 %1711  ;;  %8311 = vmatmul.mubr.msk.f32.vlgmr.msra.gmra.mrb[12].mxu0 %vm527_vm5, %v9737_v15  ;;  %v1376_v27 = vpop.permute.xlu1 %1375 }
 0x2cd   :  { %8319 = vmatpush3.xpose.msk.msra.mxu0 %vm527_vm5, %v1378_v22  ;;  %8320 = vmatprep.mubr.msk.f32.mxu0 %vm9409_vm4, %v9408_v40 }
 0x2ce   :  { %8328 = vmatprep.subr.mxu0 %v9408_v40 }
 0x2d0   :  { %v616_v28 = vpop.permute.xlu0 %615  ;;  %8321 = vmatmul.mubr.msk.f32.vlgmr.msra.gmra.mrb[14].mxu0 %vm527_vm5, %v1376_v27  ;;  %v1543_v29 = vpop.permute.xlu1 %1542 }
 0x2d1   :  { %8274 = vmatpush3.msra.mxu1 %v616_v28  ;;  %8329 = vmatpush3.xpose.msk.msra.mxu0 %vm527_vm5, %v1545_v24 }
 0x2d2   :  { %8330 = vmatprep.mubr.msk.f32.mxu0 %vm9409_vm4, %v9408_v40  ;;  %8338 = vmatprep.subr.mxu0 %v9408_v40 }
 0x2d3   :  { %8283 = vmatprep.subr.mxu1 %v9408_v40 }
 0x2d4   :  { %8331 = vmatmul.mubr.msk.f32.vlgmr.msra.gmra.mrb[16].mxu0 %vm527_vm5, %v1543_v29  ;;  %v1710_v30 = vpop.permute.xlu1 %1709 }
 0x2d5   :  { %8339 = vmatpush3.xpose.msk.msra.mxu0 %vm527_vm5, %v1712_v26  ;;  %8340 = vmatprep.mubr.msk.f32.mxu0 %vm9409_vm4, %v9408_v40 }
 0x2d8   :  { %8341 = vmatmul.mubr.msk.f32.vlgmr.msra.gmra.mrb[18].mxu0 %vm527_vm5, %v1710_v30  ;;  %v9827_v18 = vpop.permute.xlu1 %782 }
 0x38f   :  { %v598_v33 = vpop.f32.mrb[6].mxu1 }
 0x390   :  { %v602_v34 = vmul.f32 0.35355338, %v598_v33  ;;  %v8272_v35 = vpop.f32.mrb[7].mxu1 }
 0x392   :  { %v603_v36 = vadd.f32 %v602_v34, %v9805_v32 }
 0x393   :  { %v765_v37 = vpop.f32.mrb[6].mxu0 }
 0x394   :  { %v769_v38 = vmul.f32 0.35355338, %v765_v37  ;;  %v8282_v39 = vpop.f32.mrb[7].mxu0  ;;  %v604_v41 = vsel %vm527_vm5, %v603_v36, -inf }
 0x395   :  { %605 = vmax.xlane.f32.xlu0 %v604_v41 }
 0x396   :  { %v770_v42 = vadd.f32 %v769_v38, %v9805_v32 }
 0x397   :  { %v932_v43 = vpop.f32.mrb[8].mxu0 }
 0x398   :  { %v936_v44 = vmul.f32 0.35355338, %v932_v43  ;;  %v8292_v45 = vpop.f32.mrb[9].mxu0  ;;  %v771_v46 = vsel %vm527_vm5, %v770_v42, -inf }
 0x399   :  { %772 = vmax.xlane.f32.xlu1 %v771_v46 }
 0x39a   :  { %v937_v47 = vadd.f32 %v936_v44, %v9805_v32 }
 0x39b   :  { %v1099_v48 = vpop.f32.mrb[10].mxu0 }
 0x39c   :  { %v1103_v49 = vmul.f32 0.35355338, %v1099_v48  ;;  %v8302_v50 = vpop.f32.mrb[11].mxu0  ;;  %v938_v51 = vsel %vm527_vm5, %v937_v47, -inf }
 0x39d   :  { %939 = vmax.xlane.f32.xlu0 %v938_v51 }
 0x39e   :  { %v1104_v52 = vadd.f32 %v1103_v49, %v9805_v32 }
 0x39f   :  { %v1282_v53 = vpop.f32.mrb[12].mxu0 }
 0x3a0   :  { %v1286_v54 = vmul.f32 0.35355338, %v1282_v53  ;;  %v8312_v55 = vpop.f32.mrb[13].mxu0  ;;  %v1105_v56 = vsel %vm527_vm5, %v1104_v52, -inf }
 0x3a1   :  { %1106 = vmax.xlane.f32.xlu0 %v1105_v56 }
 0x3a2   :  { %v1287_v57 = vadd.f32 %v1286_v54, %v9805_v32 }
 0x3a3   :  { %v1449_v58 = vpop.f32.mrb[14].mxu0 }
 0x3a4   :  { %v1453_v59 = vmul.f32 0.35355338, %v1449_v58  ;;  %v8322_v60 = vpop.f32.mrb[15].mxu0  ;;  %v1288_v61 = vsel %vm527_vm5, %v1287_v57, -inf }
 0x3a5   :  { %1289 = vmax.xlane.f32.xlu1 %v1288_v61 }
 0x3a6   :  { %v1454_v62 = vadd.f32 %v1453_v59, %v9805_v32 }
 0x3a7   :  { %v1616_v63 = vpop.f32.mrb[16].mxu0 }
 0x3a8   :  { %v1620_v0 = vmul.f32 0.35355338, %v1616_v63  ;;  %v8332_v1 = vpop.f32.mrb[17].mxu0  ;;  %v1455_v2 = vsel %vm527_vm5, %v1454_v62, -inf }
 0x3a9   :  { %1456 = vmax.xlane.f32.xlu0 %v1455_v2 }
 0x3aa   :  { %v1621_v3 = vadd.f32 %v1620_v0, %v9805_v32 }
 0x3ab   :  { %v1783_v4 = vpop.f32.mrb[18].mxu0 }
 0x3ac   :  { %v1787_v11 = vmul.f32 0.35355338, %v1783_v4  ;;  %v8342_v12 = vpop.f32.mrb[19].mxu0  ;;  %v1622_v13 = vsel %vm527_vm5, %v1621_v3, -inf }
 0x3ad   :  { %1623 = vmax.xlane.f32.xlu1 %v1622_v13 }
 0x3ae   :  { %v1788_v16 = vadd.f32 %v1787_v11, %v9805_v32 }
 0x3b0   :  { %v1789_v17 = vsel %vm527_vm5, %v1788_v16, -inf }
 0x3b1   :  { %1790 = vmax.xlane.f32.xlu0 %v1789_v17 }
 0x3be   :  { %1116 = vrot.lane.b32.xlu1 %v9723_v14, %s10898_s11 }
 0x3c7   :  { %949 = vrot.lane.b32.xlu0 %v9723_v14, %s10896_s7 }
 0x422   :  { %v606_v19 = vpop.xlane.xlu0 %605 }
 0x423   :  { %v607_v20 = vsub.f32 %v603_v36, %v606_v19 }
 0x425   :  { %v608_v21 = vmul.f32 1.442695, %v607_v20 }
 0x426   :  { %v773_v22 = vpop.xlane.xlu1 %772 }
 0x427   :  { %9251 = vpow2.f32 %v608_v21  ;;  %v774_v23 = vsub.f32 %v770_v42, %v773_v22 }
 0x429   :  { %v775_v24 = vmul.f32 1.442695, %v774_v23 }
 0x42a   :  { %v940_v25 = vpop.xlane.xlu0 %939 }
 0x42b   :  { %9253 = vpow2.f32 %v775_v24  ;;  %v941_v26 = vsub.f32 %v937_v47, %v940_v25 }
 0x42d   :  { %v942_v27 = vmul.f32 1.442695, %v941_v26 }
 0x42e   :  { %v1107_v28 = vpop.xlane.xlu0 %1106 }
 0x42f   :  { %9255 = vpow2.f32 %v942_v27  ;;  %v1108_v29 = vsub.f32 %v1104_v52, %v1107_v28 }
 0x431   :  { %v9252_v30 = vpop.eup %9251  ;;  %v1109_v33 = vmul.f32 1.442695, %v1108_v29 }
 0x432   :  { %v610_v14 = vsel %vm527_vm5, %v9252_v30, 0.0  ;;  %v1290_v41 = vpop.xlane.xlu1 %1289 }
 0x433   :  { %9257 = vpow2.f32 %v1109_v33  ;;  %611 = vadd.xlane.f32.xlu1 %v610_v14  ;;  %v1291_v42 = vsub.f32 %v1287_v57, %v1290_v41 }
 0x435   :  { %v9254_v34 = vpop.eup %9253  ;;  %v1292_v46 = vmul.f32 1.442695, %v1291_v42 }
 0x436   :  { %v777_v35 = vsel %vm527_vm5, %v9254_v34, 0.0  ;;  %v1457_v43 = vpop.xlane.xlu0 %1456 }
 0x437   :  { %778 = vadd.xlane.f32.xlu0 %v777_v35  ;;  %v1458_v45 = vsub.f32 %v1454_v62, %v1457_v43  ;;  %9259 = vpow2.f32 %v1292_v46 }
 0x439   :  { %v9256_v36 = vpop.eup %9255  ;;  %v1459_v49 = vmul.f32 1.442695, %v1458_v45 }
 0x43a   :  { %v944_v37 = vsel %vm527_vm5, %v9256_v36, 0.0  ;;  %v1624_v44 = vpop.xlane.xlu1 %1623 }
 0x43b   :  { %945 = vadd.xlane.f32.xlu1 %v944_v37  ;;  %v1625_v47 = vsub.f32 %v1621_v3, %v1624_v44  ;;  %9261 = vpow2.f32 %v1459_v49 }
 0x43d   :  { %v9832_v38 = vpop.eup %9257  ;;  %v1626_v50 = vmul.f32 1.442695, %v1625_v47 }
 0x43e   :  { %v1111_v39 = vsel %vm527_vm5, %v9832_v38, 0.0  ;;  %v1791_v48 = vpop.xlane.xlu0 %1790  ;;  %v1117_v61 = vpop.permute.xlu1 %1116 }
 0x43f   :  { %1112 = vadd.xlane.f32.xlu0 %v1111_v39  ;;  %v1792_v51 = vsub.f32 %v1788_v16, %v1791_v48  ;;  %9263 = vpow2.f32 %v1626_v50  ;;  %v2116_v50 = vld [vmem:[%s10960_s30] sm:$0xff] }
 0x441   :  { %v1793_v52 = vmul.f32 1.442695, %v1792_v51  ;;  %v9260_v53 = vpop.eup %9259  ;;  %v2117_v51 = vld [vmem:[%s10960_s30 + $0x8] sm:$0xff] }
 0x442   :  { %v1294_v55 = vsel %vm527_vm5, %v9260_v53, 0.0  ;;  %v950_v62 = vpop.permute.xlu0 %949 }
 0x443   :  { %9265 = vpow2.f32 %v1793_v52  ;;  %v8884_v52 = vpack.c.bf16 %v2117_v51, %v2116_v50 }
 0x445   :  { %v9840_v54 = vpop.eup %9261 }
 0x446   :  { %v1461_v57 = vsel %vm527_vm5, %v9840_v54, 0.0 }
 0x449   :  { %v9843_v56 = vpop.eup %9263 }
 0x44a   :  { %v1628_v58 = vsel %vm527_vm5, %v9843_v56, 0.0 }
 0x44c   :  { %1466 = vrot.lane.b32.xlu1 %v9737_v15, %s10900_s1  ;;  %s10963_s1 = smov 120  }
 0x44d   :  { %v9849_v59 = vpop.eup %9265 }
 0x44e   :  { %v1795_v60 = vsel %vm527_vm5, %v9849_v59, 0.0 }
 0x455   :  { %1299 = vrot.lane.b32.xlu0 %v9737_v15, %s10902_s29  ;;  %s10959_s29 = sld [smem:[#allocation11_spill]] }
 0x45b   :  { %v1891_v44 = vld [vmem:[%s10959_s29] sm:$0xff]  ;;  %v1892_v45 = vld [vmem:[%s10959_s29 + $0x8] sm:$0xff]  ;;  %v1893_v47 = vld [vmem:[%s10959_s29 + $0x10] sm:$0xff] }
 0x45c   :  { %v8868_v46 = vpack.c.bf16 %v1892_v45, %v1891_v44  ;;  %v1894_v48 = vld [vmem:[%s10959_s29 + $0x18] sm:$0xff] }
 0x45d   :  { %v8872_v49 = vpack.c.bf16 %v1894_v48, %v1893_v47 }
 0x45e   :  { %8869 = vmatprep.subr.bf16.mxu0 %v8868_v46 }
 0x45f   :  { %8871 = vmatpush3.bf16.msra.mxu0 %v8868_v46 }
 0x460   :  { %8873 = vmatprep.subr.bf16.mxu0 %v8872_v49 }
 0x463   :  { %8875 = vmatpush3.bf16.msra.mxu0 %v8872_v49 }
 0x464   :  { %8885 = vmatprep.subr.bf16.mxu0 %v8884_v52 }
 0x470   :  { %1295 = vadd.xlane.f32.xlu1 %v1294_v55 }
 0x474   :  { %1462 = vadd.xlane.f32.xlu0 %v1461_v57  ;;  %1629 = vadd.xlane.f32.xlu1 %v1628_v58 }
 0x478   :  { %1796 = vadd.xlane.f32.xlu1 %v1795_v60 }
 0x489   :  { %1800 = vrot.lane.b32.xlu1 %v9737_v15, %s10898_s11  ;;  %s10964_s11 = smov 112  }
 0x48a   :  { %1633 = vrot.lane.b32.xlu0 %v9737_v15, %s10896_s7  ;;  %s10918_s7 = smov 24  }
 0x4c0   :  { %v612_v63 = vpop.xlane.xlu1 %611 }
 0x4c1   :  { %9267 = vrcp.f32 %v612_v63 }
 0x4c4   :  { %v779_v0 = vpop.xlane.xlu0 %778 }
 0x4c5   :  { %9269 = vrcp.f32 %v779_v0 }
 0x4c8   :  { %v946_v1 = vpop.xlane.xlu1 %945 }
 0x4c9   :  { %9271 = vrcp.f32 %v946_v1 }
 0x4cb   :  { %v9268_v2 = vpop.eup %9267 }
 0x4cc   :  { %v1113_v3 = vpop.xlane.xlu0 %1112  ;;  %v614_v4 = vmul.f32 %v9268_v2, %v9252_v30  ;;  %v1467_v19 = vpop.permute.xlu1 %1466 }
 0x4cd   :  { %9273 = vrcp.f32 %v1113_v3 }
 0x4ce   :  { %8276 = vmatmul.mubr.msk.f32.vlgmr.msra.gmra.mrb[8].mxu1 %vm527_vm5, %v614_v4 }
 0x4cf   :  { %v9270_v11 = vpop.eup %9269  ;;  %8284 = vmatpush3.msra.mxu1 %v9827_v18  ;;  %8285 = vmatprep.mubr.msk.f32.mxu1 %vm9409_vm4, %v9408_v40 }
 0x4d0   :  { %8293 = vmatprep.subr.mxu1 %v9408_v40  ;;  %v781_v15 = vmul.f32 %v9270_v11, %v9254_v34  ;;  %v1300_v18 = vpop.permute.xlu0 %1299  ;;  %v2118_v11 = vld [vmem:[%s10960_s30 + $0x10] sm:$0xff] }
 0x4d2   :  { %8286 = vmatmul.mubr.msk.f32.vlgmr.msra.gmra.mrb[10].mxu1 %vm527_vm5, %v781_v15  ;;  %v2119_v15 = vld [vmem:[%s10960_s30 + $0x18] sm:$0xff] }
 0x4d3   :  { %v9272_v12 = vpop.eup %9271  ;;  %8294 = vmatpush3.msra.mxu1 %v950_v62  ;;  %8295 = vmatprep.mubr.msk.f32.mxu1 %vm9409_vm4, %v9408_v40 }
 0x4d4   :  { %8303 = vmatprep.subr.mxu1 %v9408_v40  ;;  %v948_v13 = vmul.f32 %v9272_v12, %v9256_v36  ;;  %v7697_v12 = vld [vmem:[%s10961_s5] ss:$0 sm:$0xff]  ;;  %s10970_s5 = smov 88  }
 0x4d6   :  { %8296 = vmatmul.mubr.msk.f32.vlgmr.msra.gmra.mrb[12].mxu1 %vm527_vm5, %v948_v13 }
 0x4d7   :  { %v9274_v16 = vpop.eup %9273  ;;  %8304 = vmatpush3.msra.mxu1 %v1117_v61  ;;  %8305 = vmatprep.mubr.msk.f32.mxu1 %vm9409_vm4, %v9408_v40 }
 0x4d8   :  { %8313 = vmatprep.subr.mxu1 %v9408_v40  ;;  %v1115_v17 = vmul.f32 %v9274_v16, %v9832_v38 }
 0x4da   :  { %8306 = vmatmul.mubr.msk.f32.vlgmr.msra.gmra.mrb[14].mxu1 %vm527_vm5, %v1115_v17 }
 0x4db   :  { %8314 = vmatpush3.msra.mxu1 %v1300_v18  ;;  %8315 = vmatprep.mubr.msk.f32.mxu1 %vm9409_vm4, %v9408_v40  ;;  %v8888_v18 = vpack.c.bf16 %v2119_v15, %v2118_v11  ;;  %v10013_v15 = vsub.s32 0, %v9800_v31 }
 0x4dc   :  { %8323 = vmatprep.subr.mxu1 %v9408_v40 }
 0x4fd   :  { %v1296_v20 = vpop.xlane.xlu1 %1295 }
 0x4fe   :  { %9275 = vrcp.f32 %v1296_v20 }
 0x501   :  { %v1463_v21 = vpop.xlane.xlu0 %1462  ;;  %v1630_v22 = vpop.xlane.xlu1 %1629 }
 0x502   :  { %9277 = vrcp.f32 %v1463_v21  ;;  %v9937_v21 = vadd.f32 %v9708_v7, %v7697_v12  ;;  %v7733_v7 = vld [vmem:[%s10962_s14] ss:$0 sm:$0xff] }
 0x503   :  { %9279 = vrcp.f32 %v1630_v22  ;;  %v9940_v22 = vadd.f32 %v7697_v12, %v9714_v10 }
 0x505   :  { %v1797_v23 = vpop.xlane.xlu1 %1796  ;;  %v1634_v29 = vpop.permute.xlu0 %1633 }
 0x506   :  { %9281 = vrcp.f32 %v1797_v23 }
 0x508   :  { %v9276_v24 = vpop.eup %9275 }
 0x509   :  { %v1298_v25 = vmul.f32 %v9276_v24, %v9260_v53  ;;  %v1801_v14 = vpop.permute.xlu1 %1800 }
 0x50b   :  { %8316 = vmatmul.mubr.msk.f32.vlgmr.msra.gmra.mrb[16].mxu1 %vm527_vm5, %v1298_v25 }
 0x50c   :  { %v9278_v26 = vpop.eup %9277  ;;  %8324 = vmatpush3.msra.mxu1 %v1467_v19  ;;  %8325 = vmatprep.mubr.msk.f32.mxu1 %vm9409_vm4, %v9408_v40  ;;  %v9930_v19 = vadd.f32 %v7697_v12, %v9710_v8  ;;  %v9947_v8 = vadd.f32 %v9712_v9, %v7697_v12  ;;  %v10018_v12 = vld [vmem:[%s10871_s22] sm:$0x7]  ;;  %s10978_s22 = smov 48  }
 0x50d   :  { %8333 = vmatprep.subr.mxu1 %v9408_v40  ;;  %v1465_v27 = vmul.f32 %v9278_v26, %v9840_v54  ;;  %v9280_v28 = vpop.eup %9279 }
 0x50e   :  { %v1632_v30 = vmul.f32 %v9280_v28, %v9843_v56 }
 0x50f   :  { %8326 = vmatmul.mubr.msk.f32.vlgmr.msra.gmra.mrb[18].mxu1 %vm527_vm5, %v1465_v27 }
 0x510   :  { %8334 = vmatpush3.msra.mxu1 %v1634_v29  ;;  %8335 = vmatprep.mubr.msk.f32.mxu1 %vm9409_vm4, %v9408_v40  ;;  %v9282_v33 = vpop.eup %9281  ;;  %v7739_v29 = vld [vmem:[%s10869_s15] ss:$0 sm:$0xff] }
 0x511   :  { %8343 = vmatprep.subr.mxu1 %v9408_v40  ;;  %v1799_v34 = vmul.f32 %v9282_v33, %v9849_v59 }
 0x513   :  { %8336 = vmatmul.mubr.msk.f32.vlgmr.msra.gmra.mrb[20].mxu1 %vm527_vm5, %v1632_v30 }
 0x514   :  { %8344 = vmatpush3.msra.mxu1 %v1801_v14  ;;  %8345 = vmatprep.mubr.msk.f32.mxu1 %vm9409_vm4, %v9408_v40 }
 0x517   :  { %8346 = vmatmul.mubr.msk.f32.vlgmr.msra.gmra.mrb[22].mxu1 %vm527_vm5, %v1799_v34 }
 0x5a1   :  { %v687_v35 = vpop.f32.mrb[8].mxu1 }
 0x5a2   :  { %v8277_v36 = vpop.f32.mrb[9].mxu1 }
 0x5a5   :  { %v854_v37 = vpop.f32.mrb[10].mxu1 }
 0x5a6   :  { %1193 = vrot.lane.b32.xlu0 %v854_v37, %s10922_s9  ;;  %v8287_v38 = vpop.f32.mrb[11].mxu1 }
 0x5a9   :  { %v1021_v39 = vpop.f32.mrb[12].mxu1 }
 0x5aa   :  { %1197 = vrot.lane.b32.xlu1 %v1021_v39, %s10920_s8  ;;  %v8297_v41 = vpop.f32.mrb[13].mxu1 }
 0x5ad   :  { %v1188_v42 = vpop.f32.mrb[14].mxu1 }
 0x5ae   :  { %1201 = vrot.lane.b32.xlu1 %v1188_v42, %s10918_s7  ;;  %v8307_v43 = vpop.f32.mrb[15].mxu1  ;;  %v9424_v42 = vmov 0.0|0.0  }
 0x5de   :  { %v1371_v53 = vpop.f32.mrb[16].mxu1 }
 0x5df   :  { %v8317_v54 = vpop.f32.mrb[17].mxu1 }
 0x5e2   :  { %v1538_v55 = vpop.f32.mrb[18].mxu1 }
 0x5e3   :  { %1877 = vrot.lane.b32.xlu0 %v1538_v55, %s10922_s9  ;;  %v8327_v56 = vpop.f32.mrb[19].mxu1  ;;  %s10971_s9 = smov 72  }
 0x5e6   :  { %v1705_v57 = vpop.f32.mrb[20].mxu1 }
 0x5e7   :  { %1881 = vrot.lane.b32.xlu0 %v1705_v57, %s10920_s8  ;;  %v8337_v58 = vpop.f32.mrb[21].mxu1  ;;  %s10972_s8 = smov 8  }
 0x5e8   :  { %v2024_v58 = vld [vmem:[%s10870_s12] sm:$0xff] }
 0x5ea   :  { %v1872_v59 = vpop.f32.mrb[22].mxu1 }
 0x5eb   :  { %1885 = vrot.lane.b32.xlu1 %v1872_v59, %s10918_s7  ;;  %v8347_v60 = vpop.f32.mrb[23].mxu1  ;;  %v2025_v59 = vld [vmem:[%s10870_s12 + $0x8] sm:$0xff]  ;;  %s10969_s7 = smov 104  }
 0x5ec   :  { %v8876_v60 = vpack.c.bf16 %v2025_v59, %v2024_v58 }
 0x5ee   :  { %8877 = vmatprep.subr.bf16.mxu1 %v8876_v60 }
 0x5ef   :  { %8879 = vmatpush3.bf16.msra.mxu1 %v8876_v60 }
 0x618   :  { %v1194_v61 = vpop.permute.xlu0 %1193 }
 0x619   :  { %v1204_v63 = vsel %vm527_vm5, %v687_v35, %v1194_v61  ;;  %v2026_v61 = vld [vmem:[%s10870_s12 + $0x10] sm:$0xff] }
 0x61c   :  { %v1198_v62 = vpop.permute.xlu1 %1197 }
 0x61d   :  { %v1206_v0 = vsel %vm1205_vm7, %v1204_v63, %v1198_v62  ;;  %v2027_v62 = vld [vmem:[%s10870_s12 + $0x18] sm:$0xff] }
 0x61e   :  { %v8880_v63 = vpack.c.bf16 %v2027_v62, %v2026_v61 }
 0x620   :  { %v1202_v1 = vpop.permute.xlu1 %1201  ;;  %8881 = vmatprep.subr.bf16.mxu1 %v8880_v63 }
 0x621   :  { %v1208_v2 = vsel %vm1207_vm8, %v1206_v0, %v1202_v1  ;;  %8883 = vmatpush3.bf16.msra.mxu1 %v8880_v63 }
 0x622   :  { %8356 = vmatprep.mubr.msk.f32.mxu0 %vm442_vm3, %v1208_v2  ;;  %8892 = vmatprep.subr.bf16.mxu1 %v9424_v42 }
 0x655   :  { %v1878_v3 = vpop.permute.xlu0 %1877 }
 0x656   :  { %v1888_v13 = vsel %vm527_vm5, %v1371_v53, %v1878_v3 }
 0x659   :  { %v1882_v4 = vpop.permute.xlu0 %1881 }
 0x65a   :  { %v1889_v16 = vsel %vm1205_vm7, %v1888_v13, %v1882_v4  ;;  %v10023_v13 = vld [vmem:[%s10872_s23] sm:$0x7] }
 0x65d   :  { %v1886_v17 = vpop.permute.xlu1 %1885 }
 0x65e   :  { %v1890_v20 = vsel %vm1207_vm8, %v1889_v16, %v1886_v17  ;;  %v2015_v16 = vrot.slane %v10018_v12, %v10013_v15 }
 0x65f   :  { %8357 = vmatmul.mubr.msk.f32.vlgmr.msra.gmra.mrb[20].mxu0 %vm442_vm3, %v1890_v20  ;;  %v2021_v20 = vrot.slane %v10023_v13, %v10013_v15 }
 0x660   :  { %8887 = vmatpush3.bf16.msra.mxu0 %v8884_v52  ;;  %8378 = vmatprep.mubr.msk.f32.mxu0 %vm442_vm3, %v9930_v19 }
 0x661   :  { %8889 = vmatprep.subr.bf16.mxu0 %v8888_v18 }
 0x664   :  { %8891 = vmatpush3.bf16.msra.mxu0 %v8888_v18 }
 0x665   :  { %8899 = vmatprep.subr.bf16.mxu0 %v9424_v42 }
 0x667   :  { %8379 = vmatmul.mubr.msk.f32.vlgmr.msra.gmra.mrb[22].mxu0 %vm442_vm3, %v9937_v21 }
 0x668   :  { %8381 = vmatprep.mubr.msk.f32.mxu0 %vm442_vm3, %v9940_v22 }
 0x66b   :  { %8382 = vmatmul.mubr.msk.f32.gmra.mrb[24].mxu0 %vm442_vm3, %v9947_v8 }
 0x66c   :  { %8402 = vmatprep.mubr.msk.f32.mxu0 %vm9409_vm4, %v9408_v40 }
 0x732   :  { %v8358_v10 = vpop.f32.mrb[20].mxu0 }
 0x733   :  { %v1980_v23 = vadd.f32 %v8358_v10, %v7733_v7  ;;  %v1974_v24 = vpop.f32.mrb[21].mxu0 }
 0x734   :  { %v1975_v25 = vadd.f32 %v7733_v7, %v1974_v24 }
 0x735   :  { %v1984_v26 = vadd.f32 %v1980_v23, %v9702_v6 }
 0x736   :  { %v1983_v27 = vadd.f32 %v1975_v25, %v9700_v5 }
 0x737   :  { %v1988_v9 = vsel %vm442_vm3, %v1984_v26, 0.0 }
 0x738   :  { %1989 = vadd.xlane.f32.xlu1 %v1988_v9  ;;  %v1985_v28 = vsel %vm442_vm3, %v1983_v27, 0.0 }
 0x739   :  { %1986 = vadd.xlane.f32.xlu0 %v1985_v28 }
 0x73a   :  { %v8380_v30 = vpop.f32.mrb[22].mxu0 }
 0x73b   :  { %v9963_v33 = vadd.f32 %v8380_v30, %v7739_v29  ;;  %v2205_v14 = vpop.f32.mrb[23].mxu0 }
 0x73c   :  { %v9965_v34 = vadd.f32 %v7739_v29, %v2205_v14 }
 0x73e   :  { %v8383_v35 = vpop.f32.mrb[24].mxu0  ;;  %v9969_v5 = vpack.i.bf16 %v9963_v33, %v9965_v34  ;;  %v8893_v6 = vpack.c.bf16 %v9963_v33, %v9965_v34 }
 0x73f   :  { %v9973_v36 = vadd.f32 %v8383_v35, %v7739_v29  ;;  %v2215_v37 = vpop.f32.mrb[25].mxu0 }
 0x740   :  { %v9975_v38 = vadd.f32 %v7739_v29, %v2215_v37 }
 0x742   :  { %v9979_v39 = vpack.i.bf16 %v9973_v36, %v9975_v38  ;;  %v8921_v41 = vpack.c.bf16 %v9973_v36, %v9975_v38 }
 0x749   :  { %9112 = vrot.lane.b32.xlu1 %v9969_v5, %s10963_s1 }
 0x74d   :  { %9117 = vrot.lane.b32.xlu1 %v9969_v5, %s10964_s11 }
 0x7c5   :  { %v1990_v43 = vpop.xlane.xlu1 %1989 }
 0x7c6   :  { %v1993_v44 = vmul.f32 0.03125, %v1990_v43  ;;  %v1987_v45 = vpop.xlane.xlu0 %1986 }
 0x7c7   :  { %v1992_v46 = vmul.f32 0.03125, %v1987_v45 }
 0x7c8   :  { %v1995_v47 = vsub.f32 %v1984_v26, %v1993_v44 }
 0x7c9   :  { %v1994_v48 = vsub.f32 %v1983_v27, %v1992_v46  ;;  %v9113_v49 = vpop.permute.xlu1 %9112  ;;  %v7736_v27 = vld [vmem:[%s10873_s13] ss:$0 sm:$0xff]  ;;  %s10977_s13 = smov 40  }
 0x7ca   :  { %v9115_v50 = vunpack.i.h.bf16 %v9113_v49  ;;  %v9114_v51 = vunpack.i.l.bf16 %v9113_v49  ;;  %v1997_v56 = vmul.f32 %v1995_v47, %v1995_v47 }
 0x7cb   :  { %v1996_v52 = vmul.f32 %v1994_v48, %v1994_v48 }
 0x7cc   :  { %v8900_v54 = vpack.c.bf16 %v9115_v50, %v9114_v51  ;;  %v2001_v57 = vsel %vm442_vm3, %v1997_v56, 0.0 }
 0x7cd   :  { %v1998_v55 = vsel %vm442_vm3, %v1996_v52, 0.0  ;;  %v9118_v33 = vpop.permute.xlu1 %9117 }
 0x7ce   :  { %1999 = vadd.xlane.f32.xlu0 %v1998_v55  ;;  %8902 = vmatpush3.bf16.xpose.msk.msra.mxu0 %vm9990_vm9, %v8900_v54  ;;  %v9120_v14 = vunpack.i.h.bf16 %v9118_v33  ;;  %v9119_v34 = vunpack.i.l.bf16 %v9118_v33 }
 0x7cf   :  { %8906 = vmatprep.subr.bf16.mxu0 %v9424_v42 }
 0x7d0   :  { %v8907_v35 = vpack.c.bf16 %v9120_v14, %v9119_v34 }
 0x7d2   :  { %2002 = vadd.xlane.f32.xlu0 %v2001_v57 }
 0x85b   :  { %v2000_v0 = vpop.xlane.xlu0 %1999 }
 0x85c   :  { %v2004_v1 = vmul.f32 0.03125, %v2000_v0 }
 0x85e   :  { %v2006_v2 = vadd.f32 1e-05, %v2004_v1 }
 0x85f   :  { %v2003_v3 = vpop.xlane.xlu0 %2002 }
 0x860   :  { %9283 = vrsqrt.f32 %v2006_v2  ;;  %v2005_v4 = vmul.f32 0.03125, %v2003_v3 }
 0x862   :  { %v2007_v11 = vadd.f32 1e-05, %v2005_v4 }
 0x864   :  { %9285 = vrsqrt.f32 %v2007_v11 }
 0x86a   :  { %v9284_v17 = vpop.eup %9283 }
 0x86b   :  { %v2010_v18 = vmul.f32 %v9284_v17, %v1994_v48 }
 0x86d   :  { %v2016_v7 = vmul.f32 %v2015_v16, %v2010_v18 }
 0x86e   :  { %v9286_v10 = vpop.eup %9285 }
 0x86f   :  { %v2011_v23 = vmul.f32 %v9286_v10, %v1995_v47  ;;  %v10029_v24 = vadd.f32 %v2021_v20, %v2016_v7 }
 0x871   :  { %v2017_v25 = vmul.f32 %v2015_v16, %v2011_v23  ;;  %8367 = vmatprep.mubr.msk.f32.mxu1 %vm442_vm3, %v10029_v24 }
 0x873   :  { %v10033_v26 = vadd.f32 %v2021_v20, %v2017_v25 }
 0x875   :  { %8368 = vmatmul.mubr.msk.f32.vlgmr.msra.gmra.mrb[24].mxu1 %vm442_vm3, %v10033_v26 }
 0x876   :  { %8895 = vmatpush3.bf16.xpose.msk.msra.mxu1 %vm9990_vm9, %v8893_v6  ;;  %8388 = vmatprep.mubr.msk.f32.mxu1 %vm9409_vm4, %v9408_v40 }
 0x877   :  { %8896 = vmatprep.subr.bf16.mxu1 %v9424_v42 }
 0x948   :  { %v8369_v9 = vpop.f32.mrb[24].mxu1 }
 0x949   :  { %v10048_v28 = vadd.f32 %v8369_v9, %v7736_v27  ;;  %v2107_v29 = vpop.f32.mrb[25].mxu1 }
 0x94a   :  { %v10050_v30 = vadd.f32 %v7736_v27, %v2107_v29 }
 0x94c   :  { %2394 = vrot.lane.b32.xlu0 %v10050_v30, %s10963_s1  ;;  %2567 = vrot.lane.b32.xlu1 %v10050_v30, %s10964_s11 }
 0x94d   :  { %8389 = vmatmul.mubr.msk.f32.vlgmr.msra.gmra.mrb[26].mxu1 %vm527_vm5, %v10050_v30 }
 0x94e   :  { %8395 = vmatprep.mubr.msk.f32.mxu1 %vm9409_vm4, %v9408_v40 }
 0x9be   :  { %v2395_v6 = vpop.permute.xlu0 %2394  ;;  %v2568_v37 = vpop.permute.xlu1 %2567 }
 0x9bf   :  { %8403 = vmatmul.mubr.msk.f32.vlgmr.msra.gmra.mrb[26].mxu0 %vm527_vm5, %v2395_v6 }
 0x9c0   :  { %8909 = vmatpush3.bf16.xpose.msk.msra.mxu0 %vm9990_vm9, %v8907_v35  ;;  %8416 = vmatprep.mubr.msk.f32.mxu0 %vm9409_vm4, %v9408_v40 }
 0x9c1   :  { %8917 = vmatprep.subr.bf16.mxu0 %v9424_v42 }
 0x9c7   :  { %8417 = vmatmul.mubr.msk.f32.vlgmr.msra.gmra.mrb[28].mxu0 %vm527_vm5, %v2568_v37 }
 0x9c8   :  { %8437 = vmatprep.mubr.msk.f32.mxu0 %vm9409_vm4, %v9408_v40 }
 0xa20   :  { %v2299_v43 = vpop.f32.mrb[26].mxu1 }
 0xa21   :  { %v2303_v44 = vmul.f32 0.35355338, %v2299_v43  ;;  %v8390_v45 = vpop.f32.mrb[27].mxu1 }
 0xa23   :  { %v2304_v46 = vsel %vm1205_vm7, %v2303_v44, -inf }
 0xa24   :  { %2305 = vmax.xlane.f32.xlu0 %v2304_v46 }
 0xa92   :  { %v2472_v47 = vpop.f32.mrb[26].mxu0 }
 0xa93   :  { %v2476_v48 = vmul.f32 0.35355338, %v2472_v47  ;;  %v8404_v49 = vpop.f32.mrb[27].mxu0 }
 0xa95   :  { %v2477_v50 = vsel %vm1205_vm7, %v2476_v48, -inf }
 0xa96   :  { %2478 = vmax.xlane.f32.xlu1 %v2477_v50 }
 0xa9a   :  { %v2645_v51 = vpop.f32.mrb[28].mxu0 }
 0xa9b   :  { %v2649_v52 = vmul.f32 0.35355338, %v2645_v51  ;;  %v8418_v54 = vpop.f32.mrb[29].mxu0 }
 0xa9d   :  { %v2650_v55 = vsel %vm1205_vm7, %v2649_v52, -inf }
 0xa9e   :  { %2651 = vmax.xlane.f32.xlu0 %v2650_v55 }
 0xaa7   :  { %9122 = vrot.lane.b32.xlu1 %v9969_v5, %s10967_s10 }
 0xab1   :  { %v2306_v56 = vpop.xlane.xlu0 %2305 }
 0xab2   :  { %v2307_v57 = vsub.f32 %v2303_v44, %v2306_v56 }
 0xab4   :  { %v2308_v58 = vmul.f32 1.442695, %v2307_v57 }
 0xab6   :  { %9287 = vpow2.f32 %v2308_v58 }
 0xac0   :  { %v9288_v59 = vpop.eup %9287 }
 0xac1   :  { %v2310_v60 = vsel %vm1205_vm7, %v9288_v59, 0.0 }
 0xac2   :  { %2311 = vadd.xlane.f32.xlu0 %v2310_v60 }
 0xb23   :  { %v2479_v61 = vpop.xlane.xlu1 %2478 }
 0xb24   :  { %v2480_v62 = vsub.f32 %v2476_v48, %v2479_v61 }
 0xb26   :  { %v2481_v63 = vmul.f32 1.442695, %v2480_v62 }
 0xb27   :  { %v9123_v0 = vpop.permute.xlu1 %9122 }
 0xb28   :  { %9289 = vpow2.f32 %v2481_v63  ;;  %v9125_v1 = vunpack.i.h.bf16 %v9123_v0  ;;  %v9124_v2 = vunpack.i.l.bf16 %v9123_v0 }
 0xb2a   :  { %v8897_v3 = vpack.c.bf16 %v9125_v1, %v9124_v2 }
 0xb2b   :  { %v2652_v4 = vpop.xlane.xlu0 %2651 }
 0xb2c   :  { %v2653_v11 = vsub.f32 %v2649_v52, %v2652_v4  ;;  %8898 = vmatpush3.bf16.msra.mxu1 %v8897_v3 }
 0xb2d   :  { %8903 = vmatprep.subr.bf16.mxu1 %v9424_v42 }
 0xb2e   :  { %v2654_v16 = vmul.f32 1.442695, %v2653_v11 }
 0xb30   :  { %9291 = vpow2.f32 %v2654_v16 }
 0xb32   :  { %v9290_v17 = vpop.eup %9289 }
 0xb33   :  { %v2483_v18 = vsel %vm1205_vm7, %v9290_v17, 0.0 }
 0xb34   :  { %2484 = vadd.xlane.f32.xlu1 %v2483_v18 }
 0xb3a   :  { %v9292_v20 = vpop.eup %9291 }
 0xb3b   :  { %v2656_v7 = vsel %vm1205_vm7, %v9292_v20, 0.0 }
 0xb3c   :  { %2657 = vadd.xlane.f32.xlu0 %v2656_v7 }
 0xb45   :  { %9132 = vrot.lane.b32.xlu1 %v9969_v5, %s10968_s0 }
 0xb49   :  { %9137 = vrot.lane.b32.xlu1 %v9969_v5, %s10969_s7 }
 0xb4f   :  { %v2312_v10 = vpop.xlane.xlu0 %2311 }
 0xb50   :  { %9293 = vrcp.f32 %v2312_v10 }
 0xb52   :  { %9127 = vrot.lane.b32.xlu0 %v9969_v5, %s10970_s5 }
 0xb56   :  { %2740 = vrot.lane.b32.xlu0 %v10050_v30, %s10969_s7 }
 0xb5a   :  { %v9294_v23 = vpop.eup %9293 }
 0xb5b   :  { %v2314_v25 = vmul.f32 %v9294_v23, %v9288_v59 }
 0xb5d   :  { %8396 = vmatmul.mubr.msk.f32.vlgmr.msra.gmra.mrb[28].mxu1 %vm1205_vm7, %v2314_v25 }
 0xb5e   :  { %8409 = vmatprep.mubr.msk.f32.mxu1 %vm9409_vm4, %v9408_v40 }
 0xbc1   :  { %v2485_v27 = vpop.xlane.xlu1 %2484 }
 0xbc2   :  { %9295 = vrcp.f32 %v2485_v27 }
 0xbc5   :  { %v9133_v29 = vpop.permute.xlu1 %9132 }
 0xbc6   :  { %v9135_v6 = vunpack.i.h.bf16 %v9133_v29  ;;  %v9134_v37 = vunpack.i.l.bf16 %v9133_v29 }
 0xbc8   :  { %v8911_v45 = vpack.c.bf16 %v9135_v6, %v9134_v37 }
 0xbc9   :  { %v2658_v9 = vpop.xlane.xlu0 %2657  ;;  %v9138_v46 = vpop.permute.xlu1 %9137 }
 0xbca   :  { %9297 = vrcp.f32 %v2658_v9  ;;  %v9140_v48 = vunpack.i.h.bf16 %v9138_v46  ;;  %v9139_v49 = vunpack.i.l.bf16 %v9138_v46 }
 0xbcc   :  { %v9296_v35 = vpop.eup %9295  ;;  %v8914_v50 = vpack.c.bf16 %v9140_v48, %v9139_v49 }
 0xbcd   :  { %v9128_v33 = vpop.permute.xlu0 %9127  ;;  %v2487_v30 = vmul.f32 %v9296_v35, %v9290_v17 }
 0xbce   :  { %v9130_v14 = vunpack.i.h.bf16 %v9128_v33  ;;  %v9129_v34 = vunpack.i.l.bf16 %v9128_v33 }
 0xbd0   :  { %v8904_v43 = vpack.c.bf16 %v9130_v14, %v9129_v34 }
 0xbd1   :  { %v2741_v51 = vpop.permute.xlu0 %2740 }
 0xbd2   :  { %8905 = vmatpush3.bf16.msra.mxu1 %v8904_v43 }
 0xbd3   :  { %8910 = vmatprep.subr.bf16.mxu1 %v9424_v42 }
 0xbd4   :  { %v9298_v44 = vpop.eup %9297 }
 0xbd5   :  { %8410 = vmatmul.mubr.msk.f32.vlgmr.msra.gmra.mrb[30].mxu1 %vm1205_vm7, %v2487_v30  ;;  %v2660_v47 = vmul.f32 %v9298_v44, %v9292_v20 }
 0xbd6   :  { %8912 = vmatpush3.bf16.msra.mxu1 %v8911_v45  ;;  %8423 = vmatprep.mubr.msk.f32.mxu1 %vm9409_vm4, %v9408_v40 }
 0xbd7   :  { %8913 = vmatprep.subr.bf16.mxu1 %v9424_v42 }
 0xbd9   :  { %8424 = vmatmul.mubr.msk.f32.vlgmr.msra.gmra.mrb[32].mxu1 %vm1205_vm7, %v2660_v47 }
 0xbda   :  { %8430 = vmatprep.mubr.msk.f32.mxu1 %vm9409_vm4, %v9408_v40 }
 0xbdf   :  { %8916 = vmatpush3.bf16.xpose.msk.msra.mxu1 %vm9990_vm9, %v8914_v50 }
 0xbe0   :  { %8924 = vmatprep.subr.bf16.mxu1 %v9424_v42 }
 0xbe6   :  { %8431 = vmatmul.mubr.msk.f32.vlgmr.msra.gmra.mrb[34].mxu1 %vm527_vm5, %v2741_v51 }
 0xbe7   :  { %8451 = vmatprep.mubr.msk.f32.mxu1 %vm9409_vm4, %v9408_v40 }
 0xc30   :  { %v10103_v52 = vpop.f32.mrb[28].mxu1 }
 0xc31   :  { %v8397_v54 = vpop.f32.mrb[29].mxu1 }
 0xca8   :  { %v10105_v55 = vpop.f32.mrb[30].mxu1 }
 0xca9   :  { %v8411_v56 = vpop.f32.mrb[31].mxu1 }
 0xcac   :  { %v10107_v57 = vpop.f32.mrb[32].mxu1 }
 0xcad   :  { %v8425_v58 = vpop.f32.mrb[33].mxu1 }
 0xcb9   :  { %v2818_v59 = vpop.f32.mrb[34].mxu1 }
 0xcba   :  { %v2822_v60 = vmul.f32 0.35355338, %v2818_v59  ;;  %v8432_v61 = vpop.f32.mrb[35].mxu1 }
 0xcbc   :  { %v2823_v62 = vsel %vm1205_vm7, %v2822_v60, -inf }
 0xcbd   :  { %2824 = vmax.xlane.f32.xlu1 %v2823_v62 }
 0xd4a   :  { %v2825_v63 = vpop.xlane.xlu1 %2824 }
 0xd4b   :  { %v2826_v0 = vsub.f32 %v2822_v60, %v2825_v63 }
 0xd4d   :  { %v2827_v1 = vmul.f32 1.442695, %v2826_v0 }
 0xd4f   :  { %9299 = vpow2.f32 %v2827_v1 }
 0xd59   :  { %v9300_v2 = vpop.eup %9299 }
 0xd5a   :  { %v2829_v3 = vsel %vm1205_vm7, %v9300_v2, 0.0 }
 0xd5b   :  { %2830 = vadd.xlane.f32.xlu0 %v2829_v3 }
 0xd71   :  { %9142 = vrot.lane.b32.xlu0 %v9969_v5, %s10971_s9 }
 0xd75   :  { %9152 = vrot.lane.b32.xlu0 %v9979_v39, %s10963_s1 }
 0xd79   :  { %3098 = vrot.lane.b32.xlu0 %v10048_v28, %s10963_s1 }
 0xde8   :  { %v2831_v4 = vpop.xlane.xlu0 %2830 }
 0xde9   :  { %9301 = vrcp.f32 %v2831_v4 }
 0xdec   :  { %v9143_v11 = vpop.permute.xlu0 %9142 }
 0xded   :  { %v9145_v16 = vunpack.i.h.bf16 %v9143_v11  ;;  %v9144_v17 = vunpack.i.l.bf16 %v9143_v11 }
 0xdef   :  { %v8918_v18 = vpack.c.bf16 %v9145_v16, %v9144_v17 }
 0xdf0   :  { %v9153_v43 = vpop.permute.xlu0 %9152 }
 0xdf1   :  { %8919 = vmatpush3.bf16.msra.mxu0 %v8918_v18  ;;  %v9155_v44 = vunpack.i.h.bf16 %v9153_v43  ;;  %v9154_v45 = vunpack.i.l.bf16 %v9153_v43 }
 0xdf2   :  { %8920 = vmatprep.subr.bf16.mxu0 %v9424_v42 }
 0xdf3   :  { %v9302_v20 = vpop.eup %9301  ;;  %v8928_v47 = vpack.c.bf16 %v9155_v44, %v9154_v45 }
 0xdf4   :  { %v2833_v7 = vmul.f32 %v9302_v20, %v9300_v2  ;;  %v3099_v48 = vpop.permute.xlu0 %3098 }
 0xdf6   :  { %8438 = vmatmul.mubr.msk.f32.vlgmr.msra.gmra.mrb[30].mxu0 %vm1205_vm7, %v2833_v7 }
 0xdf7   :  { %8444 = vmatprep.mubr.msk.f32.mxu0 %vm9409_vm4, %v9408_v40 }
 0xdfa   :  { %8923 = vmatpush3.bf16.xpose.msk.msra.mxu0 %vm9990_vm9, %v8921_v41 }
 0xdfb   :  { %8931 = vmatprep.subr.bf16.mxu0 %v9424_v42 }
 0xe01   :  { %8445 = vmatmul.mubr.msk.f32.vlgmr.msra.gmra.mrb[32].mxu0 %vm527_vm5, %v10048_v28 }
 0xe02   :  { %8465 = vmatprep.mubr.msk.f32.mxu0 %vm9409_vm4, %v9408_v40 }
 0xec9   :  { %v10131_v5 = vpop.f32.mrb[30].mxu0 }
 0xeca   :  { %v8439_v10 = vpop.f32.mrb[31].mxu0 }
 0xed4   :  { %v3003_v23 = vpop.f32.mrb[32].mxu0 }
 0xed5   :  { %v3007_v25 = vmul.f32 0.35355338, %v3003_v23  ;;  %v8446_v27 = vpop.f32.mrb[33].mxu0 }
 0xed7   :  { %v3008_v9 = vsel %vm1205_vm7, %v3007_v25, -inf }
 0xed8   :  { %3009 = vmax.xlane.f32.xlu1 %v3008_v9 }
 0xf65   :  { %v3010_v36 = vpop.xlane.xlu1 %3009 }
 0xf66   :  { %v3011_v38 = vsub.f32 %v3007_v25, %v3010_v36 }
 0xf68   :  { %v3012_v41 = vmul.f32 1.442695, %v3011_v38 }
 0xf6a   :  { %9303 = vpow2.f32 %v3012_v41 }
 0xf74   :  { %v9304_v29 = vpop.eup %9303 }
 0xf75   :  { %v3014_v33 = vsel %vm1205_vm7, %v9304_v29, 0.0 }
 0xf76   :  { %3015 = vadd.xlane.f32.xlu1 %v3014_v33 }
 0xf87   :  { %9147 = vrot.lane.b32.xlu1 %v9979_v39, %s10967_s10 }
0x1003   :  { %v3016_v14 = vpop.xlane.xlu1 %3015 }
0x1004   :  { %9305 = vrcp.f32 %v3016_v14 }
0x1007   :  { %v9148_v34 = vpop.permute.xlu1 %9147 }
0x1008   :  { %v9150_v35 = vunpack.i.h.bf16 %v9148_v34  ;;  %v9149_v6 = vunpack.i.l.bf16 %v9148_v34 }
0x100a   :  { %v8925_v37 = vpack.c.bf16 %v9150_v35, %v9149_v6 }
0x100c   :  { %8926 = vmatpush3.bf16.msra.mxu1 %v8925_v37 }
0x100d   :  { %8927 = vmatprep.subr.bf16.mxu1 %v9424_v42 }
0x100e   :  { %v9306_v30 = vpop.eup %9305 }
0x100f   :  { %v3018_v46 = vmul.f32 %v9306_v30, %v9304_v29 }
0x1011   :  { %8452 = vmatmul.mubr.msk.f32.vlgmr.msra.gmra.mrb[36].mxu1 %vm1205_vm7, %v3018_v46 }
0x1012   :  { %8458 = vmatprep.mubr.msk.f32.mxu1 %vm9409_vm4, %v9408_v40 }
0x1015   :  { %8930 = vmatpush3.bf16.xpose.msk.msra.mxu1 %vm9990_vm9, %v8928_v47 }
0x1016   :  { %8938 = vmatprep.subr.bf16.mxu1 %v9424_v42 }
0x101c   :  { %8459 = vmatmul.mubr.msk.f32.vlgmr.msra.gmra.mrb[38].mxu1 %vm527_vm5, %v3099_v48 }
0x101d   :  { %8479 = vmatprep.mubr.msk.f32.mxu1 %vm9409_vm4, %v9408_v40 }
0x10e4   :  { %v10147_v49 = vpop.f32.mrb[36].mxu1 }
0x10e5   :  { %v8453_v50 = vpop.f32.mrb[37].mxu1 }
0x10ef   :  { %v3176_v51 = vpop.f32.mrb[38].mxu1 }
0x10f0   :  { %v3180_v54 = vmul.f32 0.35355338, %v3176_v51  ;;  %v8460_v56 = vpop.f32.mrb[39].mxu1 }
0x10f2   :  { %v3181_v58 = vsel %vm1205_vm7, %v3180_v54, -inf }
0x10f3   :  { %3182 = vmax.xlane.f32.xlu1 %v3181_v58 }
0x1104   :  { %9162 = vrot.lane.b32.xlu1 %v9979_v39, %s10964_s11 }
0x1108   :  { %3271 = vrot.lane.b32.xlu1 %v10048_v28, %s10964_s11 }
0x1180   :  { %v3183_v59 = vpop.xlane.xlu1 %3182 }
0x1181   :  { %v3184_v60 = vsub.f32 %v3180_v54, %v3183_v59 }
0x1183   :  { %v3185_v61 = vmul.f32 1.442695, %v3184_v60 }
0x1184   :  { %v9163_v11 = vpop.permute.xlu1 %9162 }
0x1185   :  { %9307 = vpow2.f32 %v3185_v61  ;;  %v9165_v17 = vunpack.i.h.bf16 %v9163_v11  ;;  %v9164_v18 = vunpack.i.l.bf16 %v9163_v11 }
0x1187   :  { %v8935_v7 = vpack.c.bf16 %v9165_v17, %v9164_v18 }
0x1188   :  { %v3272_v10 = vpop.permute.xlu1 %3271 }
0x118f   :  { %v9308_v62 = vpop.eup %9307 }
0x1190   :  { %v3187_v63 = vsel %vm1205_vm7, %v9308_v62, 0.0 }
0x1191   :  { %3188 = vadd.xlane.f32.xlu0 %v3187_v63 }
0x11a7   :  { %9157 = vrot.lane.b32.xlu0 %v9979_v39, %s10970_s5 }
0x121e   :  { %v3189_v0 = vpop.xlane.xlu0 %3188 }
0x121f   :  { %9309 = vrcp.f32 %v3189_v0 }
0x1222   :  { %v9158_v1 = vpop.permute.xlu0 %9157 }
0x1223   :  { %v9160_v2 = vunpack.i.h.bf16 %v9158_v1  ;;  %v9159_v3 = vunpack.i.l.bf16 %v9158_v1 }
0x1225   :  { %v8932_v4 = vpack.c.bf16 %v9160_v2, %v9159_v3 }
0x1227   :  { %8933 = vmatpush3.bf16.msra.mxu0 %v8932_v4 }
0x1228   :  { %8934 = vmatprep.subr.bf16.mxu0 %v9424_v42 }
0x1229   :  { %v9310_v16 = vpop.eup %9309 }
0x122a   :  { %v3191_v20 = vmul.f32 %v9310_v16, %v9308_v62 }
0x122c   :  { %8466 = vmatmul.mubr.msk.f32.vlgmr.msra.gmra.mrb[34].mxu0 %vm1205_vm7, %v3191_v20 }
0x122d   :  { %8472 = vmatprep.mubr.msk.f32.mxu0 %vm9409_vm4, %v9408_v40 }
0x1230   :  { %8937 = vmatpush3.bf16.xpose.msk.msra.mxu0 %vm9990_vm9, %v8935_v7 }
0x1231   :  { %8945 = vmatprep.subr.bf16.mxu0 %v9424_v42 }
0x1237   :  { %8473 = vmatmul.mubr.msk.f32.vlgmr.msra.gmra.mrb[36].mxu0 %vm527_vm5, %v3272_v10  ;;  %v3632_v10 = vld [vmem:[%s10874_s16] sm:$0xff] }
0x1238   :  { %8493 = vmatprep.mubr.msk.f32.mxu0 %vm9409_vm4, %v9408_v40 }
0x12ff   :  { %v3267_v23 = vpop.f32.mrb[34].mxu0 }
0x1300   :  { %v8467_v25 = vpop.f32.mrb[35].mxu0 }
0x130a   :  { %v3349_v27 = vpop.f32.mrb[36].mxu0 }
0x130b   :  { %v3353_v9 = vmul.f32 0.35355338, %v3349_v27  ;;  %v8474_v36 = vpop.f32.mrb[37].mxu0  ;;  %v3635_v27 = vld [vmem:[%s10874_s16 + $0x18] sm:$0xff] }
0x130d   :  { %v3354_v38 = vsel %vm1205_vm7, %v3353_v9, -inf }
0x130e   :  { %3355 = vmax.xlane.f32.xlu0 %v3354_v38 }
0x1324   :  { %9167 = vrot.lane.b32.xlu0 %v9979_v39, %s10968_s0 }
0x1328   :  { %3444 = vrot.lane.b32.xlu0 %v10048_v28, %s10969_s7 }
0x139b   :  { %v3356_v41 = vpop.xlane.xlu0 %3355 }
0x139c   :  { %v3357_v29 = vsub.f32 %v3353_v9, %v3356_v41 }
0x139e   :  { %v3358_v33 = vmul.f32 1.442695, %v3357_v29 }
0x139f   :  { %v9168_v14 = vpop.permute.xlu0 %9167 }
0x13a0   :  { %9311 = vpow2.f32 %v3358_v33  ;;  %v9170_v34 = vunpack.i.h.bf16 %v9168_v14  ;;  %v9169_v35 = vunpack.i.l.bf16 %v9168_v14 }
0x13a2   :  { %v8939_v6 = vpack.c.bf16 %v9170_v34, %v9169_v35 }
0x13a3   :  { %v3445_v50 = vpop.permute.xlu0 %3444 }
0x13a4   :  { %8940 = vmatpush3.bf16.msra.mxu1 %v8939_v6  ;;  %v7776_v6 = vld [vmem:[%s10875_s17] ss:$0 sm:$0xff] }
0x13a5   :  { %8941 = vmatprep.subr.bf16.mxu1 %v9424_v42 }
0x13aa   :  { %v9312_v37 = vpop.eup %9311 }
0x13ab   :  { %v3360_v43 = vsel %vm1205_vm7, %v9312_v37, 0.0 }
0x13ac   :  { %3361 = vadd.xlane.f32.xlu1 %v3360_v43 }
0x13bd   :  { %9172 = vrot.lane.b32.xlu1 %v9979_v39, %s10969_s7 }
0x1439   :  { %v3362_v30 = vpop.xlane.xlu1 %3361 }
0x143a   :  { %9313 = vrcp.f32 %v3362_v30 }
0x143d   :  { %v9173_v28 = vpop.permute.xlu1 %9172 }
0x143e   :  { %v9175_v44 = vunpack.i.h.bf16 %v9173_v28  ;;  %v9174_v45 = vunpack.i.l.bf16 %v9173_v28 }
0x1440   :  { %v8942_v48 = vpack.c.bf16 %v9175_v44, %v9174_v45 }
0x1444   :  { %v9314_v46 = vpop.eup %9313 }
0x1445   :  { %v3364_v47 = vmul.f32 %v9314_v46, %v9312_v37 }
0x1447   :  { %8480 = vmatmul.mubr.msk.f32.vlgmr.msra.gmra.mrb[40].mxu1 %vm1205_vm7, %v3364_v47 }
0x1448   :  { %8944 = vmatpush3.bf16.xpose.msk.msra.mxu1 %vm9990_vm9, %v8942_v48  ;;  %8486 = vmatprep.mubr.msk.f32.mxu1 %vm9409_vm4, %v9408_v40 }
0x144f   :  { %8487 = vmatmul.mubr.msk.f32.vlgmr.msra.gmra.mrb[42].mxu1 %vm527_vm5, %v3445_v50 }
0x151a   :  { %v3440_v51 = vpop.f32.mrb[40].mxu1 }
0x151b   :  { %v8481_v54 = vpop.f32.mrb[41].mxu1 }
0x1522   :  { %v3522_v56 = vpop.f32.mrb[42].mxu1 }
0x1523   :  { %v3526_v58 = vmul.f32 0.35355338, %v3522_v56  ;;  %v8488_v59 = vpop.f32.mrb[43].mxu1 }
0x1525   :  { %v3527_v60 = vsel %vm1205_vm7, %v3526_v58, -inf }
0x1526   :  { %3528 = vmax.xlane.f32.xlu1 %v3527_v60 }
0x1537   :  { %2914 = vrot.lane.b32.xlu1 %v10105_v55, %s10972_s8 }
0x153b   :  { %2918 = vrot.lane.b32.xlu1 %v10107_v57, %s10973_s4 }
0x153f   :  { %2922 = vrot.lane.b32.xlu1 %v10131_v5, %s10974_s2 }
0x15b3   :  { %v3529_v61 = vpop.xlane.xlu1 %3528 }
0x15b4   :  { %v3530_v62 = vsub.f32 %v3526_v58, %v3529_v61  ;;  %v3765_v61 = vld [vmem:[%s10876_s18 + $0x8] sm:$0xff] }
0x15b6   :  { %v3531_v63 = vmul.f32 1.442695, %v3530_v62 }
0x15b7   :  { %v2915_v55 = vpop.permute.xlu1 %2914 }
0x15b8   :  { %9315 = vpow2.f32 %v3531_v63  ;;  %v2925_v18 = vsel %vm527_vm5, %v10103_v52, %v2915_v55  ;;  %v3634_v52 = vld [vmem:[%s10874_s16 + $0x10] sm:$0xff]  ;;  %v3858_v55 = vld [vmem:[%s10877_s20] sm:$0xff] }
0x15b9   :  { %v8952_v9 = vpack.c.bf16 %v3635_v27, %v3634_v52  ;;  %v3766_v63 = vld [vmem:[%s10876_s18 + $0x10] sm:$0xff] }
0x15bb   :  { %v2919_v5 = vpop.permute.xlu1 %2918 }
0x15bf   :  { %v2923_v17 = vpop.permute.xlu1 %2922 }
0x15c2   :  { %v9316_v0 = vpop.eup %9315 }
0x15c3   :  { %v3533_v1 = vsel %vm1205_vm7, %v9316_v0, 0.0 }
0x15c4   :  { %3534 = vadd.xlane.f32.xlu0 %v3533_v1 }
0x15da   :  { %9177 = vrot.lane.b32.xlu0 %v9979_v39, %s10971_s9  ;;  %v2926_v39 = vsel %vm1205_vm7, %v2925_v18, %v2919_v5  ;;  %v10246_v18 = vsub.s32 1, %v9800_v31 }
0x15db   :  { %v2927_v7 = vsel %vm1207_vm8, %v2926_v39, %v2923_v17 }
0x15de   :  { %3618 = vrot.lane.b32.xlu0 %v3267_v23, %s10972_s8  ;;  %v3633_v23 = vld [vmem:[%s10874_s16 + $0x8] sm:$0xff] }
0x15df   :  { %v8948_v25 = vpack.c.bf16 %v3633_v23, %v3632_v10  ;;  %v3761_v10 = vrot.slane %v10023_v13, %v10246_v18 }
0x15e2   :  { %3622 = vrot.lane.b32.xlu0 %v3440_v51, %s10973_s4 }
0x1651   :  { %v3535_v57 = vpop.xlane.xlu0 %3534 }
0x1652   :  { %9317 = vrcp.f32 %v3535_v57  ;;  %v3859_v57 = vld [vmem:[%s10877_s20 + $0x8] sm:$0xff] }
0x1655   :  { %v9178_v2 = vpop.permute.xlu0 %9177 }
0x1656   :  { %v9180_v3 = vunpack.i.h.bf16 %v9178_v2  ;;  %v9179_v4 = vunpack.i.l.bf16 %v9178_v2  ;;  %v8964_v2 = vpack.c.bf16 %v3859_v57, %v3858_v55  ;;  %v7789_v55 = vld [vmem:[%s10955_s6 + $0x30] sm:$0xff]  ;;  %v7790_v57 = vld [vmem:[%s10955_s6 + $0x38] sm:$0xff] }
0x1658   :  { %v8946_v11 = vpack.c.bf16 %v9180_v3, %v9179_v4 }
0x1659   :  { %v3619_v41 = vpop.permute.xlu0 %3618 }
0x165a   :  { %8947 = vmatpush3.bf16.msra.mxu0 %v8946_v11  ;;  %v3629_v33 = vsel %vm527_vm5, %v10147_v49, %v3619_v41  ;;  %v3861_v41 = vld [vmem:[%s10877_s20 + $0x18] sm:$0xff] }
0x165b   :  { %8949 = vmatprep.subr.bf16.mxu0 %v8948_v25 }
0x165c   :  { %v9318_v16 = vpop.eup %9317 }
0x165d   :  { %v3537_v20 = vmul.f32 %v9318_v16, %v9316_v0  ;;  %v3623_v29 = vpop.permute.xlu0 %3622  ;;  %v3767_v0 = vld [vmem:[%s10876_s18 + $0x18] sm:$0xff] }
0x165e   :  { %v3630_v14 = vsel %vm1205_vm7, %v3629_v33, %v3623_v29  ;;  %v8960_v1 = vpack.c.bf16 %v3767_v0, %v3766_v63  ;;  %v7779_v33 = vld [vmem:[%s10878_s19] ss:$0 sm:$0xff]  ;;  %v7788_v0 = vld [vmem:[%s10955_s6 + $0x28] sm:$0xff] }
0x165f   :  { %8494 = vmatmul.mubr.msk.f32.vlgmr.msra.gmra.mrb[38].mxu0 %vm1205_vm7, %v3537_v20  ;;  %v3755_v20 = vrot.slane %v10018_v12, %v10246_v18  ;;  %v7787_v63 = vld [vmem:[%s10955_s6 + $0x20] sm:$0xff]  ;;  %s10986_s6 = sld [smem:[#allocation22_spill]] }
0x1660   :  { %8504 = vmatprep.mubr.msk.f32.mxu0 %vm442_vm3, %v2927_v7  ;;  %8951 = vmatpush3.bf16.msra.mxu0 %v8948_v25 }
0x1661   :  { %8953 = vmatprep.subr.bf16.mxu0 %v8952_v9 }
0x1664   :  { %8955 = vmatpush3.bf16.msra.mxu0 %v8952_v9 }
0x1665   :  { %8965 = vmatprep.subr.bf16.mxu0 %v8964_v2 }
0x1732   :  { %v3613_v36 = vpop.f32.mrb[38].mxu0 }
0x1733   :  { %3626 = vrot.lane.b32.xlu1 %v3613_v36, %s10974_s2  ;;  %v8495_v38 = vpop.f32.mrb[39].mxu0 }
0x1734   :  { %v3860_v38 = vld [vmem:[%s10877_s20 + $0x10] sm:$0xff] }
0x1735   :  { %v8968_v29 = vpack.c.bf16 %v3861_v41, %v3860_v38 }
0x17a5   :  { %v3627_v34 = vpop.permute.xlu1 %3626 }
0x17a6   :  { %v3631_v35 = vsel %vm1207_vm8, %v3630_v14, %v3627_v34 }
0x17a7   :  { %8505 = vmatmul.mubr.msk.f32.vlgmr.msra.gmra.mrb[40].mxu0 %vm442_vm3, %v3631_v35 }
0x17a8   :  { %8967 = vmatpush3.bf16.msra.mxu0 %v8964_v2  ;;  %v8976_v2 = vpack.c.bf16 %v7790_v57, %v7789_v55 }
0x17a9   :  { %8969 = vmatprep.subr.bf16.mxu0 %v8968_v29 }
0x17ac   :  { %8971 = vmatpush3.bf16.msra.mxu0 %v8968_v29 }
0x17ad   :  { %8540 = vmatprep.subr.mxu0 %v9408_v40 }
0x187a   :  { %v8506_v37 = vpop.f32.mrb[40].mxu0 }
0x187b   :  { %v3721_v43 = vadd.f32 %v8506_v37, %v7776_v6  ;;  %v3715_v30 = vpop.f32.mrb[41].mxu0 }
0x187c   :  { %v3716_v28 = vadd.f32 %v7776_v6, %v3715_v30  ;;  %v7782_v30 = vld [vmem:[%s10879_s21] ss:$0 sm:$0xff] }
0x187d   :  { %v3725_v44 = vadd.f32 %v3721_v43, %v10033_v26 }
0x187e   :  { %v3724_v45 = vadd.f32 %v3716_v28, %v10029_v24  ;;  %v3764_v24 = vld [vmem:[%s10876_s18] sm:$0xff] }
0x187f   :  { %v3729_v49 = vsel %vm442_vm3, %v3725_v44, 0.0  ;;  %v8956_v62 = vpack.c.bf16 %v3765_v61, %v3764_v24 }
0x1880   :  { %3730 = vadd.xlane.f32.xlu1 %v3729_v49  ;;  %v3726_v46 = vsel %vm442_vm3, %v3724_v45, 0.0 }
0x1881   :  { %3727 = vadd.xlane.f32.xlu0 %v3726_v46  ;;  %8957 = vmatprep.subr.bf16.mxu1 %v8956_v62 }
0x1882   :  { %8959 = vmatpush3.bf16.msra.mxu1 %v8956_v62 }
0x1883   :  { %8961 = vmatprep.subr.bf16.mxu1 %v8960_v1 }
0x1886   :  { %8963 = vmatpush3.bf16.msra.mxu1 %v8960_v1  ;;  %v8972_v1 = vpack.c.bf16 %v7788_v0, %v7787_v63 }
0x1888   :  { %8973 = vmatprep.subr.bf16.mxu1 %v8972_v1 }
0x190d   :  { %v3731_v47 = vpop.xlane.xlu1 %3730 }
0x190e   :  { %v3733_v48 = vmul.f32 0.03125, %v3731_v47  ;;  %v3728_v50 = vpop.xlane.xlu0 %3727 }
0x190f   :  { %v3732_v51 = vmul.f32 0.03125, %v3728_v50 }
0x1910   :  { %v3735_v54 = vsub.f32 %v3725_v44, %v3733_v48 }
0x1911   :  { %v3734_v56 = vsub.f32 %v3724_v45, %v3732_v51 }
0x1912   :  { %v3737_v60 = vmul.f32 %v3735_v54, %v3735_v54 }
0x1913   :  { %v3736_v58 = vmul.f32 %v3734_v56, %v3734_v56 }
0x1914   :  { %v3741_v26 = vsel %vm442_vm3, %v3737_v60, 0.0 }
0x1915   :  { %v3738_v59 = vsel %vm442_vm3, %v3736_v58, 0.0 }
0x1916   :  { %3739 = vadd.xlane.f32.xlu0 %v3738_v59 }
0x191a   :  { %3742 = vadd.xlane.f32.xlu0 %v3741_v26 }
0x19a3   :  { %v3740_v5 = vpop.xlane.xlu0 %3739 }
0x19a4   :  { %v3744_v3 = vmul.f32 0.03125, %v3740_v5 }
0x19a6   :  { %v3746_v4 = vadd.f32 1e-05, %v3744_v3 }
0x19a7   :  { %v3743_v11 = vpop.xlane.xlu0 %3742 }
0x19a8   :  { %9319 = vrsqrt.f32 %v3746_v4  ;;  %v3745_v16 = vmul.f32 0.03125, %v3743_v11 }
0x19aa   :  { %v3747_v17 = vadd.f32 1e-05, %v3745_v16 }
0x19ac   :  { %9321 = vrsqrt.f32 %v3747_v17 }
0x19b2   :  { %v9320_v39 = vpop.eup %9319 }
0x19b3   :  { %v3750_v7 = vmul.f32 %v9320_v39, %v3734_v56 }
0x19b5   :  { %v3756_v23 = vmul.f32 %v3755_v20, %v3750_v7 }
0x19b6   :  { %v9322_v52 = vpop.eup %9321 }
0x19b7   :  { %v3751_v25 = vmul.f32 %v9322_v52, %v3735_v54  ;;  %v3762_v27 = vadd.f32 %v3761_v10, %v3756_v23 }
0x19b9   :  { %v3757_v9 = vmul.f32 %v3755_v20, %v3751_v25  ;;  %8515 = vmatprep.mubr.msk.f32.mxu1 %vm442_vm3, %v3762_v27  ;;  %v10289_v20 = vsub.s32 2, %v9800_v31  ;;  %v7792_v31 = vld [vmem:[%s10958_s3 + $0x1] ss:$0 sm:$0xff]  ;;  %s10975_s3 = smov 64  }
0x19bb   :  { %v3763_v36 = vadd.f32 %v3761_v10, %v3757_v9  ;;  %v3981_v39 = vrot.slane %v10018_v12, %v10289_v20  ;;  %v3987_v25 = vrot.slane %v10023_v13, %v10289_v20 }
0x19bd   :  { %8516 = vmatmul.mubr.msk.f32.vlgmr.msra.gmra.mrb[44].mxu1 %vm442_vm3, %v3763_v36 }
0x19be   :  { %8975 = vmatpush3.bf16.msra.mxu1 %v8972_v1 }
0x19bf   :  { %8977 = vmatprep.subr.bf16.mxu1 %v8976_v2 }
0x19c2   :  { %8979 = vmatpush3.bf16.msra.mxu1 %v8976_v2 }
0x19c3   :  { %8545 = vmatprep.subr.mxu1 %v9408_v40 }
0x1a90   :  { %v8517_v14 = vpop.f32.mrb[44].mxu1 }
0x1a91   :  { %v3853_v34 = vadd.f32 %v8517_v14, %v7779_v33  ;;  %v3847_v35 = vpop.f32.mrb[45].mxu1 }
0x1a92   :  { %v3848_v6 = vadd.f32 %v7779_v33, %v3847_v35 }
0x1a93   :  { %v3857_v43 = vmax.f32 %v3853_v34, 0.0 }
0x1a94   :  { %v3856_v37 = vmax.f32 %v3848_v6, 0.0 }
0x1a96   :  { %8526 = vmatprep.mubr.msk.f32.mxu0 %vm442_vm3, %v3856_v37 }
0x1a97   :  { %8527 = vmatmul.mubr.msk.f32.vlgmr.msra.gmra.mrb[42].mxu0 %vm442_vm3, %v3857_v43 }
0x1a98   :  { %8542 = vmatprep.mubr.msk.f32.mxu0 %vm9409_vm4, %v9408_v40 }
0x1b6a   :  { %v8528_v28 = vpop.f32.mrb[42].mxu0 }
0x1b6b   :  { %v3947_v44 = vadd.f32 %v8528_v28, %v7782_v30  ;;  %v3941_v45 = vpop.f32.mrb[43].mxu0 }
0x1b6c   :  { %v3942_v49 = vadd.f32 %v7782_v30, %v3941_v45 }
0x1b6d   :  { %v3951_v46 = vadd.f32 %v3947_v44, %v3763_v36 }
0x1b6e   :  { %v3950_v47 = vadd.f32 %v3942_v49, %v3762_v27 }
0x1b6f   :  { %v3955_v48 = vsel %vm442_vm3, %v3951_v46, 0.0 }
0x1b70   :  { %3956 = vadd.xlane.f32.xlu0 %v3955_v48  ;;  %v3952_v50 = vsel %vm442_vm3, %v3950_v47, 0.0 }
0x1b71   :  { %3953 = vadd.xlane.f32.xlu1 %v3952_v50 }
0x1bfd   :  { %v3957_v51 = vpop.xlane.xlu0 %3956 }
0x1bfe   :  { %v3959_v54 = vmul.f32 0.03125, %v3957_v51  ;;  %v3954_v56 = vpop.xlane.xlu1 %3953 }
0x1bff   :  { %v3958_v58 = vmul.f32 0.03125, %v3954_v56 }
0x1c00   :  { %v3961_v59 = vsub.f32 %v3951_v46, %v3959_v54 }
0x1c01   :  { %v3960_v60 = vsub.f32 %v3950_v47, %v3958_v58 }
0x1c02   :  { %v3963_v26 = vmul.f32 %v3961_v59, %v3961_v59 }
0x1c03   :  { %v3962_v24 = vmul.f32 %v3960_v60, %v3960_v60 }
0x1c04   :  { %v3967_v61 = vsel %vm442_vm3, %v3963_v26, 0.0 }
0x1c05   :  { %3968 = vadd.xlane.f32.xlu0 %v3967_v61  ;;  %v3964_v62 = vsel %vm442_vm3, %v3962_v24, 0.0 }
0x1c06   :  { %3965 = vadd.xlane.f32.xlu1 %v3964_v62 }
0x1c92   :  { %v3969_v5 = vpop.xlane.xlu0 %3968 }
0x1c93   :  { %v3971_v3 = vmul.f32 0.03125, %v3969_v5  ;;  %v3966_v4 = vpop.xlane.xlu1 %3965 }
0x1c94   :  { %v3970_v11 = vmul.f32 0.03125, %v3966_v4 }
0x1c95   :  { %v3973_v16 = vadd.f32 1e-05, %v3971_v3 }
0x1c96   :  { %v3972_v17 = vadd.f32 1e-05, %v3970_v11 }
0x1c97   :  { %9323 = vrsqrt.f32 %v3973_v16 }
0x1c98   :  { %9325 = vrsqrt.f32 %v3972_v17 }
0x1ca1   :  { %v9324_v7 = vpop.eup %9323 }
0x1ca2   :  { %v9326_v10 = vpop.eup %9325  ;;  %v3977_v23 = vmul.f32 %v9324_v7, %v3961_v59 }
0x1ca3   :  { %v3976_v52 = vmul.f32 %v9326_v10, %v3960_v60 }
0x1ca4   :  { %v3983_v27 = vmul.f32 %v3981_v39, %v3977_v23 }
0x1ca5   :  { %v3982_v9 = vmul.f32 %v3981_v39, %v3976_v52 }
0x1ca6   :  { %v10297_v38 = vadd.f32 %v3987_v25, %v3983_v27 }
0x1ca7   :  { %v10295_v36 = vadd.f32 %v3987_v25, %v3982_v9 }
0x1ca9   :  { %8537 = vmatprep.mubr.msk.f32.mxu1 %vm442_vm3, %v10295_v36 }
0x1caa   :  { %8538 = vmatmul.mubr.msk.f32.vlgmr.msra.gmra.mrb[46].mxu1 %vm442_vm3, %v10297_v38 }
0x1cab   :  { %8547 = vmatprep.mubr.msk.f32.mxu1 %vm9409_vm4, %v9408_v40 }
0x1d7d   :  { %v8539_v12 = vpop.f32.mrb[46].mxu1 }
0x1d7e   :  { %v4079_v13 = vpop.f32.mrb[47].mxu1  ;;  %v10322_v29 = vadd.f32 %v8539_v12, %v7792_v31 }
0x1d7f   :  { %v10308_v41 = vadd.f32 %v7792_v31, %v4079_v13 }
0x1d81   :  { %4256 = vrot.lane.b32.xlu0 %v10308_v41, %s10970_s5  ;;  %4089 = vrot.lane.b32.xlu1 %v10308_v41, %s10967_s10 }
0x1d85   :  { %4421 = vrot.lane.b32.xlu0 %v10308_v41, %s10964_s11  ;;  %4254 = vrot.lane.b32.xlu1 %v10308_v41, %s10963_s1 }
0x1d89   :  { %4588 = vrot.lane.b32.xlu0 %v10308_v41, %s10969_s7  ;;  %4423 = vrot.lane.b32.xlu1 %v10308_v41, %s10968_s0 }
0x1d8d   :  { %4938 = vrot.lane.b32.xlu0 %v10322_v29, %s10970_s5  ;;  %4590 = vrot.lane.b32.xlu1 %v10308_v41, %s10971_s9 }
0x1d91   :  { %5105 = vrot.lane.b32.xlu0 %v10322_v29, %s10968_s0  ;;  %4771 = vrot.lane.b32.xlu1 %v10322_v29, %s10967_s10 }
0x1d95   :  { %5272 = vrot.lane.b32.xlu0 %v10322_v29, %s10971_s9  ;;  %4936 = vrot.lane.b32.xlu1 %v10322_v29, %s10963_s1 }
0x1d99   :  { %4178 = vrot.lane.b32.xlu0 %v10308_v41, %s10975_s3  ;;  %5103 = vrot.lane.b32.xlu1 %v10322_v29, %s10964_s11 }
0x1d9d   :  { %5270 = vrot.lane.b32.xlu1 %v10322_v29, %s10969_s7 }
0x1da1   :  { %4345 = vrot.lane.b32.xlu1 %v10308_v41, %s10976_s28 }
0x1df3   :  { %v4257_v33 = vpop.permute.xlu0 %4256  ;;  %v4090_v14 = vpop.permute.xlu1 %4089 }
0x1df4   :  { %8541 = vmatpush3.xpose.msk.msra.mxu0 %vm527_vm5, %v4090_v14 }
0x1df5   :  { %8550 = vmatprep.subr.mxu0 %v9408_v40 }
0x1df7   :  { %v4422_v34 = vpop.permute.xlu0 %4421  ;;  %8543 = vmatmul.mubr.msk.f32.vlgmr.msra.gmra.mrb[44].mxu0 %vm527_vm5, %v10308_v41  ;;  %v4255_v35 = vpop.permute.xlu1 %4254 }
0x1df8   :  { %8551 = vmatpush3.xpose.msk.msra.mxu0 %vm527_vm5, %v4257_v33  ;;  %8552 = vmatprep.mubr.msk.f32.mxu0 %vm9409_vm4, %v9408_v40 }
0x1df9   :  { %8560 = vmatprep.subr.mxu0 %v9408_v40 }
0x1dfb   :  { %v4589_v6 = vpop.permute.xlu0 %4588  ;;  %8553 = vmatmul.mubr.msk.f32.vlgmr.msra.gmra.mrb[46].mxu0 %vm527_vm5, %v4255_v35  ;;  %v4424_v37 = vpop.permute.xlu1 %4423 }
0x1dfc   :  { %8561 = vmatpush3.xpose.msk.msra.mxu0 %vm527_vm5, %v4424_v37  ;;  %8562 = vmatprep.mubr.msk.f32.mxu0 %vm9409_vm4, %v9408_v40 }
0x1dfd   :  { %8570 = vmatprep.subr.mxu0 %v9408_v40 }
0x1dff   :  { %v4939_v43 = vpop.permute.xlu0 %4938  ;;  %8563 = vmatmul.mubr.msk.f32.vlgmr.msra.gmra.mrb[48].mxu0 %vm527_vm5, %v4422_v34  ;;  %v4591_v30 = vpop.permute.xlu1 %4590 }
0x1e00   :  { %8571 = vmatpush3.xpose.msk.msra.mxu0 %vm527_vm5, %v4591_v30  ;;  %8572 = vmatprep.mubr.msk.f32.mxu0 %vm9409_vm4, %v9408_v40 }
0x1e01   :  { %8580 = vmatprep.subr.mxu0 %v9408_v40 }
0x1e03   :  { %v5106_v28 = vpop.permute.xlu0 %5105  ;;  %8573 = vmatmul.mubr.msk.f32.vlgmr.msra.gmra.mrb[50].mxu0 %vm527_vm5, %v4589_v6  ;;  %v4772_v44 = vpop.permute.xlu1 %4771 }
0x1e04   :  { %8581 = vmatpush3.xpose.msk.msra.mxu0 %vm527_vm5, %v4772_v44  ;;  %8582 = vmatprep.mubr.msk.f32.mxu0 %vm9409_vm4, %v9408_v40 }
0x1e05   :  { %8590 = vmatprep.subr.mxu0 %v9408_v40 }
0x1e07   :  { %v5273_v45 = vpop.permute.xlu0 %5272  ;;  %8583 = vmatmul.mubr.msk.f32.vlgmr.msra.gmra.mrb[52].mxu0 %vm527_vm5, %v10322_v29  ;;  %v4937_v49 = vpop.permute.xlu1 %4936 }
0x1e08   :  { %8591 = vmatpush3.xpose.msk.msra.mxu0 %vm527_vm5, %v4939_v43  ;;  %8592 = vmatprep.mubr.msk.f32.mxu0 %vm9409_vm4, %v9408_v40 }
0x1e09   :  { %8600 = vmatprep.subr.mxu0 %v9408_v40 }
0x1e0b   :  { %v4179_v46 = vpop.permute.xlu0 %4178  ;;  %8593 = vmatmul.mubr.msk.f32.vlgmr.msra.gmra.mrb[54].mxu0 %vm527_vm5, %v4937_v49  ;;  %v5104_v47 = vpop.permute.xlu1 %5103 }
0x1e0c   :  { %8546 = vmatpush3.msra.mxu1 %v4179_v46  ;;  %8601 = vmatpush3.xpose.msk.msra.mxu0 %vm527_vm5, %v5106_v28 }
0x1e0d   :  { %8602 = vmatprep.mubr.msk.f32.mxu0 %vm9409_vm4, %v9408_v40  ;;  %8610 = vmatprep.subr.mxu0 %v9408_v40 }
0x1e0e   :  { %8555 = vmatprep.subr.mxu1 %v9408_v40 }
0x1e0f   :  { %8603 = vmatmul.mubr.msk.f32.vlgmr.msra.gmra.mrb[56].mxu0 %vm527_vm5, %v5104_v47  ;;  %v5271_v48 = vpop.permute.xlu1 %5270 }
0x1e10   :  { %8611 = vmatpush3.xpose.msk.msra.mxu0 %vm527_vm5, %v5273_v45  ;;  %8612 = vmatprep.mubr.msk.f32.mxu0 %vm9409_vm4, %v9408_v40 }
0x1e13   :  { %8613 = vmatmul.mubr.msk.f32.vlgmr.msra.gmra.mrb[58].mxu0 %vm527_vm5, %v5271_v48  ;;  %v10404_v43 = vpop.permute.xlu1 %4345 }
0x1eca   :  { %v4161_v50 = vpop.f32.mrb[44].mxu0 }
0x1ecb   :  { %v4165_v51 = vmul.f32 0.35355338, %v4161_v50  ;;  %v8544_v54 = vpop.f32.mrb[45].mxu0 }
0x1ecd   :  { %v4166_v56 = vadd.f32 %v4165_v51, %v9805_v32 }
0x1ece   :  { %v4328_v58 = vpop.f32.mrb[46].mxu0 }
0x1ecf   :  { %v4332_v59 = vmul.f32 0.35355338, %v4328_v58  ;;  %v8554_v60 = vpop.f32.mrb[47].mxu0  ;;  %v4167_v26 = vsel %vm527_vm5, %v4166_v56, -inf }
0x1ed0   :  { %4168 = vmax.xlane.f32.xlu0 %v4167_v26 }
0x1ed1   :  { %v4333_v24 = vadd.f32 %v4332_v59, %v9805_v32 }
0x1ed2   :  { %v4495_v61 = vpop.f32.mrb[48].mxu0 }
0x1ed3   :  { %v4499_v62 = vmul.f32 0.35355338, %v4495_v61  ;;  %v8564_v63 = vpop.f32.mrb[49].mxu0  ;;  %v4334_v0 = vsel %vm527_vm5, %v4333_v24, -inf }
0x1ed4   :  { %4335 = vmax.xlane.f32.xlu1 %v4334_v0 }
0x1ed5   :  { %v4500_v1 = vadd.f32 %v4499_v62, %v9805_v32 }
0x1ed6   :  { %v4662_v55 = vpop.f32.mrb[50].mxu0 }
0x1ed7   :  { %v4666_v57 = vmul.f32 0.35355338, %v4662_v55  ;;  %v8574_v2 = vpop.f32.mrb[51].mxu0  ;;  %v4501_v5 = vsel %vm527_vm5, %v4500_v1, -inf }
0x1ed8   :  { %4502 = vmax.xlane.f32.xlu0 %v4501_v5 }
0x1ed9   :  { %v4667_v3 = vadd.f32 %v4666_v57, %v9805_v32 }
0x1eda   :  { %v4843_v4 = vpop.f32.mrb[52].mxu0 }
0x1edb   :  { %v4847_v11 = vmul.f32 0.35355338, %v4843_v4  ;;  %v8584_v16 = vpop.f32.mrb[53].mxu0  ;;  %v4668_v17 = vsel %vm527_vm5, %v4667_v3, -inf }
0x1edc   :  { %4669 = vmax.xlane.f32.xlu0 %v4668_v17 }
0x1edd   :  { %v4848_v39 = vadd.f32 %v4847_v11, %v9805_v32 }
0x1ede   :  { %v5010_v7 = vpop.f32.mrb[54].mxu0 }
0x1edf   :  { %v5014_v10 = vmul.f32 0.35355338, %v5010_v7  ;;  %v8594_v23 = vpop.f32.mrb[55].mxu0  ;;  %v4849_v52 = vsel %vm527_vm5, %v4848_v39, -inf }
0x1ee0   :  { %4850 = vmax.xlane.f32.xlu1 %v4849_v52 }
0x1ee1   :  { %v5015_v25 = vadd.f32 %v5014_v10, %v9805_v32 }
0x1ee2   :  { %v5177_v27 = vpop.f32.mrb[56].mxu0 }
0x1ee3   :  { %v5181_v9 = vmul.f32 0.35355338, %v5177_v27  ;;  %v8604_v31 = vpop.f32.mrb[57].mxu0  ;;  %v5016_v12 = vsel %vm527_vm5, %v5015_v25, -inf }
0x1ee4   :  { %5017 = vmax.xlane.f32.xlu0 %v5016_v12 }
0x1ee5   :  { %v5182_v13 = vadd.f32 %v5181_v9, %v9805_v32 }
0x1ee6   :  { %v5344_v33 = vpop.f32.mrb[58].mxu0 }
0x1ee7   :  { %v5348_v14 = vmul.f32 0.35355338, %v5344_v33  ;;  %v8614_v34 = vpop.f32.mrb[59].mxu0  ;;  %v5183_v35 = vsel %vm527_vm5, %v5182_v13, -inf }
0x1ee8   :  { %5184 = vmax.xlane.f32.xlu1 %v5183_v35 }
0x1ee9   :  { %v5349_v6 = vadd.f32 %v5348_v14, %v9805_v32 }
0x1eeb   :  { %v5350_v37 = vsel %vm527_vm5, %v5349_v6, -inf }
0x1eec   :  { %5351 = vmax.xlane.f32.xlu0 %v5350_v37 }
0x1ef9   :  { %4679 = vrot.lane.b32.xlu1 %v10308_v41, %s10977_s13 }
0x1f02   :  { %4512 = vrot.lane.b32.xlu0 %v10308_v41, %s10978_s22 }
0x1f5d   :  { %v4169_v30 = vpop.xlane.xlu0 %4168 }
0x1f5e   :  { %v4170_v28 = vsub.f32 %v4166_v56, %v4169_v30 }
0x1f60   :  { %v4171_v44 = vmul.f32 1.442695, %v4170_v28 }
0x1f61   :  { %v4336_v45 = vpop.xlane.xlu1 %4335 }
0x1f62   :  { %9327 = vpow2.f32 %v4171_v44  ;;  %v4337_v49 = vsub.f32 %v4333_v24, %v4336_v45 }
0x1f64   :  { %v4338_v46 = vmul.f32 1.442695, %v4337_v49 }
0x1f65   :  { %v4503_v47 = vpop.xlane.xlu0 %4502 }
0x1f66   :  { %9329 = vpow2.f32 %v4338_v46  ;;  %v4504_v32 = vsub.f32 %v4500_v1, %v4503_v47 }
0x1f68   :  { %v4505_v48 = vmul.f32 1.442695, %v4504_v32 }
0x1f69   :  { %v4670_v50 = vpop.xlane.xlu0 %4669 }
0x1f6a   :  { %9331 = vpow2.f32 %v4505_v48  ;;  %v4671_v51 = vsub.f32 %v4667_v3, %v4670_v50 }
0x1f6c   :  { %v9328_v54 = vpop.eup %9327  ;;  %v4672_v58 = vmul.f32 1.442695, %v4671_v51 }
0x1f6d   :  { %v4173_v41 = vsel %vm527_vm5, %v9328_v54, 0.0  ;;  %v4851_v62 = vpop.xlane.xlu1 %4850 }
0x1f6e   :  { %9333 = vpow2.f32 %v4672_v58  ;;  %4174 = vadd.xlane.f32.xlu1 %v4173_v41  ;;  %v4852_v63 = vsub.f32 %v4848_v39, %v4851_v62 }
0x1f70   :  { %v9330_v59 = vpop.eup %9329  ;;  %v4853_v57 = vmul.f32 1.442695, %v4852_v63 }
0x1f71   :  { %v4340_v56 = vsel %vm527_vm5, %v9330_v59, 0.0  ;;  %v5018_v0 = vpop.xlane.xlu0 %5017 }
0x1f72   :  { %4341 = vadd.xlane.f32.xlu0 %v4340_v56  ;;  %v5019_v55 = vsub.f32 %v5015_v25, %v5018_v0  ;;  %9335 = vpow2.f32 %v4853_v57 }
0x1f74   :  { %v9332_v60 = vpop.eup %9331  ;;  %v5020_v3 = vmul.f32 1.442695, %v5019_v55 }
0x1f75   :  { %v4507_v26 = vsel %vm527_vm5, %v9332_v60, 0.0  ;;  %v5185_v1 = vpop.xlane.xlu1 %5184 }
0x1f76   :  { %4508 = vadd.xlane.f32.xlu1 %v4507_v26  ;;  %v5186_v2 = vsub.f32 %v5182_v13, %v5185_v1  ;;  %9337 = vpow2.f32 %v5020_v3 }
0x1f78   :  { %v10409_v24 = vpop.eup %9333  ;;  %v5187_v4 = vmul.f32 1.442695, %v5186_v2  ;;  %v7819_v2 = vld [vmem:[%s10959_s29 + $0x20] sm:$0xff] }
0x1f79   :  { %v4674_v61 = vsel %vm527_vm5, %v10409_v24, 0.0  ;;  %v5352_v5 = vpop.xlane.xlu0 %5351  ;;  %v4680_v9 = vpop.permute.xlu1 %4679 }
0x1f7a   :  { %4675 = vadd.xlane.f32.xlu0 %v4674_v61  ;;  %v5353_v11 = vsub.f32 %v5349_v6, %v5352_v5  ;;  %9339 = vpow2.f32 %v5187_v4  ;;  %v7820_v5 = vld [vmem:[%s10959_s29 + $0x28] sm:$0xff]  ;;  %v7821_v4 = vld [vmem:[%s10959_s29 + $0x30] sm:$0xff] }
0x1f7b   :  { %v8980_v3 = vpack.c.bf16 %v7820_v5, %v7819_v2 }
0x1f7c   :  { %v5354_v16 = vmul.f32 1.442695, %v5353_v11  ;;  %v9336_v17 = vpop.eup %9335  ;;  %v7822_v11 = vld [vmem:[%s10959_s29 + $0x38] sm:$0xff]  ;;  %s10985_s29 = sld [smem:[#allocation21_spill]] }
0x1f7d   :  { %v4855_v10 = vsel %vm527_vm5, %v9336_v17, 0.0  ;;  %v4513_v31 = vpop.permute.xlu0 %4512  ;;  %8981 = vmatprep.subr.bf16.mxu0 %v8980_v3 }
0x1f7e   :  { %9341 = vpow2.f32 %v5354_v16  ;;  %8983 = vmatpush3.bf16.msra.mxu0 %v8980_v3  ;;  %v8984_v16 = vpack.c.bf16 %v7822_v11, %v7821_v4 }
0x1f80   :  { %v10417_v7 = vpop.eup %9337  ;;  %8985 = vmatprep.subr.bf16.mxu0 %v8984_v16 }
0x1f81   :  { %v5022_v23 = vsel %vm527_vm5, %v10417_v7, 0.0 }
0x1f82   :  { %8987 = vmatpush3.bf16.msra.mxu0 %v8984_v16 }
0x1f84   :  { %v10420_v39 = vpop.eup %9339 }
0x1f85   :  { %v5189_v52 = vsel %vm527_vm5, %v10420_v39, 0.0 }
0x1f87   :  { %5027 = vrot.lane.b32.xlu1 %v10322_v29, %s10976_s28 }
0x1f88   :  { %v10426_v25 = vpop.eup %9341 }
0x1f89   :  { %v5356_v27 = vsel %vm527_vm5, %v10426_v25, 0.0 }
0x1f90   :  { %4860 = vrot.lane.b32.xlu0 %v10322_v29, %s10975_s3  ;;  %s10980_s3 = sld [smem:[#allocation16_spill]] }
0x1fab   :  { %4856 = vadd.xlane.f32.xlu1 %v4855_v10 }
0x1faf   :  { %5023 = vadd.xlane.f32.xlu0 %v5022_v23  ;;  %5190 = vadd.xlane.f32.xlu1 %v5189_v52 }
0x1fb3   :  { %5357 = vadd.xlane.f32.xlu1 %v5356_v27 }
0x1fc4   :  { %5361 = vrot.lane.b32.xlu1 %v10322_v29, %s10977_s13 }
0x1fc5   :  { %5194 = vrot.lane.b32.xlu0 %v10322_v29, %s10978_s22  ;;  %s10984_s22 = sld [smem:[#allocation20_spill]] }
0x1ffb   :  { %v4175_v12 = vpop.xlane.xlu1 %4174 }
0x1ffc   :  { %9343 = vrcp.f32 %v4175_v12 }
0x1fff   :  { %v4342_v13 = vpop.xlane.xlu0 %4341 }
0x2000   :  { %9345 = vrcp.f32 %v4342_v13 }
0x2003   :  { %v4509_v33 = vpop.xlane.xlu1 %4508 }
0x2004   :  { %9347 = vrcp.f32 %v4509_v33 }
0x2006   :  { %v9344_v14 = vpop.eup %9343 }
0x2007   :  { %v4177_v34 = vmul.f32 %v9344_v14, %v9328_v54  ;;  %v4676_v35 = vpop.xlane.xlu0 %4675  ;;  %v5028_v45 = vpop.permute.xlu1 %5027 }
0x2008   :  { %9349 = vrcp.f32 %v4676_v35 }
0x2009   :  { %8548 = vmatmul.mubr.msk.f32.vlgmr.msra.gmra.mrb[48].mxu1 %vm527_vm5, %v4177_v34 }
0x200a   :  { %v9346_v6 = vpop.eup %9345  ;;  %8556 = vmatpush3.msra.mxu1 %v10404_v43  ;;  %8557 = vmatprep.mubr.msk.f32.mxu1 %vm9409_vm4, %v9408_v40 }
0x200b   :  { %v4344_v29 = vmul.f32 %v9346_v6, %v9330_v59  ;;  %8565 = vmatprep.subr.mxu1 %v9408_v40  ;;  %v4861_v44 = vpop.permute.xlu0 %4860 }
0x200d   :  { %8558 = vmatmul.mubr.msk.f32.vlgmr.msra.gmra.mrb[50].mxu1 %vm527_vm5, %v4344_v29 }
0x200e   :  { %v9348_v37 = vpop.eup %9347  ;;  %8566 = vmatpush3.msra.mxu1 %v4513_v31  ;;  %8567 = vmatprep.mubr.msk.f32.mxu1 %vm9409_vm4, %v9408_v40 }
0x200f   :  { %v4511_v30 = vmul.f32 %v9348_v37, %v9332_v60  ;;  %8575 = vmatprep.subr.mxu1 %v9408_v40 }
0x2011   :  { %8568 = vmatmul.mubr.msk.f32.vlgmr.msra.gmra.mrb[52].mxu1 %vm527_vm5, %v4511_v30  ;;  %v7837_v30 = vld [vmem:[%s10960_s30 + $0x30] sm:$0xff] }
0x2012   :  { %v9350_v28 = vpop.eup %9349  ;;  %8576 = vmatpush3.msra.mxu1 %v4680_v9  ;;  %8577 = vmatprep.mubr.msk.f32.mxu1 %vm9409_vm4, %v9408_v40 }
0x2013   :  { %v4678_v43 = vmul.f32 %v9350_v28, %v10409_v24  ;;  %8585 = vmatprep.subr.mxu1 %v9408_v40  ;;  %v7838_v28 = vld [vmem:[%s10960_s30 + $0x38] sm:$0xff] }
0x2015   :  { %8578 = vmatmul.mubr.msk.f32.vlgmr.msra.gmra.mrb[54].mxu1 %vm527_vm5, %v4678_v43 }
0x2016   :  { %8586 = vmatpush3.msra.mxu1 %v4861_v44  ;;  %8587 = vmatprep.mubr.msk.f32.mxu1 %vm9409_vm4, %v9408_v40 }
0x2017   :  { %8595 = vmatprep.subr.mxu1 %v9408_v40 }
0x2038   :  { %v4857_v49 = vpop.xlane.xlu1 %4856 }
0x2039   :  { %9351 = vrcp.f32 %v4857_v49  ;;  %v9000_v49 = vpack.c.bf16 %v7838_v28, %v7837_v30 }
0x203c   :  { %v5024_v46 = vpop.xlane.xlu0 %5023  ;;  %v5191_v47 = vpop.xlane.xlu1 %5190 }
0x203d   :  { %9353 = vrcp.f32 %v5024_v46 }
0x203e   :  { %9355 = vrcp.f32 %v5191_v47 }
0x2040   :  { %v5358_v32 = vpop.xlane.xlu1 %5357  ;;  %v5195_v41 = vpop.permute.xlu0 %5194 }
0x2041   :  { %9357 = vrcp.f32 %v5358_v32 }
0x2043   :  { %v9352_v48 = vpop.eup %9351 }
0x2044   :  { %v4859_v50 = vmul.f32 %v9352_v48, %v9336_v17  ;;  %v5362_v60 = vpop.permute.xlu1 %5361  ;;  %v7835_v17 = vld [vmem:[%s10960_s30 + $0x20] sm:$0xff] }
0x2046   :  { %8588 = vmatmul.mubr.msk.f32.vlgmr.msra.gmra.mrb[56].mxu1 %vm527_vm5, %v4859_v50 }
0x2047   :  { %v9354_v51 = vpop.eup %9353  ;;  %8596 = vmatpush3.msra.mxu1 %v5028_v45  ;;  %8597 = vmatprep.mubr.msk.f32.mxu1 %vm9409_vm4, %v9408_v40 }
0x2048   :  { %v5026_v54 = vmul.f32 %v9354_v51, %v10417_v7  ;;  %8605 = vmatprep.subr.mxu1 %v9408_v40  ;;  %v9356_v58 = vpop.eup %9355  ;;  %v7836_v7 = vld [vmem:[%s10960_s30 + $0x28] sm:$0xff]  ;;  %s10979_s30 = sld [smem:[#allocation15_spill]] }
0x2049   :  { %v5193_v59 = vmul.f32 %v9356_v58, %v10420_v39  ;;  %v8996_v10 = vpack.c.bf16 %v7836_v7, %v7835_v17 }
0x204a   :  { %8598 = vmatmul.mubr.msk.f32.vlgmr.msra.gmra.mrb[58].mxu1 %vm527_vm5, %v5026_v54 }
0x204b   :  { %8606 = vmatpush3.msra.mxu1 %v5195_v41  ;;  %8607 = vmatprep.mubr.msk.f32.mxu1 %vm9409_vm4, %v9408_v40  ;;  %v9358_v56 = vpop.eup %9357 }
0x204c   :  { %8615 = vmatprep.subr.mxu1 %v9408_v40  ;;  %v5360_v26 = vmul.f32 %v9358_v56, %v10426_v25  ;;  %8997 = vmatprep.subr.bf16.mxu0 %v8996_v10 }
0x204e   :  { %8608 = vmatmul.mubr.msk.f32.vlgmr.msra.gmra.mrb[60].mxu1 %vm527_vm5, %v5193_v59 }
0x204f   :  { %8616 = vmatpush3.msra.mxu1 %v5362_v60  ;;  %8617 = vmatprep.mubr.msk.f32.mxu1 %vm9409_vm4, %v9408_v40 }
0x2052   :  { %8618 = vmatmul.mubr.msk.f32.vlgmr.msra.gmra.mrb[62].mxu1 %vm527_vm5, %v5360_v26 }
0x20dc   :  { %v4250_v24 = vpop.f32.mrb[48].mxu1 }
0x20dd   :  { %v8549_v61 = vpop.f32.mrb[49].mxu1 }
0x20e0   :  { %v4417_v62 = vpop.f32.mrb[50].mxu1 }
0x20e1   :  { %4756 = vrot.lane.b32.xlu0 %v4417_v62, %s10972_s8  ;;  %v8559_v63 = vpop.f32.mrb[51].mxu1 }
0x20e4   :  { %v4584_v0 = vpop.f32.mrb[52].mxu1 }
0x20e5   :  { %4760 = vrot.lane.b32.xlu1 %v4584_v0, %s10973_s4  ;;  %v8569_v1 = vpop.f32.mrb[53].mxu1 }
0x20e8   :  { %v4751_v55 = vpop.f32.mrb[54].mxu1 }
0x20e9   :  { %4764 = vrot.lane.b32.xlu1 %v4751_v55, %s10974_s2  ;;  %v8579_v57 = vpop.f32.mrb[55].mxu1 }
0x2119   :  { %v4932_v39 = vpop.f32.mrb[56].mxu1 }
0x211a   :  { %v8589_v23 = vpop.f32.mrb[57].mxu1 }
0x211b   :  { %v7827_v23 = vld [vmem:[%s10870_s12 + $0x20] sm:$0xff] }
0x211d   :  { %v5099_v52 = vpop.f32.mrb[58].mxu1 }
0x211e   :  { %5438 = vrot.lane.b32.xlu0 %v5099_v52, %s10972_s8  ;;  %v8599_v25 = vpop.f32.mrb[59].mxu1  ;;  %v7828_v52 = vld [vmem:[%s10870_s12 + $0x28] sm:$0xff] }
0x211f   :  { %v8988_v25 = vpack.c.bf16 %v7828_v52, %v7827_v23 }
0x2121   :  { %v5266_v27 = vpop.f32.mrb[60].mxu1  ;;  %8989 = vmatprep.subr.bf16.mxu1 %v8988_v25 }
0x2122   :  { %5442 = vrot.lane.b32.xlu0 %v5266_v27, %s10973_s4  ;;  %v8609_v9 = vpop.f32.mrb[61].mxu1  ;;  %8991 = vmatpush3.bf16.msra.mxu1 %v8988_v25  ;;  %v7829_v27 = vld [vmem:[%s10870_s12 + $0x30] sm:$0xff] }
0x2123   :  { %v7830_v9 = vld [vmem:[%s10870_s12 + $0x38] sm:$0xff] }
0x2125   :  { %v5433_v31 = vpop.f32.mrb[62].mxu1 }
0x2126   :  { %5446 = vrot.lane.b32.xlu1 %v5433_v31, %s10974_s2  ;;  %v8619_v12 = vpop.f32.mrb[63].mxu1  ;;  %v8992_v31 = vpack.c.bf16 %v7830_v9, %v7829_v27 }
0x2128   :  { %8993 = vmatprep.subr.bf16.mxu1 %v8992_v31 }
0x2129   :  { %8995 = vmatpush3.bf16.msra.mxu1 %v8992_v31 }
0x212a   :  { %9004 = vmatprep.subr.bf16.mxu1 %v9424_v42 }
0x2153   :  { %v4757_v13 = vpop.permute.xlu0 %4756 }
0x2154   :  { %v4767_v14 = vsel %vm527_vm5, %v4250_v24, %v4757_v13 }
0x2157   :  { %v4761_v33 = vpop.permute.xlu1 %4760 }
0x2158   :  { %v4768_v34 = vsel %vm1205_vm7, %v4767_v14, %v4761_v33 }
0x215b   :  { %v4765_v35 = vpop.permute.xlu1 %4764 }
0x215c   :  { %v4769_v6 = vsel %vm1207_vm8, %v4768_v34, %v4765_v35 }
0x215d   :  { %8628 = vmatprep.mubr.msk.f32.mxu0 %vm442_vm3, %v4769_v6  ;;  %v10571_v6 = vld [vmem:[%s10979_s30 + $0x4] sm:$0x7] }
0x2190   :  { %v5439_v29 = vpop.permute.xlu0 %5438 }
0x2191   :  { %v5449_v43 = vsel %vm527_vm5, %v4932_v39, %v5439_v29  ;;  %v10576_v29 = vld [vmem:[%s10980_s3 + $0x4] sm:$0x7] }
0x2194   :  { %v5443_v37 = vpop.permute.xlu0 %5442 }
0x2195   :  { %v5450_v44 = vsel %vm1205_vm7, %v5449_v43, %v5443_v37  ;;  %v5577_v37 = vrot.slane %v10571_v6, %v10013_v15  ;;  %v5583_v43 = vrot.slane %v10576_v29, %v10013_v15 }
0x2198   :  { %v5447_v45 = vpop.permute.xlu1 %5446 }
0x2199   :  { %v5451_v46 = vsel %vm1207_vm8, %v5450_v44, %v5447_v45 }
0x219a   :  { %8629 = vmatmul.mubr.msk.f32.vlgmr.msra.gmra.mrb[60].mxu0 %vm442_vm3, %v5451_v46 }
0x219b   :  { %8999 = vmatpush3.bf16.msra.mxu0 %v8996_v10  ;;  %8650 = vmatprep.mubr.msk.f32.mxu0 %vm442_vm3, %v9930_v19  ;;  %v7824_v19 = vld [vmem:[%s10962_s14 + $0x1] ss:$0 sm:$0xff]  ;;  %s10981_s14 = sld [smem:[#allocation17_spill]] }
0x219c   :  { %9001 = vmatprep.subr.bf16.mxu0 %v9000_v49 }
0x219f   :  { %9003 = vmatpush3.bf16.msra.mxu0 %v9000_v49 }
0x21a0   :  { %9011 = vmatprep.subr.bf16.mxu0 %v9424_v42 }
0x21a1   :  { %v7832_v15 = vld [vmem:[%s10981_s14 + $0x1] ss:$0 sm:$0xff] }
0x21a2   :  { %8651 = vmatmul.mubr.msk.f32.vlgmr.msra.gmra.mrb[62].mxu0 %vm442_vm3, %v9937_v21 }
0x21a3   :  { %8653 = vmatprep.mubr.msk.f32.mxu0 %vm442_vm3, %v9940_v22 }
0x21a6   :  { %8654 = vmatmul.mubr.msk.f32.gmra.mrb[64].mxu0 %vm442_vm3, %v9947_v8  ;;  %v7840_v8 = vld [vmem:[%s10869_s15 + $0x1] ss:$0 sm:$0xff] }
0x21a7   :  { %8674 = vmatprep.mubr.msk.f32.mxu0 %vm9409_vm4, %v9408_v40 }
0x226d   :  { %v8630_v47 = vpop.f32.mrb[60].mxu0 }
0x226e   :  { %v5543_v32 = vadd.f32 %v8630_v47, %v7824_v19  ;;  %v5537_v48 = vpop.f32.mrb[61].mxu0 }
0x226f   :  { %v5538_v50 = vadd.f32 %v7824_v19, %v5537_v48 }
0x2270   :  { %v5547_v51 = vadd.f32 %v5543_v32, %v10297_v38 }
0x2271   :  { %v5546_v21 = vadd.f32 %v5538_v50, %v10295_v36 }
0x2272   :  { %v5551_v22 = vsel %vm442_vm3, %v5547_v51, 0.0 }
0x2273   :  { %5552 = vadd.xlane.f32.xlu1 %v5551_v22  ;;  %v5548_v54 = vsel %vm442_vm3, %v5546_v21, 0.0 }
0x2274   :  { %5549 = vadd.xlane.f32.xlu0 %v5548_v54 }
0x2275   :  { %v8652_v58 = vpop.f32.mrb[62].mxu0 }
0x2276   :  { %v10526_v41 = vadd.f32 %v8652_v58, %v7840_v8  ;;  %v5759_v59 = vpop.f32.mrb[63].mxu0 }
0x2277   :  { %v10528_v56 = vadd.f32 %v7840_v8, %v5759_v59 }
0x2279   :  { %v8655_v60 = vpop.f32.mrb[64].mxu0  ;;  %v10532_v36 = vpack.i.bf16 %v10526_v41, %v10528_v56  ;;  %v9005_v38 = vpack.c.bf16 %v10526_v41, %v10528_v56 }
0x227a   :  { %v10536_v26 = vadd.f32 %v8655_v60, %v7840_v8  ;;  %v5769_v24 = vpop.f32.mrb[65].mxu0 }
0x227b   :  { %v10538_v61 = vadd.f32 %v7840_v8, %v5769_v24 }
0x227d   :  { %v10542_v62 = vpack.i.bf16 %v10536_v26, %v10538_v61  ;;  %v9033_v63 = vpack.c.bf16 %v10536_v26, %v10538_v61 }
0x2284   :  { %9182 = vrot.lane.b32.xlu1 %v10532_v36, %s10963_s1 }
0x2288   :  { %9187 = vrot.lane.b32.xlu1 %v10532_v36, %s10964_s11 }
0x2300   :  { %v5553_v0 = vpop.xlane.xlu1 %5552 }
0x2301   :  { %v5555_v1 = vmul.f32 0.03125, %v5553_v0  ;;  %v5550_v55 = vpop.xlane.xlu0 %5549 }
0x2302   :  { %v5554_v57 = vmul.f32 0.03125, %v5550_v55 }
0x2303   :  { %v5557_v2 = vsub.f32 %v5547_v51, %v5555_v1 }
0x2304   :  { %v5556_v5 = vsub.f32 %v5546_v21, %v5554_v57  ;;  %v9183_v3 = vpop.permute.xlu1 %9182 }
0x2305   :  { %v9185_v4 = vunpack.i.h.bf16 %v9183_v3  ;;  %v9184_v11 = vunpack.i.l.bf16 %v9183_v3  ;;  %v5559_v10 = vmul.f32 %v5557_v2, %v5557_v2 }
0x2306   :  { %v5558_v16 = vmul.f32 %v5556_v5, %v5556_v5 }
0x2307   :  { %v9012_v17 = vpack.c.bf16 %v9185_v4, %v9184_v11  ;;  %v5563_v39 = vsel %vm442_vm3, %v5559_v10, 0.0 }
0x2308   :  { %v5560_v7 = vsel %vm442_vm3, %v5558_v16, 0.0  ;;  %v9188_v21 = vpop.permute.xlu1 %9187 }
0x2309   :  { %9014 = vmatpush3.bf16.xpose.msk.msra.mxu0 %vm9990_vm9, %v9012_v17  ;;  %5561 = vadd.xlane.f32.xlu0 %v5560_v7  ;;  %v9190_v22 = vunpack.i.h.bf16 %v9188_v21  ;;  %v9189_v8 = vunpack.i.l.bf16 %v9188_v21 }
0x230a   :  { %9018 = vmatprep.subr.bf16.mxu0 %v9424_v42 }
0x230b   :  { %v9019_v54 = vpack.c.bf16 %v9190_v22, %v9189_v8 }
0x230d   :  { %5564 = vadd.xlane.f32.xlu0 %v5563_v39 }
0x2396   :  { %v5562_v12 = vpop.xlane.xlu0 %5561 }
0x2397   :  { %v5566_v13 = vmul.f32 0.03125, %v5562_v12 }
0x2399   :  { %v5568_v33 = vadd.f32 1e-05, %v5566_v13 }
0x239a   :  { %v5565_v14 = vpop.xlane.xlu0 %5564 }
0x239b   :  { %9359 = vrsqrt.f32 %v5568_v33  ;;  %v5567_v34 = vmul.f32 0.03125, %v5565_v14 }
0x239d   :  { %v5569_v35 = vadd.f32 1e-05, %v5567_v34 }
0x239f   :  { %9361 = vrsqrt.f32 %v5569_v35 }
0x23a5   :  { %v9360_v30 = vpop.eup %9359 }
0x23a6   :  { %v5572_v28 = vmul.f32 %v9360_v30, %v5556_v5 }
0x23a8   :  { %v5578_v44 = vmul.f32 %v5577_v37, %v5572_v28 }
0x23a9   :  { %v9362_v45 = vpop.eup %9361 }
0x23aa   :  { %v5573_v49 = vmul.f32 %v9362_v45, %v5557_v2  ;;  %v10582_v46 = vadd.f32 %v5583_v43, %v5578_v44 }
0x23ac   :  { %v5579_v19 = vmul.f32 %v5577_v37, %v5573_v49  ;;  %8639 = vmatprep.mubr.msk.f32.mxu1 %vm442_vm3, %v10582_v46 }
0x23ae   :  { %v10586_v47 = vadd.f32 %v5583_v43, %v5579_v19 }
0x23b0   :  { %8640 = vmatmul.mubr.msk.f32.vlgmr.msra.gmra.mrb[64].mxu1 %vm442_vm3, %v10586_v47 }
0x23b1   :  { %9007 = vmatpush3.bf16.xpose.msk.msra.mxu1 %vm9990_vm9, %v9005_v38  ;;  %8660 = vmatprep.mubr.msk.f32.mxu1 %vm9409_vm4, %v9408_v40 }
0x23b2   :  { %9008 = vmatprep.subr.bf16.mxu1 %v9424_v42 }
0x2483   :  { %v8641_v32 = vpop.f32.mrb[64].mxu1 }
0x2484   :  { %v10598_v48 = vadd.f32 %v8641_v32, %v7832_v15  ;;  %v5671_v50 = vpop.f32.mrb[65].mxu1 }
0x2485   :  { %v10600_v51 = vadd.f32 %v7832_v15, %v5671_v50 }
0x2487   :  { %6121 = vrot.lane.b32.xlu1 %v10600_v51, %s10964_s11  ;;  %5948 = vrot.lane.b32.xlu0 %v10600_v51, %s10963_s1 }
0x2488   :  { %8661 = vmatmul.mubr.msk.f32.vlgmr.msra.gmra.mrb[66].mxu1 %vm527_vm5, %v10600_v51 }
0x2489   :  { %8667 = vmatprep.mubr.msk.f32.mxu1 %vm9409_vm4, %v9408_v40 }
0x24f9   :  { %v5949_v58 = vpop.permute.xlu0 %5948  ;;  %v6122_v41 = vpop.permute.xlu1 %6121 }
0x24fa   :  { %8675 = vmatmul.mubr.msk.f32.vlgmr.msra.gmra.mrb[66].mxu0 %vm527_vm5, %v5949_v58 }
0x24fb   :  { %9021 = vmatpush3.bf16.xpose.msk.msra.mxu0 %vm9990_vm9, %v9019_v54  ;;  %8688 = vmatprep.mubr.msk.f32.mxu0 %vm9409_vm4, %v9408_v40 }
0x24fc   :  { %9029 = vmatprep.subr.bf16.mxu0 %v9424_v42 }
0x2502   :  { %8689 = vmatmul.mubr.msk.f32.vlgmr.msra.gmra.mrb[68].mxu0 %vm527_vm5, %v6122_v41 }
0x2503   :  { %8709 = vmatprep.mubr.msk.f32.mxu0 %vm9409_vm4, %v9408_v40 }
0x255b   :  { %v5853_v59 = vpop.f32.mrb[66].mxu1 }
0x255c   :  { %v5857_v56 = vmul.f32 0.35355338, %v5853_v59  ;;  %v8662_v60 = vpop.f32.mrb[67].mxu1 }
0x255e   :  { %v5858_v38 = vsel %vm1205_vm7, %v5857_v56, -inf }
0x255f   :  { %5859 = vmax.xlane.f32.xlu0 %v5858_v38 }
0x25cd   :  { %v6026_v24 = vpop.f32.mrb[66].mxu0 }
0x25ce   :  { %v6030_v0 = vmul.f32 0.35355338, %v6026_v24  ;;  %v8676_v1 = vpop.f32.mrb[67].mxu0 }
0x25d0   :  { %v6031_v55 = vsel %vm1205_vm7, %v6030_v0, -inf }
0x25d1   :  { %6032 = vmax.xlane.f32.xlu1 %v6031_v55 }
0x25d5   :  { %v6199_v57 = vpop.f32.mrb[68].mxu0 }
0x25d6   :  { %v6203_v2 = vmul.f32 0.35355338, %v6199_v57  ;;  %v8690_v5 = vpop.f32.mrb[69].mxu0 }
0x25d8   :  { %v6204_v3 = vsel %vm1205_vm7, %v6203_v2, -inf }
0x25d9   :  { %6205 = vmax.xlane.f32.xlu0 %v6204_v3 }
0x25e2   :  { %9192 = vrot.lane.b32.xlu1 %v10532_v36, %s10967_s10 }
0x25ec   :  { %v5860_v4 = vpop.xlane.xlu0 %5859 }
0x25ed   :  { %v5861_v11 = vsub.f32 %v5857_v56, %v5860_v4 }
0x25ef   :  { %v5862_v16 = vmul.f32 1.442695, %v5861_v11 }
0x25f1   :  { %9363 = vpow2.f32 %v5862_v16 }
0x25fb   :  { %v9364_v17 = vpop.eup %9363 }
0x25fc   :  { %v5864_v7 = vsel %vm1205_vm7, %v9364_v17, 0.0 }
0x25fd   :  { %5865 = vadd.xlane.f32.xlu0 %v5864_v7 }
0x265e   :  { %v6033_v10 = vpop.xlane.xlu1 %6032 }
0x265f   :  { %v6034_v39 = vsub.f32 %v6030_v0, %v6033_v10 }
0x2661   :  { %v6035_v23 = vmul.f32 1.442695, %v6034_v39 }
0x2662   :  { %v9193_v52 = vpop.permute.xlu1 %9192 }
0x2663   :  { %9365 = vpow2.f32 %v6035_v23  ;;  %v9195_v25 = vunpack.i.h.bf16 %v9193_v52  ;;  %v9194_v27 = vunpack.i.l.bf16 %v9193_v52 }
0x2665   :  { %v9009_v9 = vpack.c.bf16 %v9195_v25, %v9194_v27 }
0x2666   :  { %v6206_v31 = vpop.xlane.xlu0 %6205 }
0x2667   :  { %v6207_v12 = vsub.f32 %v6203_v2, %v6206_v31  ;;  %9010 = vmatpush3.bf16.msra.mxu1 %v9009_v9 }
0x2668   :  { %9015 = vmatprep.subr.bf16.mxu1 %v9424_v42 }
0x2669   :  { %v6208_v13 = vmul.f32 1.442695, %v6207_v12 }
0x266b   :  { %9367 = vpow2.f32 %v6208_v13 }
0x266d   :  { %v9366_v33 = vpop.eup %9365 }
0x266e   :  { %v6037_v14 = vsel %vm1205_vm7, %v9366_v33, 0.0 }
0x266f   :  { %6038 = vadd.xlane.f32.xlu1 %v6037_v14 }
0x2675   :  { %v9368_v34 = vpop.eup %9367 }
0x2676   :  { %v6210_v35 = vsel %vm1205_vm7, %v9368_v34, 0.0 }
0x2677   :  { %6211 = vadd.xlane.f32.xlu0 %v6210_v35 }
0x2680   :  { %9202 = vrot.lane.b32.xlu1 %v10532_v36, %s10968_s0 }
0x2684   :  { %9207 = vrot.lane.b32.xlu1 %v10532_v36, %s10969_s7 }
0x268a   :  { %v5866_v37 = vpop.xlane.xlu0 %5865 }
0x268b   :  { %9369 = vrcp.f32 %v5866_v37 }
0x268d   :  { %9197 = vrot.lane.b32.xlu0 %v10532_v36, %s10970_s5 }
0x2691   :  { %6294 = vrot.lane.b32.xlu0 %v10600_v51, %s10969_s7 }
0x2695   :  { %v9370_v30 = vpop.eup %9369 }
0x2696   :  { %v5868_v28 = vmul.f32 %v9370_v30, %v9364_v17 }
0x2698   :  { %8668 = vmatmul.mubr.msk.f32.vlgmr.msra.gmra.mrb[68].mxu1 %vm1205_vm7, %v5868_v28 }
0x2699   :  { %8681 = vmatprep.mubr.msk.f32.mxu1 %vm9409_vm4, %v9408_v40 }
0x26fc   :  { %v6039_v43 = vpop.xlane.xlu1 %6038 }
0x26fd   :  { %9371 = vrcp.f32 %v6039_v43 }
0x2700   :  { %v9203_v45 = vpop.permute.xlu1 %9202 }
0x2701   :  { %v9205_v50 = vunpack.i.h.bf16 %v9203_v45  ;;  %v9204_v21 = vunpack.i.l.bf16 %v9203_v45 }
0x2703   :  { %v9023_v54 = vpack.c.bf16 %v9205_v50, %v9204_v21 }
0x2704   :  { %v6212_v44 = vpop.xlane.xlu0 %6211  ;;  %v9208_v58 = vpop.permute.xlu1 %9207 }
0x2705   :  { %9373 = vrcp.f32 %v6212_v44  ;;  %v9210_v59 = vunpack.i.h.bf16 %v9208_v58  ;;  %v9209_v56 = vunpack.i.l.bf16 %v9208_v58 }
0x2707   :  { %v9372_v32 = vpop.eup %9371  ;;  %v9026_v60 = vpack.c.bf16 %v9210_v59, %v9209_v56 }
0x2708   :  { %v9198_v49 = vpop.permute.xlu0 %9197  ;;  %v6041_v51 = vmul.f32 %v9372_v32, %v9366_v33 }
0x2709   :  { %v9200_v19 = vunpack.i.h.bf16 %v9198_v49  ;;  %v9199_v15 = vunpack.i.l.bf16 %v9198_v49 }
0x270b   :  { %v9016_v22 = vpack.c.bf16 %v9200_v19, %v9199_v15 }
0x270c   :  { %v6295_v38 = vpop.permute.xlu0 %6294 }
0x270d   :  { %9017 = vmatpush3.bf16.msra.mxu1 %v9016_v22 }
0x270e   :  { %9022 = vmatprep.subr.bf16.mxu1 %v9424_v42 }
0x270f   :  { %v9374_v8 = vpop.eup %9373 }
0x2710   :  { %8682 = vmatmul.mubr.msk.f32.vlgmr.msra.gmra.mrb[70].mxu1 %vm1205_vm7, %v6041_v51  ;;  %v6214_v41 = vmul.f32 %v9374_v8, %v9368_v34 }
0x2711   :  { %9024 = vmatpush3.bf16.msra.mxu1 %v9023_v54  ;;  %8695 = vmatprep.mubr.msk.f32.mxu1 %vm9409_vm4, %v9408_v40 }
0x2712   :  { %9025 = vmatprep.subr.bf16.mxu1 %v9424_v42 }
0x2714   :  { %8696 = vmatmul.mubr.msk.f32.vlgmr.msra.gmra.mrb[72].mxu1 %vm1205_vm7, %v6214_v41 }
0x2715   :  { %8702 = vmatprep.mubr.msk.f32.mxu1 %vm9409_vm4, %v9408_v40 }
0x271a   :  { %9028 = vmatpush3.bf16.xpose.msk.msra.mxu1 %vm9990_vm9, %v9026_v60 }
0x271b   :  { %9036 = vmatprep.subr.bf16.mxu1 %v9424_v42 }
0x2721   :  { %8703 = vmatmul.mubr.msk.f32.vlgmr.msra.gmra.mrb[74].mxu1 %vm527_vm5, %v6295_v38 }
0x2722   :  { %8723 = vmatprep.mubr.msk.f32.mxu1 %vm9409_vm4, %v9408_v40 }
0x276b   :  { %v10653_v24 = vpop.f32.mrb[68].mxu1 }
0x276c   :  { %v8669_v0 = vpop.f32.mrb[69].mxu1 }
0x27e3   :  { %v10655_v1 = vpop.f32.mrb[70].mxu1 }
0x27e4   :  { %v8683_v55 = vpop.f32.mrb[71].mxu1 }
0x27e7   :  { %v10657_v57 = vpop.f32.mrb[72].mxu1 }
0x27e8   :  { %v8697_v2 = vpop.f32.mrb[73].mxu1 }
0x27f4   :  { %v6372_v5 = vpop.f32.mrb[74].mxu1 }
0x27f5   :  { %v6376_v3 = vmul.f32 0.35355338, %v6372_v5  ;;  %v8704_v4 = vpop.f32.mrb[75].mxu1 }
0x27f7   :  { %v6377_v11 = vsel %vm1205_vm7, %v6376_v3, -inf }
0x27f8   :  { %6378 = vmax.xlane.f32.xlu1 %v6377_v11 }
0x2885   :  { %v6379_v16 = vpop.xlane.xlu1 %6378 }
0x2886   :  { %v6380_v17 = vsub.f32 %v6376_v3, %v6379_v16 }
0x2888   :  { %v6381_v7 = vmul.f32 1.442695, %v6380_v17 }
0x288a   :  { %9375 = vpow2.f32 %v6381_v7 }
0x2894   :  { %v9376_v10 = vpop.eup %9375 }
0x2895   :  { %v6383_v39 = vsel %vm1205_vm7, %v9376_v10, 0.0 }
0x2896   :  { %6384 = vadd.xlane.f32.xlu0 %v6383_v39 }
0x28ac   :  { %9212 = vrot.lane.b32.xlu0 %v10532_v36, %s10971_s9 }
0x28b0   :  { %9222 = vrot.lane.b32.xlu0 %v10542_v62, %s10963_s1 }
0x28b4   :  { %6652 = vrot.lane.b32.xlu0 %v10598_v48, %s10963_s1 }
0x2923   :  { %v6385_v23 = vpop.xlane.xlu0 %6384 }
0x2924   :  { %9377 = vrcp.f32 %v6385_v23 }
0x2927   :  { %v9213_v52 = vpop.permute.xlu0 %9212 }
0x2928   :  { %v9215_v25 = vunpack.i.h.bf16 %v9213_v52  ;;  %v9214_v27 = vunpack.i.l.bf16 %v9213_v52 }
0x292a   :  { %v9030_v9 = vpack.c.bf16 %v9215_v25, %v9214_v27 }
0x292b   :  { %v9223_v19 = vpop.permute.xlu0 %9222 }
0x292c   :  { %9031 = vmatpush3.bf16.msra.mxu0 %v9030_v9  ;;  %v9225_v32 = vunpack.i.h.bf16 %v9223_v19  ;;  %v9224_v50 = vunpack.i.l.bf16 %v9223_v19 }
0x292d   :  { %9032 = vmatprep.subr.bf16.mxu0 %v9424_v42 }
0x292e   :  { %v9378_v31 = vpop.eup %9377  ;;  %v9040_v22 = vpack.c.bf16 %v9225_v32, %v9224_v50 }
0x292f   :  { %v6387_v12 = vmul.f32 %v9378_v31, %v9376_v10  ;;  %v6653_v51 = vpop.permute.xlu0 %6652 }
0x2931   :  { %8710 = vmatmul.mubr.msk.f32.vlgmr.msra.gmra.mrb[70].mxu0 %vm1205_vm7, %v6387_v12 }
0x2932   :  { %8716 = vmatprep.mubr.msk.f32.mxu0 %vm9409_vm4, %v9408_v40 }
0x2935   :  { %9035 = vmatpush3.bf16.xpose.msk.msra.mxu0 %vm9990_vm9, %v9033_v63 }
0x2936   :  { %9043 = vmatprep.subr.bf16.mxu0 %v9424_v42 }
0x293c   :  { %8717 = vmatmul.mubr.msk.f32.vlgmr.msra.gmra.mrb[72].mxu0 %vm527_vm5, %v10598_v48 }
0x293d   :  { %8737 = vmatprep.mubr.msk.f32.mxu0 %vm9409_vm4, %v9408_v40 }
0x2a04   :  { %v10681_v36 = vpop.f32.mrb[70].mxu0 }
0x2a05   :  { %v8711_v13 = vpop.f32.mrb[71].mxu0 }
0x2a0f   :  { %v6557_v33 = vpop.f32.mrb[72].mxu0 }
0x2a10   :  { %v6561_v14 = vmul.f32 0.35355338, %v6557_v33  ;;  %v8718_v34 = vpop.f32.mrb[73].mxu0 }
0x2a12   :  { %v6562_v35 = vsel %vm1205_vm7, %v6561_v14, -inf }
0x2a13   :  { %6563 = vmax.xlane.f32.xlu1 %v6562_v35 }
0x2aa0   :  { %v6564_v26 = vpop.xlane.xlu1 %6563 }
0x2aa1   :  { %v6565_v61 = vsub.f32 %v6561_v14, %v6564_v26 }
0x2aa3   :  { %v6566_v63 = vmul.f32 1.442695, %v6565_v61 }
0x2aa5   :  { %9379 = vpow2.f32 %v6566_v63 }
0x2aaf   :  { %v9380_v37 = vpop.eup %9379 }
0x2ab0   :  { %v6568_v30 = vsel %vm1205_vm7, %v9380_v37, 0.0 }
0x2ab1   :  { %6569 = vadd.xlane.f32.xlu1 %v6568_v30 }
0x2ac2   :  { %9217 = vrot.lane.b32.xlu1 %v10542_v62, %s10967_s10 }
0x2b3e   :  { %v6570_v28 = vpop.xlane.xlu1 %6569 }
0x2b3f   :  { %9381 = vrcp.f32 %v6570_v28 }
0x2b42   :  { %v9218_v43 = vpop.permute.xlu1 %9217 }
0x2b43   :  { %v9220_v44 = vunpack.i.h.bf16 %v9218_v43  ;;  %v9219_v45 = vunpack.i.l.bf16 %v9218_v43 }
0x2b45   :  { %v9037_v49 = vpack.c.bf16 %v9220_v44, %v9219_v45 }
0x2b47   :  { %9038 = vmatpush3.bf16.msra.mxu1 %v9037_v49 }
0x2b48   :  { %9039 = vmatprep.subr.bf16.mxu1 %v9424_v42 }
0x2b49   :  { %v9382_v15 = vpop.eup %9381 }
0x2b4a   :  { %v6572_v21 = vmul.f32 %v9382_v15, %v9380_v37 }
0x2b4c   :  { %8724 = vmatmul.mubr.msk.f32.vlgmr.msra.gmra.mrb[76].mxu1 %vm1205_vm7, %v6572_v21 }
0x2b4d   :  { %8730 = vmatprep.mubr.msk.f32.mxu1 %vm9409_vm4, %v9408_v40 }
0x2b50   :  { %9042 = vmatpush3.bf16.xpose.msk.msra.mxu1 %vm9990_vm9, %v9040_v22 }
0x2b51   :  { %9050 = vmatprep.subr.bf16.mxu1 %v9424_v42 }
0x2b57   :  { %8731 = vmatmul.mubr.msk.f32.vlgmr.msra.gmra.mrb[78].mxu1 %vm527_vm5, %v6653_v51 }
0x2b58   :  { %8751 = vmatprep.mubr.msk.f32.mxu1 %vm9409_vm4, %v9408_v40 }
0x2c1f   :  { %v10697_v8 = vpop.f32.mrb[76].mxu1 }
0x2c20   :  { %v8725_v54 = vpop.f32.mrb[77].mxu1 }
0x2c2a   :  { %v6730_v58 = vpop.f32.mrb[78].mxu1 }
0x2c2b   :  { %v6734_v41 = vmul.f32 0.35355338, %v6730_v58  ;;  %v8732_v59 = vpop.f32.mrb[79].mxu1 }
0x2c2d   :  { %v6735_v56 = vsel %vm1205_vm7, %v6734_v41, -inf }
0x2c2e   :  { %6736 = vmax.xlane.f32.xlu1 %v6735_v56 }
0x2c3f   :  { %9232 = vrot.lane.b32.xlu1 %v10542_v62, %s10964_s11 }
0x2c43   :  { %6825 = vrot.lane.b32.xlu1 %v10598_v48, %s10964_s11 }
0x2cbb   :  { %v6737_v60 = vpop.xlane.xlu1 %6736 }
0x2cbc   :  { %v6738_v38 = vsub.f32 %v6734_v41, %v6737_v60 }
0x2cbe   :  { %v6739_v0 = vmul.f32 1.442695, %v6738_v38 }
0x2cbf   :  { %v9233_v17 = vpop.permute.xlu1 %9232 }
0x2cc0   :  { %9383 = vpow2.f32 %v6739_v0  ;;  %v9235_v10 = vunpack.i.h.bf16 %v9233_v17  ;;  %v9234_v39 = vunpack.i.l.bf16 %v9233_v17 }
0x2cc2   :  { %v9047_v52 = vpack.c.bf16 %v9235_v10, %v9234_v39 }
0x2cc3   :  { %v6826_v25 = vpop.permute.xlu1 %6825 }
0x2cca   :  { %v9384_v55 = vpop.eup %9383 }
0x2ccb   :  { %v6741_v2 = vsel %vm1205_vm7, %v9384_v55, 0.0 }
0x2ccc   :  { %6742 = vadd.xlane.f32.xlu0 %v6741_v2 }
0x2ce2   :  { %9227 = vrot.lane.b32.xlu0 %v10542_v62, %s10970_s5 }
0x2d59   :  { %v6743_v5 = vpop.xlane.xlu0 %6742 }
0x2d5a   :  { %9385 = vrcp.f32 %v6743_v5 }
0x2d5d   :  { %v9228_v3 = vpop.permute.xlu0 %9227 }
0x2d5e   :  { %v9230_v4 = vunpack.i.h.bf16 %v9228_v3  ;;  %v9229_v11 = vunpack.i.l.bf16 %v9228_v3 }
0x2d60   :  { %v9044_v16 = vpack.c.bf16 %v9230_v4, %v9229_v11  ;;  %v7877_v11 = vld [vmem:[%s10874_s16 + $0x20] sm:$0xff] }
0x2d62   :  { %9045 = vmatpush3.bf16.msra.mxu0 %v9044_v16  ;;  %v7878_v16 = vld [vmem:[%s10874_s16 + $0x28] sm:$0xff] }
0x2d63   :  { %9046 = vmatprep.subr.bf16.mxu0 %v9424_v42  ;;  %v9060_v17 = vpack.c.bf16 %v7878_v16, %v7877_v11 }
0x2d64   :  { %v9386_v7 = vpop.eup %9385 }
0x2d65   :  { %v6745_v23 = vmul.f32 %v9386_v7, %v9384_v55  ;;  %v7880_v7 = vld [vmem:[%s10874_s16 + $0x38] sm:$0xff] }
0x2d67   :  { %8738 = vmatmul.mubr.msk.f32.vlgmr.msra.gmra.mrb[74].mxu0 %vm1205_vm7, %v6745_v23 }
0x2d68   :  { %8744 = vmatprep.mubr.msk.f32.mxu0 %vm9409_vm4, %v9408_v40 }
0x2d6b   :  { %9049 = vmatpush3.bf16.xpose.msk.msra.mxu0 %vm9990_vm9, %v9047_v52 }
0x2d6c   :  { %9057 = vmatprep.subr.bf16.mxu0 %v9424_v42 }
0x2d72   :  { %8745 = vmatmul.mubr.msk.f32.vlgmr.msra.gmra.mrb[76].mxu0 %vm527_vm5, %v6826_v25 }
0x2d73   :  { %8765 = vmatprep.mubr.msk.f32.mxu0 %vm9409_vm4, %v9408_v40 }
0x2e3a   :  { %v6821_v27 = vpop.f32.mrb[74].mxu0 }
0x2e3b   :  { %v8739_v9 = vpop.f32.mrb[75].mxu0 }
0x2e45   :  { %v6903_v31 = vpop.f32.mrb[76].mxu0 }
0x2e46   :  { %v6907_v12 = vmul.f32 0.35355338, %v6903_v31  ;;  %v8746_v13 = vpop.f32.mrb[77].mxu0 }
0x2e47   :  { %v7882_v13 = vld [vmem:[%s10875_s17 + $0x1] ss:$0 sm:$0xff]  ;;  %s10983_s17 = sld [smem:[#allocation19_spill]] }
0x2e48   :  { %v6908_v33 = vsel %vm1205_vm7, %v6907_v12, -inf }
0x2e49   :  { %6909 = vmax.xlane.f32.xlu0 %v6908_v33 }
0x2e5f   :  { %9237 = vrot.lane.b32.xlu0 %v10542_v62, %s10968_s0 }
0x2e63   :  { %6998 = vrot.lane.b32.xlu0 %v10598_v48, %s10969_s7 }
0x2ed6   :  { %v6910_v14 = vpop.xlane.xlu0 %6909 }
0x2ed7   :  { %v6911_v34 = vsub.f32 %v6907_v12, %v6910_v14 }
0x2ed9   :  { %v6912_v35 = vmul.f32 1.442695, %v6911_v34 }
0x2eda   :  { %v9238_v26 = vpop.permute.xlu0 %9237 }
0x2edb   :  { %9387 = vpow2.f32 %v6912_v35  ;;  %v9240_v61 = vunpack.i.h.bf16 %v9238_v26  ;;  %v9239_v63 = vunpack.i.l.bf16 %v9238_v26 }
0x2edd   :  { %v9051_v37 = vpack.c.bf16 %v9240_v61, %v9239_v63 }
0x2edf   :  { %9052 = vmatpush3.bf16.msra.mxu1 %v9051_v37 }
0x2ee0   :  { %9053 = vmatprep.subr.bf16.mxu1 %v9424_v42  ;;  %v6999_v42 = vpop.permute.xlu0 %6998 }
0x2ee5   :  { %v9388_v30 = vpop.eup %9387 }
0x2ee6   :  { %v6914_v28 = vsel %vm1205_vm7, %v9388_v30, 0.0 }
0x2ee7   :  { %6915 = vadd.xlane.f32.xlu1 %v6914_v28 }
0x2ef8   :  { %9242 = vrot.lane.b32.xlu1 %v10542_v62, %s10969_s7 }
0x2f74   :  { %v6916_v43 = vpop.xlane.xlu1 %6915 }
0x2f75   :  { %9389 = vrcp.f32 %v6916_v43 }
0x2f78   :  { %v9243_v48 = vpop.permute.xlu1 %9242 }
0x2f79   :  { %v9245_v44 = vunpack.i.h.bf16 %v9243_v48  ;;  %v9244_v45 = vunpack.i.l.bf16 %v9243_v48 }
0x2f7b   :  { %v9054_v15 = vpack.c.bf16 %v9245_v44, %v9244_v45 }
0x2f7f   :  { %v9390_v49 = vpop.eup %9389 }
0x2f80   :  { %v6918_v19 = vmul.f32 %v9390_v49, %v9388_v30 }
0x2f82   :  { %8752 = vmatmul.mubr.msk.f32.vlgmr.msra.gmra.mrb[80].mxu1 %vm1205_vm7, %v6918_v19 }
0x2f83   :  { %9056 = vmatpush3.bf16.xpose.msk.msra.mxu1 %vm9990_vm9, %v9054_v15  ;;  %8758 = vmatprep.mubr.msk.f32.mxu1 %vm9409_vm4, %v9408_v40  ;;  %v7886_v15 = vld [vmem:[%s10876_s18 + $0x28] sm:$0xff] }
0x2f8a   :  { %8759 = vmatmul.mubr.msk.f32.vlgmr.msra.gmra.mrb[82].mxu1 %vm527_vm5, %v6999_v42 }
0x3055   :  { %v6994_v32 = vpop.f32.mrb[80].mxu1 }
0x3056   :  { %v8753_v50 = vpop.f32.mrb[81].mxu1 }
0x3057   :  { %v7888_v50 = vld [vmem:[%s10876_s18 + $0x38] sm:$0xff] }
0x305d   :  { %v7076_v21 = vpop.f32.mrb[82].mxu1 }
0x305e   :  { %v7080_v22 = vmul.f32 0.35355338, %v7076_v21  ;;  %v8760_v51 = vpop.f32.mrb[83].mxu1 }
0x305f   :  { %v7894_v51 = vld [vmem:[%s10877_s20 + $0x28] sm:$0xff] }
0x3060   :  { %v7081_v54 = vsel %vm1205_vm7, %v7080_v22, -inf }
0x3061   :  { %7082 = vmax.xlane.f32.xlu1 %v7081_v54 }
0x3072   :  { %6468 = vrot.lane.b32.xlu1 %v10655_v1, %s10972_s8 }
0x3076   :  { %6472 = vrot.lane.b32.xlu1 %v10657_v57, %s10973_s4 }
0x307a   :  { %6476 = vrot.lane.b32.xlu1 %v10681_v36, %s10974_s2 }
0x30ee   :  { %v7083_v40 = vpop.xlane.xlu1 %7082 }
0x30ef   :  { %v7084_v53 = vsub.f32 %v7080_v22, %v7083_v40  ;;  %v7893_v22 = vld [vmem:[%s10877_s20 + $0x20] sm:$0xff] }
0x30f0   :  { %v9076_v54 = vpack.c.bf16 %v7894_v51, %v7893_v22 }
0x30f1   :  { %v7085_v58 = vmul.f32 1.442695, %v7084_v53 }
0x30f2   :  { %v6469_v1 = vpop.permute.xlu1 %6468 }
0x30f3   :  { %9391 = vpow2.f32 %v7085_v58  ;;  %v6479_v5 = vsel %vm527_vm5, %v10653_v24, %v6469_v1  ;;  %v7879_v24 = vld [vmem:[%s10874_s16 + $0x30] sm:$0xff] }
0x30f4   :  { %v9064_v10 = vpack.c.bf16 %v7880_v7, %v7879_v24 }
0x30f6   :  { %v6473_v36 = vpop.permute.xlu1 %6472 }
0x30fa   :  { %v6477_v2 = vpop.permute.xlu1 %6476 }
0x30fd   :  { %v9392_v41 = vpop.eup %9391 }
0x30fe   :  { %v7087_v59 = vsel %vm1205_vm7, %v9392_v41, 0.0 }
0x30ff   :  { %7088 = vadd.xlane.f32.xlu0 %v7087_v59 }
0x3115   :  { %9247 = vrot.lane.b32.xlu0 %v10542_v62, %s10971_s9  ;;  %v6480_v62 = vsel %vm1205_vm7, %v6479_v5, %v6473_v36 }
0x3116   :  { %v6481_v4 = vsel %vm1207_vm8, %v6480_v62, %v6477_v2  ;;  %v7895_v62 = vld [vmem:[%s10877_s20 + $0x30] sm:$0xff] }
0x3119   :  { %7172 = vrot.lane.b32.xlu0 %v6821_v27, %s10972_s8 }
0x311d   :  { %7176 = vrot.lane.b32.xlu0 %v6994_v32, %s10973_s4  ;;  %v7887_v32 = vld [vmem:[%s10876_s18 + $0x30] sm:$0xff] }
0x311e   :  { %v9072_v21 = vpack.c.bf16 %v7888_v50, %v7887_v32  ;;  %v7547_v32 = vrot.slane %v10576_v29, %v10289_v20 }
0x318c   :  { %v7089_v57 = vpop.xlane.xlu0 %7088 }
0x318d   :  { %9393 = vrcp.f32 %v7089_v57  ;;  %v7311_v57 = vrot.slane %v10571_v6, %v10246_v18 }
0x3190   :  { %v9248_v56 = vpop.permute.xlu0 %9247 }
0x3191   :  { %v9250_v60 = vunpack.i.h.bf16 %v9248_v56  ;;  %v9249_v38 = vunpack.i.l.bf16 %v9248_v56 }
0x3193   :  { %v9058_v0 = vpack.c.bf16 %v9250_v60, %v9249_v38  ;;  %v7317_v60 = vrot.slane %v10576_v29, %v10246_v18  ;;  %v7890_v18 = vld [vmem:[%s10878_s19 + $0x1] ss:$0 sm:$0xff] }
0x3194   :  { %v7173_v52 = vpop.permute.xlu0 %7172 }
0x3195   :  { %9059 = vmatpush3.bf16.msra.mxu0 %v9058_v0  ;;  %v7183_v27 = vsel %vm527_vm5, %v10697_v8, %v7173_v52 }
0x3196   :  { %9061 = vmatprep.subr.bf16.mxu0 %v9060_v17 }
0x3197   :  { %v9394_v55 = vpop.eup %9393 }
0x3198   :  { %v7091_v3 = vmul.f32 %v9394_v55, %v9392_v41  ;;  %v7177_v25 = vpop.permute.xlu0 %7176 }
0x3199   :  { %v7184_v9 = vsel %vm1205_vm7, %v7183_v27, %v7177_v25 }
0x319a   :  { %8766 = vmatmul.mubr.msk.f32.vlgmr.msra.gmra.mrb[78].mxu0 %vm1205_vm7, %v7091_v3 }
0x319b   :  { %8776 = vmatprep.mubr.msk.f32.mxu0 %vm442_vm3, %v6481_v4  ;;  %9063 = vmatpush3.bf16.msra.mxu0 %v9060_v17  ;;  %v7896_v4 = vld [vmem:[%s10877_s20 + $0x38] sm:$0xff] }
0x319c   :  { %9065 = vmatprep.subr.bf16.mxu0 %v9064_v10  ;;  %v9080_v11 = vpack.c.bf16 %v7896_v4, %v7895_v62 }
0x319f   :  { %9067 = vmatpush3.bf16.msra.mxu0 %v9064_v10 }
0x31a0   :  { %9077 = vmatprep.subr.bf16.mxu0 %v9076_v54 }
0x326d   :  { %v7167_v39 = vpop.f32.mrb[78].mxu0 }
0x326e   :  { %7180 = vrot.lane.b32.xlu1 %v7167_v39, %s10974_s2  ;;  %v8767_v23 = vpop.f32.mrb[79].mxu0 }
0x326f   :  { %v7898_v23 = vld [vmem:[%s10879_s21 + $0x1] ss:$0 sm:$0xff]  ;;  %s10982_s21 = sld [smem:[#allocation18_spill]] }
0x32e0   :  { %v7181_v31 = vpop.permute.xlu1 %7180 }
0x32e1   :  { %v7185_v12 = vsel %vm1207_vm8, %v7184_v9, %v7181_v31 }
0x32e2   :  { %8777 = vmatmul.mubr.msk.f32.vlgmr.msra.gmra.mrb[80].mxu0 %vm442_vm3, %v7185_v12 }
0x32e3   :  { %9079 = vmatpush3.bf16.msra.mxu0 %v9076_v54 }
0x32e4   :  { %9081 = vmatprep.subr.bf16.mxu0 %v9080_v11 }
0x32e7   :  { %9083 = vmatpush3.bf16.msra.mxu0 %v9080_v11 }
0x33b5   :  { %v8778_v33 = vpop.f32.mrb[80].mxu0 }
0x33b6   :  { %v7277_v14 = vadd.f32 %v8778_v33, %v7882_v13  ;;  %v7271_v34 = vpop.f32.mrb[81].mxu0 }
0x33b7   :  { %v7272_v35 = vadd.f32 %v7882_v13, %v7271_v34 }
0x33b8   :  { %v7281_v26 = vadd.f32 %v7277_v14, %v10586_v47 }
0x33b9   :  { %v7280_v61 = vadd.f32 %v7272_v35, %v10582_v46  ;;  %v7885_v46 = vld [vmem:[%s10876_s18 + $0x20] sm:$0xff] }
0x33ba   :  { %v7285_v8 = vsel %vm442_vm3, %v7281_v26, 0.0  ;;  %v9068_v42 = vpack.c.bf16 %v7886_v15, %v7885_v46 }
0x33bb   :  { %7286 = vadd.xlane.f32.xlu1 %v7285_v8  ;;  %v7282_v63 = vsel %vm442_vm3, %v7280_v61, 0.0 }
0x33bc   :  { %7283 = vadd.xlane.f32.xlu0 %v7282_v63  ;;  %9069 = vmatprep.subr.bf16.mxu1 %v9068_v42 }
0x33bd   :  { %9071 = vmatpush3.bf16.msra.mxu1 %v9068_v42 }
0x33be   :  { %9073 = vmatprep.subr.bf16.mxu1 %v9072_v21 }
0x33c1   :  { %9075 = vmatpush3.bf16.msra.mxu1 %v9072_v21 }
0x3448   :  { %v7287_v37 = vpop.xlane.xlu1 %7286 }
0x3449   :  { %v7289_v30 = vmul.f32 0.03125, %v7287_v37  ;;  %v7284_v28 = vpop.xlane.xlu0 %7283 }
0x344a   :  { %v7288_v43 = vmul.f32 0.03125, %v7284_v28 }
0x344b   :  { %v7291_v48 = vsub.f32 %v7281_v26, %v7289_v30 }
0x344c   :  { %v7290_v44 = vsub.f32 %v7280_v61, %v7288_v43 }
0x344d   :  { %v7293_v19 = vmul.f32 %v7291_v48, %v7291_v48 }
0x344e   :  { %v7292_v45 = vmul.f32 %v7290_v44, %v7290_v44 }
0x344f   :  { %v7297_v47 = vsel %vm442_vm3, %v7293_v19, 0.0 }
0x3450   :  { %v7294_v49 = vsel %vm442_vm3, %v7292_v45, 0.0 }
0x3451   :  { %7295 = vadd.xlane.f32.xlu0 %v7294_v49 }
0x3455   :  { %7298 = vadd.xlane.f32.xlu0 %v7297_v47  ;;  %v7541_v47 = vrot.slane %v10571_v6, %v10289_v20 }
0x34de   :  { %v7296_v40 = vpop.xlane.xlu0 %7295 }
0x34df   :  { %v7300_v53 = vmul.f32 0.03125, %v7296_v40 }
0x34e1   :  { %v7302_v58 = vadd.f32 1e-05, %v7300_v53 }
0x34e2   :  { %v7299_v41 = vpop.xlane.xlu0 %7298 }
0x34e3   :  { %9395 = vrsqrt.f32 %v7302_v58  ;;  %v7301_v59 = vmul.f32 0.03125, %v7299_v41 }
0x34e5   :  { %v7303_v1 = vadd.f32 1e-05, %v7301_v59 }
0x34e7   :  { %9397 = vrsqrt.f32 %v7303_v1 }
0x34ed   :  { %v9396_v56 = vpop.eup %9395 }
0x34ee   :  { %v7306_v36 = vmul.f32 %v9396_v56, %v7290_v44 }
0x34f0   :  { %v7312_v38 = vmul.f32 %v7311_v57, %v7306_v36 }
0x34f1   :  { %v9398_v0 = vpop.eup %9397 }
0x34f2   :  { %v7307_v55 = vmul.f32 %v9398_v0, %v7291_v48  ;;  %v7318_v2 = vadd.f32 %v7317_v60, %v7312_v38  ;;  %v7595_v38 = vld [vmem:[%s10982_s21 + $0x8] sm:$0xff] }
0x34f4   :  { %v7313_v5 = vmul.f32 %v7311_v57, %v7307_v55  ;;  %8787 = vmatprep.mubr.msk.f32.mxu1 %vm442_vm3, %v7318_v2  ;;  %v7596_v55 = vld [vmem:[%s10982_s21 + $0x10] sm:$0xff] }
0x34f6   :  { %v7319_v3 = vadd.f32 %v7317_v60, %v7313_v5  ;;  %v7594_v60 = vld [vmem:[%s10982_s21] sm:$0xff] }
0x34f7   :  { %v9084_v0 = vpack.c.bf16 %v7595_v38, %v7594_v60 }
0x34f8   :  { %8788 = vmatmul.mubr.msk.f32.vlgmr.msra.gmra.mrb[84].mxu1 %vm442_vm3, %v7319_v3 }
0x34f9   :  { %9085 = vmatprep.subr.bf16.mxu1 %v9084_v0 }
0x34fa   :  { %9087 = vmatpush3.bf16.msra.mxu1 %v9084_v0 }
0x35cb   :  { %v8789_v16 = vpop.f32.mrb[84].mxu1 }
0x35cc   :  { %v7411_v24 = vadd.f32 %v8789_v16, %v7890_v18  ;;  %v7405_v17 = vpop.f32.mrb[85].mxu1 }
0x35cd   :  { %v7406_v7 = vadd.f32 %v7890_v18, %v7405_v17  ;;  %v7901_v17 = vld [vmem:[%s10983_s17] ss:$0 sm:$0xff] }
0x35ce   :  { %v7415_v39 = vmax.f32 %v7411_v24, 0.0 }
0x35cf   :  { %v7414_v10 = vmax.f32 %v7406_v7, 0.0 }
0x35d1   :  { %8798 = vmatprep.mubr.msk.f32.mxu0 %vm442_vm3, %v7414_v10 }
0x35d2   :  { %8799 = vmatmul.mubr.msk.f32.vlgmr.msra.gmra.mrb[82].mxu0 %vm442_vm3, %v7415_v39 }
0x36a5   :  { %v8800_v52 = vpop.f32.mrb[82].mxu0 }
0x36a6   :  { %v7507_v25 = vadd.f32 %v8800_v52, %v7898_v23  ;;  %v7501_v27 = vpop.f32.mrb[83].mxu0 }
0x36a7   :  { %v7502_v9 = vadd.f32 %v7898_v23, %v7501_v27  ;;  %v7902_v23 = vld [vmem:[%s10984_s22] ss:$0 sm:$0xff] }
0x36a8   :  { %v7511_v31 = vadd.f32 %v7507_v25, %v7319_v3 }
0x36a9   :  { %v7510_v12 = vadd.f32 %v7502_v9, %v7318_v2  ;;  %v7597_v2 = vld [vmem:[%s10982_s21 + $0x18] sm:$0xff] }
0x36aa   :  { %v7515_v13 = vsel %vm442_vm3, %v7511_v31, 0.0  ;;  %v9088_v5 = vpack.c.bf16 %v7597_v2, %v7596_v55 }
0x36ab   :  { %7516 = vadd.xlane.f32.xlu0 %v7515_v13  ;;  %v7512_v33 = vsel %vm442_vm3, %v7510_v12, 0.0 }
0x36ac   :  { %7513 = vadd.xlane.f32.xlu1 %v7512_v33  ;;  %9089 = vmatprep.subr.bf16.mxu1 %v9088_v5 }
0x36ad   :  { %9091 = vmatpush3.bf16.msra.mxu1 %v9088_v5 }
0x3738   :  { %v7517_v14 = vpop.xlane.xlu0 %7516 }
0x3739   :  { %v7519_v34 = vmul.f32 0.03125, %v7517_v14  ;;  %v7514_v35 = vpop.xlane.xlu1 %7513 }
0x373a   :  { %v7518_v26 = vmul.f32 0.03125, %v7514_v35 }
0x373b   :  { %v7521_v61 = vsub.f32 %v7511_v31, %v7519_v34  ;;  %v7903_v31 = vld [vmem:[%s10985_s29] ss:$0 sm:$0xff] }
0x373c   :  { %v7520_v8 = vsub.f32 %v7510_v12, %v7518_v26 }
0x373d   :  { %v7523_v63 = vmul.f32 %v7521_v61, %v7521_v61 }
0x373e   :  { %v7522_v37 = vmul.f32 %v7520_v8, %v7520_v8 }
0x373f   :  { %v7527_v30 = vsel %vm442_vm3, %v7523_v63, 0.0 }
0x3740   :  { %7528 = vadd.xlane.f32.xlu0 %v7527_v30  ;;  %v7524_v28 = vsel %vm442_vm3, %v7522_v37, 0.0 }
0x3741   :  { %7525 = vadd.xlane.f32.xlu1 %v7524_v28 }
0x37cd   :  { %v7529_v43 = vpop.xlane.xlu0 %7528 }
0x37ce   :  { %v7531_v48 = vmul.f32 0.03125, %v7529_v43  ;;  %v7526_v44 = vpop.xlane.xlu1 %7525 }
0x37cf   :  { %v7530_v45 = vmul.f32 0.03125, %v7526_v44 }
0x37d0   :  { %v7533_v49 = vadd.f32 1e-05, %v7531_v48 }
0x37d1   :  { %v7532_v19 = vadd.f32 1e-05, %v7530_v45 }
0x37d2   :  { %9399 = vrsqrt.f32 %v7533_v49 }
0x37d3   :  { %9401 = vrsqrt.f32 %v7532_v19 }
0x37dc   :  { %v9400_v46 = vpop.eup %9399 }
0x37dd   :  { %v9402_v15 = vpop.eup %9401  ;;  %v7537_v42 = vmul.f32 %v9400_v46, %v7521_v61 }
0x37de   :  { %v7536_v50 = vmul.f32 %v9402_v15, %v7520_v8 }
0x37df   :  { %v7543_v21 = vmul.f32 %v7541_v47, %v7537_v42 }
0x37e0   :  { %v7542_v22 = vmul.f32 %v7541_v47, %v7536_v50 }
0x37e1   :  { %v7549_v51 = vadd.f32 %v7547_v32, %v7543_v21 }
0x37e2   :  { %v7548_v54 = vadd.f32 %v7547_v32, %v7542_v22 }
0x37e3   :  { %v7555_v40 = vsel %vm442_vm3, %v7549_v51, 0.0 }
0x37e4   :  { %7556 = vadd.xlane.f32.xlu0 %v7555_v40  ;;  %v7552_v53 = vsel %vm442_vm3, %v7548_v54, 0.0 }
0x37e5   :  { %7553 = vadd.xlane.f32.xlu1 %v7552_v53 }
0x3871   :  { %v7557_v58 = vpop.xlane.xlu0 %7556 }
0x3872   :  { %v7559_v41 = vmul.f32 0.03125, %v7557_v58  ;;  %v7554_v6 = vpop.xlane.xlu1 %7553 }
0x3873   :  { %v7558_v59 = vmul.f32 0.03125, %v7554_v6 }
0x3874   :  { %v7561_v1 = vsub.f32 %v7549_v51, %v7559_v41 }
0x3875   :  { %v7560_v57 = vsub.f32 %v7548_v54, %v7558_v59 }
0x3876   :  { %v7563_v56 = vmul.f32 %v7561_v1, %v7561_v1 }
0x3877   :  { %v7562_v36 = vmul.f32 %v7560_v57, %v7560_v57 }
0x3878   :  { %v7567_v20 = vsel %vm442_vm3, %v7563_v56, 0.0 }
0x3879   :  { %7568 = vadd.xlane.f32.xlu0 %v7567_v20  ;;  %v7564_v29 = vsel %vm442_vm3, %v7562_v36, 0.0 }
0x387a   :  { %7565 = vadd.xlane.f32.xlu1 %v7564_v29 }
0x3906   :  { %v7569_v3 = vpop.xlane.xlu0 %7568 }
0x3907   :  { %v7571_v62 = vmul.f32 0.03125, %v7569_v3  ;;  %v7566_v4 = vpop.xlane.xlu1 %7565 }
0x3908   :  { %v7570_v11 = vmul.f32 0.03125, %v7566_v4 }
0x3909   :  { %v7573_v18 = vadd.f32 1e-05, %v7571_v62 }
0x390a   :  { %v7572_v16 = vadd.f32 1e-05, %v7570_v11 }
0x390b   :  { %9403 = vrsqrt.f32 %v7573_v18 }
0x390c   :  { %9405 = vrsqrt.f32 %v7572_v16 }
0x3915   :  { %v9404_v24 = vpop.eup %9403 }
0x3916   :  { %v9406_v7 = vpop.eup %9405  ;;  %v7577_v10 = vmul.f32 %v9404_v24, %v7561_v1 }
0x3917   :  { %v7576_v39 = vmul.f32 %v9406_v7, %v7560_v57 }
0x3918   :  { %v7585_v52 = vmul.f32 %v7901_v17, %v7577_v10 }
0x3919   :  { %v7584_v25 = vmul.f32 %v7901_v17, %v7576_v39 }
0x391a   :  { %v7593_v9 = vadd.f32 %v7902_v23, %v7585_v52 }
0x391b   :  { %v7592_v27 = vadd.f32 %v7902_v23, %v7584_v25 }
0x391d   :  { %8809 = vmatprep.mubr.msk.f32.mxu1 %vm442_vm3, %v7592_v27 }
0x391e   :  { %8810 = vmatmul.mubr.msk.f32.vlgmr.msra.gmra.mrb[86].mxu1 %vm442_vm3, %v7593_v9 }
0x39f1   :  { %v8811_v12 = vpop.f32.mrb[86].mxu1 }
0x39f2   :  { %v7683_v13 = vadd.f32 %v8811_v12, %v7903_v31  ;;  %v7677_v33 = vpop.f32.mrb[87].mxu1 }
0x39f3   :  { %v7678_v14 = vadd.f32 %v7903_v31, %v7677_v33 }
0x39f4   :  { %7687 = vst [vmem:[%s10986_s6 + $0x8] sm:$0xff] %v7683_v13 }
0x39f5   :  { %7686 = vst [vmem:[%s10986_s6] sm:$0xff] %v7678_v14 }

</bundles_post_ra>
